<compile_context>
chip_gen: v5e
topology: v5e:2x2
jax: 0.10.0
libtpu: 0.0.40
codegen_flags: <defaults>
</compile_context>

<pallas_src>
import functools
import math

import jax
import jax.numpy as jnp
from jax import lax
from jax.experimental import pallas as pl
from jax.experimental.pallas import tpu as pltpu

# TODO(synk): make this generation-aware via pltpu.get_tpu_info() (v7x has 64 MiB
# physical VMEM per TC vs 128 MiB on v5e/v6e); 32 MiB is safe everywhere.
_VMEM_LIMIT = 32 * 1024 * 1024
_SQRT1_2 = 0.7071067811865476


# ------------------------------ small helpers -------------------------------

def _round_up(x, m):
    return (x + m - 1) // m * m


def _pick_tile(dim, cap, align):
    """Largest multiple of `align` dividing `dim` (dim must be align-multiple), <= cap."""
    assert dim % align == 0, (dim, align)
    best = align
    t = align
    limit = min(cap, dim)
    while t <= limit:
        if dim % t == 0:
            best = t
        t += align
    return best


def _gelu_erf_f32(x):
    # Exact-erf GELU (torch F.gelu default). erf evaluated with the Abramowitz &
    # Stegun 7.1.26 polynomial (|abs err| < 1.5e-7) using only basic VPU/EUP ops.
    # TODO(synk): switch to lax.erf if/when Mosaic exposes a native erf lowering.
    z = x * jnp.float32(_SQRT1_2)
    az = jnp.abs(z)
    t = 1.0 / (1.0 + jnp.float32(0.3275911) * az)
    poly = t * (jnp.float32(0.254829592)
                + t * (jnp.float32(-0.284496736)
                       + t * (jnp.float32(1.421413741)
                              + t * (jnp.float32(-1.453152027)
                                     + t * jnp.float32(1.061405429)))))
    erf_abs = 1.0 - poly * jnp.exp(-az * az)
    erf_z = jnp.where(z >= 0, erf_abs, -erf_abs)
    return jnp.float32(0.5) * x * (1.0 + erf_z)


# ------------------------------ Pallas kernels ------------------------------

def _ln_matmul_kernel(x_ref, g_ref, b_ref, w_ref, *rest,
                      eps, true_k, has_bias, activation):
    """Fused LayerNorm(x) @ W (+ bias) (+ exact-erf GELU).  Grid = (M//tm, N//tn)."""
    if has_bias:
        bias_ref, o_ref, xn_ref = rest
    else:
        o_ref, xn_ref = rest
    j = pl.program_id(1)

    # LayerNorm the x row-tile once per row-block (j == 0), cache it in bf16 scratch.
    # NOTE: correctness relies on grid axis 1 (N) staying sequential ("arbitrary")
    # with j innermost, so the tile cached at j == 0 is reused for j > 0.
    @pl.when(j == 0)
    def _():
        x = x_ref[...].astype(jnp.float32)
        inv_k = jnp.float32(1.0 / true_k)
        mu = jnp.sum(x, axis=-1, keepdims=True) * inv_k
        d = x - mu
        if x.shape[-1] != true_k:          # zero-padded feature columns
            col = lax.broadcasted_iota(jnp.int32, x.shape, 1)
            d = jnp.where(col < true_k, d, 0.0)
        var = jnp.sum(d * d, axis=-1, keepdims=True) * inv_k
        xn = d * lax.rsqrt(var + jnp.float32(eps))
        xn = xn * g_ref[...] + b_ref[...]
        xn_ref[...] = xn.astype(xn_ref.dtype)

    acc = jnp.dot(xn_ref[...], w_ref[...], preferred_element_type=jnp.float32)
    if has_bias:
        acc = acc + bias_ref[...]
    if activation == "gelu":
        acc = _gelu_erf_f32(acc)
    o_ref[...] = acc.astype(o_ref.dtype)


def _matmul_kernel(x_ref, w_ref, *rest, has_bias, has_residual, activation):
    """Tiled x @ W (+ bias) (+ GELU) (+ residual) with K accumulation.
    Grid = (M//tm, N//tn, K//tk)."""
    idx = 0
    if has_bias:
        bias_ref = rest[idx]; idx += 1
    if has_residual:
        res_ref = rest[idx]; idx += 1
    o_ref, acc_ref = rest[idx], rest[idx + 1]
    kk = pl.program_id(2)

    @pl.when(kk == 0)
    def _():
        acc_ref[...] = jnp.zeros_like(acc_ref)

    acc_ref[...] += jnp.dot(x_ref[...].astype(w_ref.dtype), w_ref[...],
                            preferred_element_type=jnp.float32)

    @pl.when(kk == pl.num_programs(2) - 1)
    def _():
        r = acc_ref[...]
        if has_bias:
            r = r + bias_ref[...]
        if activation == "gelu":
            r = _gelu_erf_f32(r)
        if has_residual:
            r = r + res_ref[...].astype(jnp.float32)
        o_ref[...] = r.astype(o_ref.dtype)


def _flash_attn_kernel(q_ref, k_ref, v_ref, o_ref, m_sc, l_sc, acc_sc, *, true_t):
    """Flash-style causal attention over a group of heads per grid step.
    Grid = (B, H//hpg, T//tq, T//tk) with tq == tk."""
    qi = pl.program_id(2)
    ki = pl.program_id(3)
    tq = q_ref.shape[2]
    tk = k_ref.shape[2]

    @pl.when(ki == 0)
    def _init():
        m_sc[...] = jnp.full(m_sc.shape, -jnp.inf, m_sc.dtype)
        l_sc[...] = jnp.zeros(l_sc.shape, l_sc.dtype)
        acc_sc[...] = jnp.zeros(acc_sc.shape, acc_sc.dtype)

    # kv blocks strictly above the causal diagonal are compute-skipped here AND
    # DMA-skipped (their index_map is clamped to qi, so the block index repeats
    # and the pipeline elides the copy).
    @pl.when(ki <= qi)
    def _compute():
        q = q_ref[0]                       # (hpg, tq, hd) bf16, 1/sqrt(hd) pre-folded
        k = k_ref[0]
        s = jnp.einsum('hqd,hkd->hqk', q, k,
                       preferred_element_type=jnp.float32)         # (hpg, tq, tk)
        rowg = qi * tq + lax.broadcasted_iota(jnp.int32, s.shape, 1)
        colg = ki * tk + lax.broadcasted_iota(jnp.int32, s.shape, 2)
        mask = colg <= rowg
        if true_t is not None:                                     # padded seq tail
            mask = jnp.logical_and(mask, colg < true_t)
        s = jnp.where(mask, s, jnp.float32(-1e30))

        m_prev = m_sc[...]
        m_new = jnp.maximum(m_prev, jnp.max(s, axis=-1, keepdims=True))
        alpha = jnp.exp(m_prev - m_new)
        p = jnp.exp(s - m_new)
        l_sc[...] = alpha * l_sc[...] + jnp.sum(p, axis=-1, keepdims=True)
        acc_sc[...] = alpha * acc_sc[...] + jnp.einsum(
            'hqk,hkd->hqd', p.astype(jnp.bfloat16), v_ref[0],
            preferred_element_type=jnp.float32)
        m_sc[...] = m_new

    @pl.when(ki == pl.num_programs(3) - 1)
    def _finalize():
        o_ref[0] = (acc_sc[...] *
                    pl.reciprocal(l_sc[...], approx=True)).astype(o_ref.dtype)


# ------------------------------ Pallas wrappers -----------------------------

def ln_linear(x, gamma, beta, w, bias=None, *, eps=1e-5, activation=None,
              true_k=None, out_dtype=jnp.bfloat16, tm_max=256, tn_max=1024):
    """Fused LayerNorm + matmul: LN(x) @ w (+ bias) (+ GELU).

    x: (M, K) f32 (pre-padded, K multiple of 128, M multiple of 16),
    w: (K, N) bf16 pre-transposed/pre-padded, gamma/beta: (1, K) f32.
    K is not tiled (K = n_embed fits VMEM); N and M are tiled.
    """
    M, K = x.shape
    Kw, N = w.shape
    assert Kw == K and M % 16 == 0 and K % 128 == 0 and N % 128 == 0
    if true_k is None:
        true_k = K
    tm = _pick_tile(M, tm_max, 16)
    tn = _pick_tile(N, tn_max, 128)

    has_bias = bias is not None
    inputs = [x, gamma, beta, w]
    in_specs = [
        pl.BlockSpec((tm, K), lambda i, j: (i, 0)),
        pl.BlockSpec((1, K), lambda i, j: (0, 0)),
        pl.BlockSpec((1, K), lambda i, j: (0, 0)),
        pl.BlockSpec((K, tn), lambda i, j: (0, j)),
    ]
    if has_bias:
        inputs.append(bias)
        in_specs.append(pl.BlockSpec((1, tn), lambda i, j: (0, j)))

    kernel = functools.partial(_ln_matmul_kernel, eps=eps, true_k=true_k,
                               has_bias=has_bias, activation=activation)
    return pl.pallas_call(
        kernel,
        out_shape=jax.ShapeDtypeStruct((M, N), out_dtype),
        grid=(M // tm, N // tn),
        in_specs=in_specs,
        out_specs=pl.BlockSpec((tm, tn), lambda i, j: (i, j)),
        scratch_shapes=[pltpu.VMEM((tm, K), jnp.bfloat16)],
        compiler_params=pltpu.CompilerParams(
            dimension_semantics=("parallel", "arbitrary"),
            vmem_limit_bytes=_VMEM_LIMIT),
    )(*inputs)


def matmul(x, w, bias=None, residual=None, *, activation=None,
           out_dtype=jnp.float32, tm_max=512, tn_max=1024, tk_max=512):
    """Tiled x @ w (+ bias) (+ GELU) (+ fused residual add).
    x: (M, K) bf16/f32, w: (K, N) bf16 pre-transposed/pre-padded."""
    M, K = x.shape
    Kw, N = w.shape
    assert Kw == K and M % 16 == 0 and K % 128 == 0 and N % 128 == 0
    tm = _pick_tile(M, tm_max, 16)
    tn = _pick_tile(N, tn_max, 128)
    tk = _pick_tile(K, tk_max, 128)

    has_bias = bias is not None
    has_residual = residual is not None
    inputs = [x, w]
    in_specs = [
        pl.BlockSpec((tm, tk), lambda i, j, kk: (i, kk)),
        pl.BlockSpec((tk, tn), lambda i, j, kk: (kk, j)),
    ]
    if has_bias:
        inputs.append(bias)
        in_specs.append(pl.BlockSpec((1, tn), lambda i, j, kk: (0, j)))
    if has_residual:
        inputs.append(residual)
        in_specs.append(pl.BlockSpec((tm, tn), lambda i, j, kk: (i, j)))

    kernel = functools.partial(_matmul_kernel, has_bias=has_bias,
                               has_residual=has_residual, activation=activation)
    return pl.pallas_call(
        kernel,
        out_shape=jax.ShapeDtypeStruct((M, N), out_dtype),
        grid=(M // tm, N // tn, K // tk),
        in_specs=in_specs,
        out_specs=pl.BlockSpec((tm, tn), lambda i, j, kk: (i, j)),
        scratch_shapes=[pltpu.VMEM((tm, tn), jnp.float32)],
        compiler_params=pltpu.CompilerParams(
            dimension_semantics=("parallel", "parallel", "arbitrary"),
            vmem_limit_bytes=_VMEM_LIMIT),
    )(*inputs)


def causal_attention(q, k, v, *, true_t=None, heads_per_step=4, tq_max=256):
    """q, k, v: (B, H, T, hd) bf16 -> (B, H, T, hd) bf16 flash causal SDPA.
    The 1/sqrt(hd) scale is assumed pre-folded into the q projection weights."""
    B, H, Tp, hd = q.shape
    hpg = 1
    for d in range(min(heads_per_step, H), 0, -1):
        if H % d == 0:
            hpg = d
            break
    tq = _pick_tile(Tp, tq_max, 16)
    tk = tq          # equal q/k tiles keep the causal kv clamp a simple min(ki, qi)

    kernel = functools.partial(_flash_attn_kernel, true_t=true_t)
    q_spec = pl.BlockSpec((1, hpg, tq, hd), lambda b, hb, qi, ki: (b, hb, qi, 0))
    kv_spec = pl.BlockSpec((1, hpg, tk, hd),
                           lambda b, hb, qi, ki: (b, hb, jnp.minimum(ki, qi), 0))
    # TODO(synk): a fully lane-dense (B*T, C) output layout (deleting the post-attn
    # XLA transpose) needs an in-kernel head/seq relayout; left as follow-up.
    return pl.pallas_call(
        kernel,
        out_shape=jax.ShapeDtypeStruct((B, H, Tp, hd), jnp.bfloat16),
        grid=(B, H // hpg, Tp // tq, Tp // tk),
        in_specs=[q_spec, kv_spec, kv_spec],
        out_specs=q_spec,
        scratch_shapes=[pltpu.VMEM((hpg, tq, 1), jnp.float32),
                        pltpu.VMEM((hpg, tq, 1), jnp.float32),
                        pltpu.VMEM((hpg, tq, hd), jnp.float32)],
        compiler_params=pltpu.CompilerParams(
            dimension_semantics=("parallel", "parallel", "parallel", "arbitrary"),
            vmem_limit_bytes=_VMEM_LIMIT),
    )(q.astype(jnp.bfloat16), k.astype(jnp.bfloat16), v.astype(jnp.bfloat16))


# ------------------------------- model glue ---------------------------------

def block_forward(p, x, B, Tp, true_t, n_head, C):
    """x: (B*Tp, Cp) f32 residual stream (pad columns are zero)."""
    Cp = x.shape[-1]
    hd = C // n_head

    # --- attention branch: fused LayerNorm + c_attn projection (bf16 out) ---
    qkv = ln_linear(x, p["ln1_g"], p["ln1_b"], p["attn_w"], p["attn_b"],
                    true_k=C, out_dtype=jnp.bfloat16)            # (B*Tp, 3*Cp)
    qkv = qkv.reshape(B, Tp, 3, Cp)
    if Cp != C:
        qkv = qkv[:, :, :, :C]
    qkv = qkv.reshape(B, Tp, 3, n_head, hd)
    # TODO(synk): head split/merge transposes stay in XLA (hd < 128 lanes cannot be
    # expressed as lane-aligned BlockSpec slices of the (B*Tp, 3*Cp) qkv buffer).
    q = qkv[:, :, 0].transpose(0, 2, 1, 3)                       # (B, H, Tp, hd) bf16
    k = qkv[:, :, 1].transpose(0, 2, 1, 3)
    v = qkv[:, :, 2].transpose(0, 2, 1, 3)
    y = causal_attention(q, k, v, true_t=true_t)                 # (B, H, Tp, hd) bf16
    y = y.transpose(0, 2, 1, 3).reshape(B * Tp, C)
    if Cp != C:
        y = jnp.pad(y, ((0, 0), (0, Cp - C)))
    # residual add fused into the projection epilogue
    x = matmul(y, p["attn_proj_w"], p["attn_proj_b"], residual=x,
               out_dtype=jnp.float32)                            # (B*Tp, Cp) f32

    # --- MLP branch: fused LayerNorm + fc + exact-erf GELU (bf16 out), then proj ---
    h = ln_linear(x, p["ln2_g"], p["ln2_b"], p["fc_w"], p["fc_b"],
                  true_k=C, activation="gelu", out_dtype=jnp.bfloat16)
    x = matmul(h, p["mlp_proj_w"], p["mlp_proj_b"], residual=x,
               out_dtype=jnp.float32)
    return x


def gpt2_forward(params, ids, *, n_head, n_embed, vocab_size):
    B, T = ids.shape
    C = n_embed
    Cp = params["wte"].shape[1]
    Tp = _round_up(T, 16)

    tok = jnp.take(params["wte"], ids, axis=0)                   # (B, T, Cp) gather
    pos = params["wpe"][:T]
    x = tok + pos[None, :, :]
    if Tp != T:
        x = jnp.pad(x, ((0, 0), (0, Tp - T), (0, 0)))
    x = x.reshape(B * Tp, Cp).astype(jnp.float32)

    true_t = T if Tp != T else None
    for p in params["blocks"]:
        x = block_forward(p, x, B, Tp, true_t, n_head, C)

    # final LayerNorm fused into the bias-free lm_head matmul (f32 logits, big row tile)
    logits = ln_linear(x, params["lnf_g"], params["lnf_b"], params["lm_head_w"],
                       None, true_k=C, out_dtype=jnp.float32, tm_max=1024)
    Vp = logits.shape[-1]
    logits = logits.reshape(B, Tp, Vp)
    # TODO(synk): for training, fuse softmax/loss here instead of slicing f32 logits.
    return logits[:, :T, :vocab_size]


# ---------------------------- parameter creation ----------------------------

def init_params(key, vocab_size, n_embed, block_size, n_layer, n_head):
    """Weights are created padded to 128-aligned feature dims, pre-transposed
    (in_features, out_features) and pre-cast to bf16 once, so the per-forward
    pad/astype copies disappear.  The SDPA 1/sqrt(hd) scale is folded into the
    q-projection columns (mathematically identical to scaling q in attention)."""
    C = n_embed
    Cp = _round_up(C, 128)
    F = 4 * C
    Fp = _round_up(F, 128)
    Vp = _round_up(vocab_size, 128)
    hd = C // n_head
    q_scale = 1.0 / math.sqrt(hd)

    keys = jax.random.split(key, 3 + 5 * n_layer)
    ki = iter(keys)

    def nrm(k, shape):
        return 0.02 * jax.random.normal(k, shape, dtype=jnp.float32)

    def pad_to(a, shape):
        return jnp.pad(a, [(0, s - d) for d, s in zip(a.shape, shape)])

    params = {
        "wte": pad_to(nrm(next(ki), (vocab_size, C)), (vocab_size, Cp)),
        "wpe": pad_to(nrm(next(ki), (block_size, C)), (block_size, Cp)),
        "blocks": [],
        "lnf_g": pad_to(jnp.ones((1, C), jnp.float32), (1, Cp)),
        "lnf_b": jnp.zeros((1, Cp), jnp.float32),
    }
    for _ in range(n_layer):
        attn_w = nrm(next(ki), (C, 3, C))
        attn_w = attn_w.at[:, 0, :].multiply(q_scale)      # fold SDPA scale into W_q
        attn_w = pad_to(attn_w, (Cp, 3, Cp)).reshape(Cp, 3 * Cp)
        blk = {
            "ln1_g": pad_to(jnp.ones((1, C), jnp.float32), (1, Cp)),
            "ln1_b": jnp.zeros((1, Cp), jnp.float32),
            "attn_w": attn_w.astype(jnp.bfloat16),
            "attn_b": jnp.zeros((1, 3 * Cp), jnp.float32),
            "attn_proj_w": pad_to(nrm(next(ki), (C, C)), (Cp, Cp)).astype(jnp.bfloat16),
            "attn_proj_b": jnp.zeros((1, Cp), jnp.float32),
            "ln2_g": pad_to(jnp.ones((1, C), jnp.float32), (1, Cp)),
            "ln2_b": jnp.zeros((1, Cp), jnp.float32),
            "fc_w": pad_to(nrm(next(ki), (C, F)), (Cp, Fp)).astype(jnp.bfloat16),
            "fc_b": jnp.zeros((1, Fp), jnp.float32),
            "mlp_proj_w": pad_to(nrm(next(ki), (F, C)), (Fp, Cp)).astype(jnp.bfloat16),
            "mlp_proj_b": jnp.zeros((1, Cp), jnp.float32),
        }
        params["blocks"].append(blk)
    params["lm_head_w"] = pad_to(nrm(next(ki), (C, vocab_size)),
                                 (Cp, Vp)).astype(jnp.bfloat16)
    return params


# ----------------------------------- main ------------------------------------

if __name__ == "__main__":
    # Small GPT-2 config consistent with the module's constructor signature.
    vocab_size = 128
    n_embed = 32
    block_size = 16
    n_layer = 2
    n_head = 4
    B, T = 2, 8

    key = jax.random.PRNGKey(0)
    pkey, ikey = jax.random.split(key)
    params = init_params(pkey, vocab_size, n_embed, block_size, n_layer, n_head)
    ids = jax.random.randint(ikey, (B, T), 0, vocab_size, dtype=jnp.int32)

    fwd = jax.jit(functools.partial(gpt2_forward, n_head=n_head,
                                    n_embed=n_embed, vocab_size=vocab_size))
    logits = fwd(params, ids)
    jax.block_until_ready(logits)

    assert logits.shape == (B, T, vocab_size)
    assert bool(jnp.all(jnp.isfinite(logits)))
    print("KERNEL_OK")
</pallas_src>

<mosaic_0001>
module attributes {stable_mosaic.version = 11 : i64} {
  func.func @_ln_matmul_kernel(%arg0: i32, %arg1: i32, %arg2: memref<32x128xf32, #tpu.memory_space<vmem>>, %arg3: memref<1x128xf32, #tpu.memory_space<vmem>>, %arg4: memref<1x128xf32, #tpu.memory_space<vmem>>, %arg5: memref<128x384xbf16, #tpu.memory_space<vmem>>, %arg6: memref<1x384xf32, #tpu.memory_space<vmem>>, %arg7: memref<32x384xbf16, #tpu.memory_space<vmem>>, %arg8: memref<32x128xbf16, #tpu.memory_space<vmem>>) attributes {dimension_semantics = [#tpu.dimension_semantics<parallel>, #tpu.dimension_semantics<arbitrary>], iteration_bounds = array<i64: 1, 1>, scalar_prefetch = 0 : i64, scratch_operands = 1 : i64, tpu.core_type = #tpu.core_type<tc>, window_params = [{transform_indices = @transform_0, window_bounds = array<i64: 32, 128>}, {pipeline_mode = #tpu.pipeline_mode<synchronous>, transform_indices = @transform_1, window_bounds = array<i64: 1, 128>}, {pipeline_mode = #tpu.pipeline_mode<synchronous>, transform_indices = @transform_2, window_bounds = array<i64: 1, 128>}, {transform_indices = @transform_3, window_bounds = array<i64: 128, 384>}, {transform_indices = @transform_4, window_bounds = array<i64: 1, 384>}, {transform_indices = @transform_5, window_bounds = array<i64: 32, 384>}]} {
    %c0_i32 = arith.constant 0 : i32
    %0 = arith.cmpi eq, %arg1, %c0_i32 : i32
    %1 = arith.extui %0 : i1 to i32
    %c0_i32_0 = arith.constant 0 : i32
    %2 = arith.cmpi ne, %1, %c0_i32_0 : i32
    scf.if %2 {
      %c0_8 = arith.constant 0 : index
      %c0_9 = arith.constant 0 : index
      %11 = vector.load %arg2[%c0_8, %c0_9] : memref<32x128xf32, #tpu.memory_space<vmem>>, vector<32x128xf32>
      %cst_10 = arith.constant dense<0.000000e+00> : vector<32xf32>
      %12 = vector.multi_reduction <add>, %11, %cst_10 [1] : vector<32x128xf32> to vector<32xf32>
      %13 = vector.shape_cast %12 : vector<32xf32> to vector<32x1xf32>
      %cst_11 = arith.constant 3.125000e-02 : f32
      %14 = vector.broadcast %cst_11 : f32 to vector<32x1xf32>
      %15 = arith.mulf %13, %14 : vector<32x1xf32>
      %16 = vector.broadcast %15 : vector<32x1xf32> to vector<32x128xf32>
      %17 = arith.subf %11, %16 : vector<32x128xf32>
      %18 = tpu.iota {dimensions = array<i32: 1>} : vector<32x128xi32>
      %c32_i32 = arith.constant 32 : i32
      %19 = vector.broadcast %c32_i32 : i32 to vector<32x128xi32>
      %20 = arith.cmpi slt, %18, %19 : vector<32x128xi32>
      %cst_12 = arith.constant 0.000000e+00 : f32
      %21 = vector.broadcast %cst_12 : f32 to vector<32x128xf32>
      %22 = arith.select %20, %17, %21 : vector<32x128xi1>, vector<32x128xf32>
      %23 = arith.mulf %22, %22 : vector<32x128xf32>
      %cst_13 = arith.constant dense<0.000000e+00> : vector<32xf32>
      %24 = vector.multi_reduction <add>, %23, %cst_13 [1] : vector<32x128xf32> to vector<32xf32>
      %25 = vector.shape_cast %24 : vector<32xf32> to vector<32x1xf32>
      %cst_14 = arith.constant 3.125000e-02 : f32
      %26 = vector.broadcast %cst_14 : f32 to vector<32x1xf32>
      %27 = arith.mulf %25, %26 : vector<32x1xf32>
      %cst_15 = arith.constant 9.99999974E-6 : f32
      %28 = vector.broadcast %cst_15 : f32 to vector<32x1xf32>
      %29 = arith.addf %27, %28 : vector<32x1xf32>
      %30 = math.rsqrt %29 : vector<32x1xf32>
      %31 = vector.broadcast %30 : vector<32x1xf32> to vector<32x128xf32>
      %32 = arith.mulf %22, %31 : vector<32x128xf32>
      %c0_16 = arith.constant 0 : index
      %c0_17 = arith.constant 0 : index
      %33 = vector.load %arg3[%c0_16, %c0_17] : memref<1x128xf32, #tpu.memory_space<vmem>>, vector<1x128xf32>
      %34 = vector.broadcast %33 : vector<1x128xf32> to vector<32x128xf32>
      %35 = arith.mulf %32, %34 : vector<32x128xf32>
      %c0_18 = arith.constant 0 : index
      %c0_19 = arith.constant 0 : index
      %36 = vector.load %arg4[%c0_18, %c0_19] : memref<1x128xf32, #tpu.memory_space<vmem>>, vector<1x128xf32>
      %37 = vector.broadcast %36 : vector<1x128xf32> to vector<32x128xf32>
      %38 = arith.addf %35, %37 : vector<32x128xf32>
      %39 = arith.truncf %38 : vector<32x128xf32> to vector<32x128xbf16>
      %c0_20 = arith.constant 0 : index
      %c0_21 = arith.constant 0 : index
      %40 = vector.load %arg8[%c0_20, %c0_21] : memref<32x128xbf16, #tpu.memory_space<vmem>>, vector<32x128xbf16>
      tpu.vector_store %arg8[%c0_20, %c0_21], %39 {strides = array<i32>} : memref<32x128xbf16, #tpu.memory_space<vmem>>, vector<32x128xbf16>,
    } else {
    }
    %c0 = arith.constant 0 : index
    %c0_1 = arith.constant 0 : index
    %3 = vector.load %arg8[%c0, %c0_1] : memref<32x128xbf16, #tpu.memory_space<vmem>>, vector<32x128xbf16>
    %c0_2 = arith.constant 0 : index
    %c0_3 = arith.constant 0 : index
    %4 = vector.load %arg5[%c0_2, %c0_3] : memref<128x384xbf16, #tpu.memory_space<vmem>>, vector<128x384xbf16>
    %cst = arith.constant dense<0.000000e+00> : vector<32x384xf32>
    %5 = tpu.matmul %3, %4, %cst {dimension_numbers = #tpu.dot_dimension_numbers<[1], [0], [0], [1], [0, 0, 1, 1], [], []>} : vector<32x128xbf16>, vector<128x384xbf16>, vector<32x384xf32> -> vector<32x384xf32>
    %c0_4 = arith.constant 0 : index
    %c0_5 = arith.constant 0 : index
    %6 = vector.load %arg6[%c0_4, %c0_5] : memref<1x384xf32, #tpu.memory_space<vmem>>, vector<1x384xf32>
    %7 = vector.broadcast %6 : vector<1x384xf32> to vector<32x384xf32>
    %8 = arith.addf %5, %7 : vector<32x384xf32>
    %9 = arith.truncf %8 : vector<32x384xf32> to vector<32x384xbf16>
    %c0_6 = arith.constant 0 : index
    %c0_7 = arith.constant 0 : index
    %10 = vector.load %arg7[%c0_6, %c0_7] : memref<32x384xbf16, #tpu.memory_space<vmem>>, vector<32x384xbf16>
    tpu.vector_store %arg7[%c0_6, %c0_7], %9 {strides = array<i32>} : memref<32x384xbf16, #tpu.memory_space<vmem>>, vector<32x384xbf16>,
    return
  }
  func.func @transform_0(%arg0: i32, %arg1: i32) -> (i32, i32) {
    %c0_i32 = arith.constant 0 : i32
    %c0_i32_0 = arith.constant 0 : i32
    return %arg0, %c0_i32 : i32, i32
  }
  func.func @transform_1(%arg0: i32, %arg1: i32) -> (i32, i32) {
    %c0_i32 = arith.constant 0 : i32
    %c0_i32_0 = arith.constant 0 : i32
    %c0_i32_1 = arith.constant 0 : i32
    return %c0_i32, %c0_i32_0 : i32, i32
  }
  func.func @transform_2(%arg0: i32, %arg1: i32) -> (i32, i32) {
    %c0_i32 = arith.constant 0 : i32
    %c0_i32_0 = arith.constant 0 : i32
    %c0_i32_1 = arith.constant 0 : i32
    return %c0_i32, %c0_i32_0 : i32, i32
  }
  func.func @transform_3(%arg0: i32, %arg1: i32) -> (i32, i32) {
    %c0_i32 = arith.constant 0 : i32
    %c0_i32_0 = arith.constant 0 : i32
    return %c0_i32, %arg1 : i32, i32
  }
  func.func @transform_4(%arg0: i32, %arg1: i32) -> (i32, i32) {
    %c0_i32 = arith.constant 0 : i32
    %c0_i32_0 = arith.constant 0 : i32
    return %c0_i32, %arg1 : i32, i32
  }
  func.func @transform_5(%arg0: i32, %arg1: i32) -> (i32, i32) {
    %c0_i32 = arith.constant 0 : i32
    return %arg0, %arg1 : i32, i32
  }
}

module attributes {stable_mosaic.version = 11 : i64} {
  func.func @_flash_attn_kernel(%arg0: i32, %arg1: i32, %arg2: i32, %arg3: i32, %arg4: memref<1x4x16x8xbf16, #tpu.memory_space<vmem>>, %arg5: memref<1x4x16x8xbf16, #tpu.memory_space<vmem>>, %arg6: memref<1x4x16x8xbf16, #tpu.memory_space<vmem>>, %arg7: memref<1x4x16x8xbf16, #tpu.memory_space<vmem>>, %arg8: memref<4x16x1xf32, #tpu.memory_space<vmem>>, %arg9: memref<4x16x1xf32, #tpu.memory_space<vmem>>, %arg10: memref<4x16x8xf32, #tpu.memory_space<vmem>>) attributes {dimension_semantics = [#tpu.dimension_semantics<parallel>, #tpu.dimension_semantics<parallel>, #tpu.dimension_semantics<parallel>, #tpu.dimension_semantics<arbitrary>], iteration_bounds = array<i64: 2, 1, 1, 1>, scalar_prefetch = 0 : i64, scratch_operands = 3 : i64, tpu.core_type = #tpu.core_type<tc>, window_params = [{transform_indices = @transform_0, window_bounds = array<i64: 1, 4, 16, 8>}, {transform_indices = @transform_1, window_bounds = array<i64: 1, 4, 16, 8>}, {transform_indices = @transform_2, window_bounds = array<i64: 1, 4, 16, 8>}, {transform_indices = @transform_3, window_bounds = array<i64: 1, 4, 16, 8>}]} {
    %c0_i32 = arith.constant 0 : i32
    %0 = arith.cmpi eq, %arg3, %c0_i32 : i32
    %1 = arith.extui %0 : i1 to i32
    %c0_i32_0 = arith.constant 0 : i32
    %2 = arith.cmpi ne, %1, %c0_i32_0 : i32
    scf.if %2 {
      %cst = arith.constant 0xFF800000 : f32
      %9 = vector.broadcast %cst : f32 to vector<4x16x1xf32>
      %c0 = arith.constant 0 : index
      %c0_4 = arith.constant 0 : index
      %c0_5 = arith.constant 0 : index
      %10 = vector.load %arg8[%c0, %c0_4, %c0_5] : memref<4x16x1xf32, #tpu.memory_space<vmem>>, vector<4x16x1xf32>
      tpu.vector_store %arg8[%c0, %c0_4, %c0_5], %9 {strides = array<i32>} : memref<4x16x1xf32, #tpu.memory_space<vmem>>, vector<4x16x1xf32>,
      %cst_6 = arith.constant 0.000000e+00 : f32
      %11 = vector.broadcast %cst_6 : f32 to vector<4x16x1xf32>
      %c0_7 = arith.constant 0 : index
      %c0_8 = arith.constant 0 : index
      %c0_9 = arith.constant 0 : index
      %12 = vector.load %arg9[%c0_7, %c0_8, %c0_9] : memref<4x16x1xf32, #tpu.memory_space<vmem>>, vector<4x16x1xf32>
      tpu.vector_store %arg9[%c0_7, %c0_8, %c0_9], %11 {strides = array<i32>} : memref<4x16x1xf32, #tpu.memory_space<vmem>>, vector<4x16x1xf32>,
      %cst_10 = arith.constant 0.000000e+00 : f32
      %13 = vector.broadcast %cst_10 : f32 to vector<4x16x8xf32>
      %c0_11 = arith.constant 0 : index
      %c0_12 = arith.constant 0 : index
      %c0_13 = arith.constant 0 : index
      %14 = vector.load %arg10[%c0_11, %c0_12, %c0_13] : memref<4x16x8xf32, #tpu.memory_space<vmem>>, vector<4x16x8xf32>
      tpu.vector_store %arg10[%c0_11, %c0_12, %c0_13], %13 {strides = array<i32>} : memref<4x16x8xf32, #tpu.memory_space<vmem>>, vector<4x16x8xf32>,
    } else {
    }
    %3 = arith.cmpi sle, %arg3, %arg2 : i32
    %4 = arith.extui %3 : i1 to i32
    %c0_i32_1 = arith.constant 0 : i32
    %5 = arith.cmpi ne, %4, %c0_i32_1 : i32
    scf.if %5 {
      %c0 = arith.constant 0 : index
      %c0_4 = arith.constant 0 : index
      %c0_5 = arith.constant 0 : index
      %c0_6 = arith.constant 0 : index
      %9 = vector.load %arg4[%c0, %c0_4, %c0_5, %c0_6] : memref<1x4x16x8xbf16, #tpu.memory_space<vmem>>, vector<1x4x16x8xbf16>
      %10 = vector.shape_cast %9 : vector<1x4x16x8xbf16> to vector<4x16x8xbf16>
      %c0_7 = arith.constant 0 : index
      %c0_8 = arith.constant 0 : index
      %c0_9 = arith.constant 0 : index
      %c0_10 = arith.constant 0 : index
      %11 = vector.load %arg5[%c0_7, %c0_8, %c0_9, %c0_10] : memref<1x4x16x8xbf16, #tpu.memory_space<vmem>>, vector<1x4x16x8xbf16>
      %12 = vector.shape_cast %11 : vector<1x4x16x8xbf16> to vector<4x16x8xbf16>
      "tpu.trace_start"() <{level = 10 : i32, message = "hqd,hkd->hqk"}> : () -> ()
      %cst = arith.constant dense<0.000000e+00> : vector<4x16x16xf32>
      %13 = tpu.matmul %10, %12, %cst {dimension_numbers = #tpu.dot_dimension_numbers<[2], [2], [1], [1], [0, 0, 0, 1, 1, 1], [0], [0]>} : vector<4x16x8xbf16>, vector<4x16x8xbf16>, vector<4x16x16xf32> -> vector<4x16x16xf32>
      "tpu.trace_stop"() : () -> ()
      %c16_i32 = arith.constant 16 : i32
      %14 = arith.muli %arg2, %c16_i32 : i32
      %15 = tpu.iota {dimensions = array<i32: 1>} : vector<4x16x16xi32>
      %16 = vector.broadcast %14 : i32 to vector<4x16x16xi32>
      %17 = arith.addi %16, %15 : vector<4x16x16xi32>
      %c16_i32_11 = arith.constant 16 : i32
      %18 = arith.muli %arg3, %c16_i32_11 : i32
      %19 = tpu.iota {dimensions = array<i32: 2>} : vector<4x16x16xi32>
      %20 = vector.broadcast %18 : i32 to vector<4x16x16xi32>
      %21 = arith.addi %20, %19 : vector<4x16x16xi32>
      %22 = arith.cmpi sle, %21, %17 : vector<4x16x16xi32>
      %c8_i32 = arith.constant 8 : i32
      %23 = vector.broadcast %c8_i32 : i32 to vector<4x16x16xi32>
      %24 = arith.cmpi slt, %21, %23 : vector<4x16x16xi32>
      %25 = arith.andi %22, %24 : vector<4x16x16xi1>
      %cst_12 = arith.constant -1.000000e+30 : f32
      %26 = vector.broadcast %cst_12 : f32 to vector<4x16x16xf32>
      %27 = arith.select %25, %13, %26 : vector<4x16x16xi1>, vector<4x16x16xf32>
      %c0_13 = arith.constant 0 : index
      %c0_14 = arith.constant 0 : index
      %c0_15 = arith.constant 0 : index
      %28 = vector.load %arg8[%c0_13, %c0_14, %c0_15] : memref<4x16x1xf32, #tpu.memory_space<vmem>>, vector<4x16x1xf32>
      %cst_16 = arith.constant dense<0xFF800000> : vector<4x16xf32>
      %29 = vector.multi_reduction <maximumf>, %27, %cst_16 [2] : vector<4x16x16xf32> to vector<4x16xf32>
      %30 = vector.shape_cast %29 : vector<4x16xf32> to vector<4x16x1xf32>
      %31 = arith.maximumf %28, %30 : vector<4x16x1xf32>
      %32 = arith.subf %28, %31 : vector<4x16x1xf32>
      %33 = math.exp %32 : vector<4x16x1xf32>
      %34 = vector.broadcast %31 : vector<4x16x1xf32> to vector<4x16x16xf32>
      %35 = arith.subf %27, %34 : vector<4x16x16xf32>
      %36 = math.exp %35 : vector<4x16x16xf32>
      %c0_17 = arith.constant 0 : index
      %c0_18 = arith.constant 0 : index
      %c0_19 = arith.constant 0 : index
      %37 = vector.load %arg9[%c0_17, %c0_18, %c0_19] : memref<4x16x1xf32, #tpu.memory_space<vmem>>, vector<4x16x1xf32>
      %38 = arith.mulf %33, %37 : vector<4x16x1xf32>
      %cst_20 = arith.constant dense<0.000000e+00> : vector<4x16xf32>
      %39 = vector.multi_reduction <add>, %36, %cst_20 [2] : vector<4x16x16xf32> to vector<4x16xf32>
      %40 = vector.shape_cast %39 : vector<4x16xf32> to vector<4x16x1xf32>
      %41 = arith.addf %38, %40 : vector<4x16x1xf32>
      %c0_21 = arith.constant 0 : index
      %c0_22 = arith.constant 0 : index
      %c0_23 = arith.constant 0 : index
      %42 = vector.load %arg9[%c0_21, %c0_22, %c0_23] : memref<4x16x1xf32, #tpu.memory_space<vmem>>, vector<4x16x1xf32>
      tpu.vector_store %arg9[%c0_21, %c0_22, %c0_23], %41 {strides = array<i32>} : memref<4x16x1xf32, #tpu.memory_space<vmem>>, vector<4x16x1xf32>,
      %c0_24 = arith.constant 0 : index
      %c0_25 = arith.constant 0 : index
      %c0_26 = arith.constant 0 : index
      %43 = vector.load %arg10[%c0_24, %c0_25, %c0_26] : memref<4x16x8xf32, #tpu.memory_space<vmem>>, vector<4x16x8xf32>
      %44 = vector.broadcast %33 : vector<4x16x1xf32> to vector<4x16x8xf32>
      %45 = arith.mulf %44, %43 : vector<4x16x8xf32>
      %46 = arith.truncf %36 : vector<4x16x16xf32> to vector<4x16x16xbf16>
      %c0_27 = arith.constant 0 : index
      %c0_28 = arith.constant 0 : index
      %c0_29 = arith.constant 0 : index
      %c0_30 = arith.constant 0 : index
      %47 = vector.load %arg6[%c0_27, %c0_28, %c0_29, %c0_30] : memref<1x4x16x8xbf16, #tpu.memory_space<vmem>>, vector<1x4x16x8xbf16>
      %48 = vector.shape_cast %47 : vector<1x4x16x8xbf16> to vector<4x16x8xbf16>
      "tpu.trace_start"() <{level = 10 : i32, message = "hqk,hkd->hqd"}> : () -> ()
      %cst_31 = arith.constant dense<0.000000e+00> : vector<4x16x8xf32>
      %49 = tpu.matmul %46, %48, %cst_31 {dimension_numbers = #tpu.dot_dimension_numbers<[2], [1], [1], [2], [0, 0, 0, 1, 1, 2], [0], [0]>} : vector<4x16x16xbf16>, vector<4x16x8xbf16>, vector<4x16x8xf32> -> vector<4x16x8xf32>
      "tpu.trace_stop"() : () -> ()
      %50 = arith.addf %45, %49 : vector<4x16x8xf32>
      %c0_32 = arith.constant 0 : index
      %c0_33 = arith.constant 0 : index
      %c0_34 = arith.constant 0 : index
      %51 = vector.load %arg10[%c0_32, %c0_33, %c0_34] : memref<4x16x8xf32, #tpu.memory_space<vmem>>, vector<4x16x8xf32>
      tpu.vector_store %arg10[%c0_32, %c0_33, %c0_34], %50 {strides = array<i32>} : memref<4x16x8xf32, #tpu.memory_space<vmem>>, vector<4x16x8xf32>,
      %c0_35 = arith.constant 0 : index
      %c0_36 = arith.constant 0 : index
      %c0_37 = arith.constant 0 : index
      %52 = vector.load %arg8[%c0_35, %c0_36, %c0_37] : memref<4x16x1xf32, #tpu.memory_space<vmem>>, vector<4x16x1xf32>
      tpu.vector_store %arg8[%c0_35, %c0_36, %c0_37], %31 {strides = array<i32>} : memref<4x16x1xf32, #tpu.memory_space<vmem>>, vector<4x16x1xf32>,
    } else {
    }
    %c0_i32_2 = arith.constant 0 : i32
    %6 = arith.cmpi eq, %arg3, %c0_i32_2 : i32
    %7 = arith.extui %6 : i1 to i32
    %c0_i32_3 = arith.constant 0 : i32
    %8 = arith.cmpi ne, %7, %c0_i32_3 : i32
    scf.if %8 {
      %c0 = arith.constant 0 : index
      %c0_4 = arith.constant 0 : index
      %c0_5 = arith.constant 0 : index
      %9 = vector.load %arg10[%c0, %c0_4, %c0_5] : memref<4x16x8xf32, #tpu.memory_space<vmem>>, vector<4x16x8xf32>
      %c0_6 = arith.constant 0 : index
      %c0_7 = arith.constant 0 : index
      %c0_8 = arith.constant 0 : index
      %10 = vector.load %arg9[%c0_6, %c0_7, %c0_8] : memref<4x16x1xf32, #tpu.memory_space<vmem>>, vector<4x16x1xf32>
      %11 = tpu.reciprocal %10 {approx = true} : vector<4x16x1xf32> -> vector<4x16x1xf32>
      %12 = vector.broadcast %11 : vector<4x16x1xf32> to vector<4x16x8xf32>
      %13 = arith.mulf %9, %12 : vector<4x16x8xf32>
      %14 = arith.truncf %13 : vector<4x16x8xf32> to vector<4x16x8xbf16>
      %c0_9 = arith.constant 0 : index
      %c0_10 = arith.constant 0 : index
      %c0_11 = arith.constant 0 : index
      %c0_12 = arith.constant 0 : index
      %15 = vector.load %arg7[%c0_9, %c0_10, %c0_11, %c0_12] : memref<1x4x16x8xbf16, #tpu.memory_space<vmem>>, vector<1x4x16x8xbf16>
      %16 = vector.shape_cast %15 : vector<1x4x16x8xbf16> to vector<4x16x8xbf16>
      %17 = vector.shape_cast %14 : vector<4x16x8xbf16> to vector<1x4x16x8xbf16>
      tpu.vector_store %arg7[%c0_9, %c0_10, %c0_11, %c0_12], %17 {strides = array<i32>} : memref<1x4x16x8xbf16, #tpu.memory_space<vmem>>, vector<1x4x16x8xbf16>,
    } else {
    }
    return
  }
  func.func @transform_0(%arg0: i32, %arg1: i32, %arg2: i32, %arg3: i32) -> (i32, i32, i32, i32) {
    %c0_i32 = arith.constant 0 : i32
    %c0_i32_0 = arith.constant 0 : i32
    return %arg0, %arg1, %arg2, %c0_i32 : i32, i32, i32, i32
  }
  func.func @transform_1(%arg0: i32, %arg1: i32, %arg2: i32, %arg3: i32) -> (i32, i32, i32, i32) {
    %0 = arith.minsi %arg3, %arg2 : i32
    %c0_i32 = arith.constant 0 : i32
    %c0_i32_0 = arith.constant 0 : i32
    return %arg0, %arg1, %0, %c0_i32 : i32, i32, i32, i32
  }
  func.func @transform_2(%arg0: i32, %arg1: i32, %arg2: i32, %arg3: i32) -> (i32, i32, i32, i32) {
    %0 = arith.minsi %arg3, %arg2 : i32
    %c0_i32 = arith.constant 0 : i32
    %c0_i32_0 = arith.constant 0 : i32
    return %arg0, %arg1, %0, %c0_i32 : i32, i32, i32, i32
  }
  func.func @transform_3(%arg0: i32, %arg1: i32, %arg2: i32, %arg3: i32) -> (i32, i32, i32, i32) {
    %c0_i32 = arith.constant 0 : i32
    %c0_i32_0 = arith.constant 0 : i32
    return %arg0, %arg1, %arg2, %c0_i32 : i32, i32, i32, i32
  }
}

module attributes {stable_mosaic.version = 11 : i64} {
  func.func @_matmul_kernel(%arg0: i32, %arg1: i32, %arg2: i32, %arg3: memref<32x128xbf16, #tpu.memory_space<vmem>>, %arg4: memref<128x128xbf16, #tpu.memory_space<vmem>>, %arg5: memref<1x128xf32, #tpu.memory_space<vmem>>, %arg6: memref<32x128xf32, #tpu.memory_space<vmem>>, %arg7: memref<32x128xf32, #tpu.memory_space<vmem>>, %arg8: memref<32x128xf32, #tpu.memory_space<vmem>>) attributes {dimension_semantics = [#tpu.dimension_semantics<parallel>, #tpu.dimension_semantics<parallel>, #tpu.dimension_semantics<arbitrary>], iteration_bounds = array<i64: 1, 1, 1>, scalar_prefetch = 0 : i64, scratch_operands = 1 : i64, tpu.core_type = #tpu.core_type<tc>, window_params = [{transform_indices = @transform_0, window_bounds = array<i64: 32, 128>}, {transform_indices = @transform_1, window_bounds = array<i64: 128, 128>}, {transform_indices = @transform_2, window_bounds = array<i64: 1, 128>}, {transform_indices = @transform_3, window_bounds = array<i64: 32, 128>}, {transform_indices = @transform_4, window_bounds = array<i64: 32, 128>}]} {
    %c0_i32 = arith.constant 0 : i32
    %0 = arith.cmpi eq, %arg2, %c0_i32 : i32
    %1 = arith.extui %0 : i1 to i32
    %c0_i32_0 = arith.constant 0 : i32
    %2 = arith.cmpi ne, %1, %c0_i32_0 : i32
    scf.if %2 {
      %cst_10 = arith.constant 0.000000e+00 : f32
      %12 = vector.broadcast %cst_10 : f32 to vector<32x128xf32>
      %c0_11 = arith.constant 0 : index
      %c0_12 = arith.constant 0 : index
      %13 = vector.load %arg8[%c0_11, %c0_12] : memref<32x128xf32, #tpu.memory_space<vmem>>, vector<32x128xf32>
      tpu.vector_store %arg8[%c0_11, %c0_12], %12 {strides = array<i32>} : memref<32x128xf32, #tpu.memory_space<vmem>>, vector<32x128xf32>,
    } else {
    }
    %c0 = arith.constant 0 : index
    %c0_1 = arith.constant 0 : index
    %3 = vector.load %arg8[%c0, %c0_1] : memref<32x128xf32, #tpu.memory_space<vmem>>, vector<32x128xf32>
    %c0_2 = arith.constant 0 : index
    %c0_3 = arith.constant 0 : index
    %4 = vector.load %arg3[%c0_2, %c0_3] : memref<32x128xbf16, #tpu.memory_space<vmem>>, vector<32x128xbf16>
    %c0_4 = arith.constant 0 : index
    %c0_5 = arith.constant 0 : index
    %5 = vector.load %arg4[%c0_4, %c0_5] : memref<128x128xbf16, #tpu.memory_space<vmem>>, vector<128x128xbf16>
    %cst = arith.constant dense<0.000000e+00> : vector<32x128xf32>
    %6 = tpu.matmul %4, %5, %cst {dimension_numbers = #tpu.dot_dimension_numbers<[1], [0], [0], [1], [0, 0, 1, 1], [], []>} : vector<32x128xbf16>, vector<128x128xbf16>, vector<32x128xf32> -> vector<32x128xf32>
    %7 = arith.addf %3, %6 : vector<32x128xf32>
    %c0_6 = arith.constant 0 : index
    %c0_7 = arith.constant 0 : index
    %8 = vector.load %arg8[%c0_6, %c0_7] : memref<32x128xf32, #tpu.memory_space<vmem>>, vector<32x128xf32>
    tpu.vector_store %arg8[%c0_6, %c0_7], %7 {strides = array<i32>} : memref<32x128xf32, #tpu.memory_space<vmem>>, vector<32x128xf32>,
    %c0_i32_8 = arith.constant 0 : i32
    %9 = arith.cmpi eq, %arg2, %c0_i32_8 : i32
    %10 = arith.extui %9 : i1 to i32
    %c0_i32_9 = arith.constant 0 : i32
    %11 = arith.cmpi ne, %10, %c0_i32_9 : i32
    scf.if %11 {
      %c0_10 = arith.constant 0 : index
      %c0_11 = arith.constant 0 : index
      %12 = vector.load %arg8[%c0_10, %c0_11] : memref<32x128xf32, #tpu.memory_space<vmem>>, vector<32x128xf32>
      %c0_12 = arith.constant 0 : index
      %c0_13 = arith.constant 0 : index
      %13 = vector.load %arg5[%c0_12, %c0_13] : memref<1x128xf32, #tpu.memory_space<vmem>>, vector<1x128xf32>
      %14 = vector.broadcast %13 : vector<1x128xf32> to vector<32x128xf32>
      %15 = arith.addf %12, %14 : vector<32x128xf32>
      %c0_14 = arith.constant 0 : index
      %c0_15 = arith.constant 0 : index
      %16 = vector.load %arg6[%c0_14, %c0_15] : memref<32x128xf32, #tpu.memory_space<vmem>>, vector<32x128xf32>
      %17 = arith.addf %15, %16 : vector<32x128xf32>
      %c0_16 = arith.constant 0 : index
      %c0_17 = arith.constant 0 : index
      %18 = vector.load %arg7[%c0_16, %c0_17] : memref<32x128xf32, #tpu.memory_space<vmem>>, vector<32x128xf32>
      tpu.vector_store %arg7[%c0_16, %c0_17], %17 {strides = array<i32>} : memref<32x128xf32, #tpu.memory_space<vmem>>, vector<32x128xf32>,
    } else {
    }
    return
  }
  func.func @transform_0(%arg0: i32, %arg1: i32, %arg2: i32) -> (i32, i32) {
    %c0_i32 = arith.constant 0 : i32
    return %arg0, %arg2 : i32, i32
  }
  func.func @transform_1(%arg0: i32, %arg1: i32, %arg2: i32) -> (i32, i32) {
    %c0_i32 = arith.constant 0 : i32
    return %arg2, %arg1 : i32, i32
  }
  func.func @transform_2(%arg0: i32, %arg1: i32, %arg2: i32) -> (i32, i32) {
    %c0_i32 = arith.constant 0 : i32
    %c0_i32_0 = arith.constant 0 : i32
    return %c0_i32, %arg1 : i32, i32
  }
  func.func @transform_3(%arg0: i32, %arg1: i32, %arg2: i32) -> (i32, i32) {
    %c0_i32 = arith.constant 0 : i32
    return %arg0, %arg1 : i32, i32
  }
  func.func @transform_4(%arg0: i32, %arg1: i32, %arg2: i32) -> (i32, i32) {
    %c0_i32 = arith.constant 0 : i32
    return %arg0, %arg1 : i32, i32
  }
}

module attributes {stable_mosaic.version = 11 : i64} {
  func.func @_ln_matmul_kernel(%arg0: i32, %arg1: i32, %arg2: memref<32x128xf32, #tpu.memory_space<vmem>>, %arg3: memref<1x128xf32, #tpu.memory_space<vmem>>, %arg4: memref<1x128xf32, #tpu.memory_space<vmem>>, %arg5: memref<128x128xbf16, #tpu.memory_space<vmem>>, %arg6: memref<1x128xf32, #tpu.memory_space<vmem>>, %arg7: memref<32x128xbf16, #tpu.memory_space<vmem>>, %arg8: memref<32x128xbf16, #tpu.memory_space<vmem>>) attributes {dimension_semantics = [#tpu.dimension_semantics<parallel>, #tpu.dimension_semantics<arbitrary>], iteration_bounds = array<i64: 1, 1>, scalar_prefetch = 0 : i64, scratch_operands = 1 : i64, tpu.core_type = #tpu.core_type<tc>, window_params = [{transform_indices = @transform_0, window_bounds = array<i64: 32, 128>}, {pipeline_mode = #tpu.pipeline_mode<synchronous>, transform_indices = @transform_1, window_bounds = array<i64: 1, 128>}, {pipeline_mode = #tpu.pipeline_mode<synchronous>, transform_indices = @transform_2, window_bounds = array<i64: 1, 128>}, {transform_indices = @transform_3, window_bounds = array<i64: 128, 128>}, {transform_indices = @transform_4, window_bounds = array<i64: 1, 128>}, {transform_indices = @transform_5, window_bounds = array<i64: 32, 128>}]} {
    %c0_i32 = arith.constant 0 : i32
    %0 = arith.cmpi eq, %arg1, %c0_i32 : i32
    %1 = arith.extui %0 : i1 to i32
    %c0_i32_0 = arith.constant 0 : i32
    %2 = arith.cmpi ne, %1, %c0_i32_0 : i32
    scf.if %2 {
      %c0_23 = arith.constant 0 : index
      %c0_24 = arith.constant 0 : index
      %51 = vector.load %arg2[%c0_23, %c0_24] : memref<32x128xf32, #tpu.memory_space<vmem>>, vector<32x128xf32>
      %cst_25 = arith.constant dense<0.000000e+00> : vector<32xf32>
      %52 = vector.multi_reduction <add>, %51, %cst_25 [1] : vector<32x128xf32> to vector<32xf32>
      %53 = vector.shape_cast %52 : vector<32xf32> to vector<32x1xf32>
      %cst_26 = arith.constant 3.125000e-02 : f32
      %54 = vector.broadcast %cst_26 : f32 to vector<32x1xf32>
      %55 = arith.mulf %53, %54 : vector<32x1xf32>
      %56 = vector.broadcast %55 : vector<32x1xf32> to vector<32x128xf32>
      %57 = arith.subf %51, %56 : vector<32x128xf32>
      %58 = tpu.iota {dimensions = array<i32: 1>} : vector<32x128xi32>
      %c32_i32 = arith.constant 32 : i32
      %59 = vector.broadcast %c32_i32 : i32 to vector<32x128xi32>
      %60 = arith.cmpi slt, %58, %59 : vector<32x128xi32>
      %cst_27 = arith.constant 0.000000e+00 : f32
      %61 = vector.broadcast %cst_27 : f32 to vector<32x128xf32>
      %62 = arith.select %60, %57, %61 : vector<32x128xi1>, vector<32x128xf32>
      %63 = arith.mulf %62, %62 : vector<32x128xf32>
      %cst_28 = arith.constant dense<0.000000e+00> : vector<32xf32>
      %64 = vector.multi_reduction <add>, %63, %cst_28 [1] : vector<32x128xf32> to vector<32xf32>
      %65 = vector.shape_cast %64 : vector<32xf32> to vector<32x1xf32>
      %cst_29 = arith.constant 3.125000e-02 : f32
      %66 = vector.broadcast %cst_29 : f32 to vector<32x1xf32>
      %67 = arith.mulf %65, %66 : vector<32x1xf32>
      %cst_30 = arith.constant 9.99999974E-6 : f32
      %68 = vector.broadcast %cst_30 : f32 to vector<32x1xf32>
      %69 = arith.addf %67, %68 : vector<32x1xf32>
      %70 = math.rsqrt %69 : vector<32x1xf32>
      %71 = vector.broadcast %70 : vector<32x1xf32> to vector<32x128xf32>
      %72 = arith.mulf %62, %71 : vector<32x128xf32>
      %c0_31 = arith.constant 0 : index
      %c0_32 = arith.constant 0 : index
      %73 = vector.load %arg3[%c0_31, %c0_32] : memref<1x128xf32, #tpu.memory_space<vmem>>, vector<1x128xf32>
      %74 = vector.broadcast %73 : vector<1x128xf32> to vector<32x128xf32>
      %75 = arith.mulf %72, %74 : vector<32x128xf32>
      %c0_33 = arith.constant 0 : index
      %c0_34 = arith.constant 0 : index
      %76 = vector.load %arg4[%c0_33, %c0_34] : memref<1x128xf32, #tpu.memory_space<vmem>>, vector<1x128xf32>
      %77 = vector.broadcast %76 : vector<1x128xf32> to vector<32x128xf32>
      %78 = arith.addf %75, %77 : vector<32x128xf32>
      %79 = arith.truncf %78 : vector<32x128xf32> to vector<32x128xbf16>
      %c0_35 = arith.constant 0 : index
      %c0_36 = arith.constant 0 : index
      %80 = vector.load %arg8[%c0_35, %c0_36] : memref<32x128xbf16, #tpu.memory_space<vmem>>, vector<32x128xbf16>
      tpu.vector_store %arg8[%c0_35, %c0_36], %79 {strides = array<i32>} : memref<32x128xbf16, #tpu.memory_space<vmem>>, vector<32x128xbf16>,
    } else {
    }
    %c0 = arith.constant 0 : index
    %c0_1 = arith.constant 0 : index
    %3 = vector.load %arg8[%c0, %c0_1] : memref<32x128xbf16, #tpu.memory_space<vmem>>, vector<32x128xbf16>
    %c0_2 = arith.constant 0 : index
    %c0_3 = arith.constant 0 : index
    %4 = vector.load %arg5[%c0_2, %c0_3] : memref<128x128xbf16, #tpu.memory_space<vmem>>, vector<128x128xbf16>
    %cst = arith.constant dense<0.000000e+00> : vector<32x128xf32>
    %5 = tpu.matmul %3, %4, %cst {dimension_numbers = #tpu.dot_dimension_numbers<[1], [0], [0], [1], [0, 0, 1, 1], [], []>} : vector<32x128xbf16>, vector<128x128xbf16>, vector<32x128xf32> -> vector<32x128xf32>
    %c0_4 = arith.constant 0 : index
    %c0_5 = arith.constant 0 : index
    %6 = vector.load %arg6[%c0_4, %c0_5] : memref<1x128xf32, #tpu.memory_space<vmem>>, vector<1x128xf32>
    %7 = vector.broadcast %6 : vector<1x128xf32> to vector<32x128xf32>
    %8 = arith.addf %5, %7 : vector<32x128xf32>
    %cst_6 = arith.constant 0.707106769 : f32
    %9 = vector.broadcast %cst_6 : f32 to vector<32x128xf32>
    %10 = arith.mulf %8, %9 : vector<32x128xf32>
    %11 = math.absf %10 : vector<32x128xf32>
    %cst_7 = arith.constant 0.327591091 : f32
    %12 = vector.broadcast %cst_7 : f32 to vector<32x128xf32>
    %13 = arith.mulf %12, %11 : vector<32x128xf32>
    %cst_8 = arith.constant 1.000000e+00 : f32
    %14 = vector.broadcast %cst_8 : f32 to vector<32x128xf32>
    %15 = arith.addf %14, %13 : vector<32x128xf32>
    %cst_9 = arith.constant 1.000000e+00 : f32
    %16 = vector.broadcast %cst_9 : f32 to vector<32x128xf32>
    %17 = arith.divf %16, %15 : vector<32x128xf32>
    %cst_10 = arith.constant 1.06140542 : f32
    %18 = vector.broadcast %cst_10 : f32 to vector<32x128xf32>
    %19 = arith.mulf %17, %18 : vector<32x128xf32>
    %cst_11 = arith.constant -1.45315206 : f32
    %20 = vector.broadcast %cst_11 : f32 to vector<32x128xf32>
    %21 = arith.addf %20, %19 : vector<32x128xf32>
    %22 = arith.mulf %17, %21 : vector<32x128xf32>
    %cst_12 = arith.constant 1.42141378 : f32
    %23 = vector.broadcast %cst_12 : f32 to vector<32x128xf32>
    %24 = arith.addf %23, %22 : vector<32x128xf32>
    %25 = arith.mulf %17, %24 : vector<32x128xf32>
    %cst_13 = arith.constant -0.284496725 : f32
    %26 = vector.broadcast %cst_13 : f32 to vector<32x128xf32>
    %27 = arith.addf %26, %25 : vector<32x128xf32>
    %28 = arith.mulf %17, %27 : vector<32x128xf32>
    %cst_14 = arith.constant 0.254829586 : f32
    %29 = vector.broadcast %cst_14 : f32 to vector<32x128xf32>
    %30 = arith.addf %29, %28 : vector<32x128xf32>
    %31 = arith.mulf %17, %30 : vector<32x128xf32>
    %cst_15 = arith.constant 0.000000e+00 : f32
    %32 = vector.broadcast %cst_15 : f32 to vector<32x128xf32>
    %33 = arith.subf %32, %11 : vector<32x128xf32>
    %34 = arith.mulf %33, %11 : vector<32x128xf32>
    %35 = math.exp %34 : vector<32x128xf32>
    %36 = arith.mulf %31, %35 : vector<32x128xf32>
    %cst_16 = arith.constant 1.000000e+00 : f32
    %37 = vector.broadcast %cst_16 : f32 to vector<32x128xf32>
    %38 = arith.subf %37, %36 : vector<32x128xf32>
    %cst_17 = arith.constant 0.000000e+00 : f32
    %39 = vector.broadcast %cst_17 : f32 to vector<32x128xf32>
    %40 = arith.cmpf oge, %10, %39 : vector<32x128xf32>
    %cst_18 = arith.constant 0.000000e+00 : f32
    %41 = vector.broadcast %cst_18 : f32 to vector<32x128xf32>
    %42 = arith.subf %41, %38 : vector<32x128xf32>
    %43 = arith.select %40, %38, %42 : vector<32x128xi1>, vector<32x128xf32>
    %cst_19 = arith.constant 5.000000e-01 : f32
    %44 = vector.broadcast %cst_19 : f32 to vector<32x128xf32>
    %45 = arith.mulf %44, %8 : vector<32x128xf32>
    %cst_20 = arith.constant 1.000000e+00 : f32
    %46 = vector.broadcast %cst_20 : f32 to vector<32x128xf32>
    %47 = arith.addf %46, %43 : vector<32x128xf32>
    %48 = arith.mulf %45, %47 : vector<32x128xf32>
    %49 = arith.truncf %48 : vector<32x128xf32> to vector<32x128xbf16>
    %c0_21 = arith.constant 0 : index
    %c0_22 = arith.constant 0 : index
    %50 = vector.load %arg7[%c0_21, %c0_22] : memref<32x128xbf16, #tpu.memory_space<vmem>>, vector<32x128xbf16>
    tpu.vector_store %arg7[%c0_21, %c0_22], %49 {strides = array<i32>} : memref<32x128xbf16, #tpu.memory_space<vmem>>, vector<32x128xbf16>,
    return
  }
  func.func @transform_0(%arg0: i32, %arg1: i32) -> (i32, i32) {
    %c0_i32 = arith.constant 0 : i32
    %c0_i32_0 = arith.constant 0 : i32
    return %arg0, %c0_i32 : i32, i32
  }
  func.func @transform_1(%arg0: i32, %arg1: i32) -> (i32, i32) {
    %c0_i32 = arith.constant 0 : i32
    %c0_i32_0 = arith.constant 0 : i32
    %c0_i32_1 = arith.constant 0 : i32
    return %c0_i32, %c0_i32_0 : i32, i32
  }
  func.func @transform_2(%arg0: i32, %arg1: i32) -> (i32, i32) {
    %c0_i32 = arith.constant 0 : i32
    %c0_i32_0 = arith.constant 0 : i32
    %c0_i32_1 = arith.constant 0 : i32
    return %c0_i32, %c0_i32_0 : i32, i32
  }
  func.func @transform_3(%arg0: i32, %arg1: i32) -> (i32, i32) {
    %c0_i32 = arith.constant 0 : i32
    %c0_i32_0 = arith.constant 0 : i32
    return %c0_i32, %arg1 : i32, i32
  }
  func.func @transform_4(%arg0: i32, %arg1: i32) -> (i32, i32) {
    %c0_i32 = arith.constant 0 : i32
    %c0_i32_0 = arith.constant 0 : i32
    return %c0_i32, %arg1 : i32, i32
  }
  func.func @transform_5(%arg0: i32, %arg1: i32) -> (i32, i32) {
    %c0_i32 = arith.constant 0 : i32
    return %arg0, %arg1 : i32, i32
  }
}

module attributes {stable_mosaic.version = 11 : i64} {
  func.func @_ln_matmul_kernel(%arg0: i32, %arg1: i32, %arg2: memref<32x128xf32, #tpu.memory_space<vmem>>, %arg3: memref<1x128xf32, #tpu.memory_space<vmem>>, %arg4: memref<1x128xf32, #tpu.memory_space<vmem>>, %arg5: memref<128x384xbf16, #tpu.memory_space<vmem>>, %arg6: memref<1x384xf32, #tpu.memory_space<vmem>>, %arg7: memref<32x384xbf16, #tpu.memory_space<vmem>>, %arg8: memref<32x128xbf16, #tpu.memory_space<vmem>>) attributes {dimension_semantics = [#tpu.dimension_semantics<parallel>, #tpu.dimension_semantics<arbitrary>], iteration_bounds = array<i64: 1, 1>, scalar_prefetch = 0 : i64, scratch_operands = 1 : i64, tpu.core_type = #tpu.core_type<tc>, window_params = [{transform_indices = @transform_0, window_bounds = array<i64: 32, 128>}, {pipeline_mode = #tpu.pipeline_mode<synchronous>, transform_indices = @transform_1, window_bounds = array<i64: 1, 128>}, {pipeline_mode = #tpu.pipeline_mode<synchronous>, transform_indices = @transform_2, window_bounds = array<i64: 1, 128>}, {transform_indices = @transform_3, window_bounds = array<i64: 128, 384>}, {transform_indices = @transform_4, window_bounds = array<i64: 1, 384>}, {transform_indices = @transform_5, window_bounds = array<i64: 32, 384>}]} {
    %c0_i32 = arith.constant 0 : i32
    %0 = arith.cmpi eq, %arg1, %c0_i32 : i32
    %1 = arith.extui %0 : i1 to i32
    %c0_i32_0 = arith.constant 0 : i32
    %2 = arith.cmpi ne, %1, %c0_i32_0 : i32
    scf.if %2 {
      %c0_8 = arith.constant 0 : index
      %c0_9 = arith.constant 0 : index
      %11 = vector.load %arg2[%c0_8, %c0_9] : memref<32x128xf32, #tpu.memory_space<vmem>>, vector<32x128xf32>
      %cst_10 = arith.constant dense<0.000000e+00> : vector<32xf32>
      %12 = vector.multi_reduction <add>, %11, %cst_10 [1] : vector<32x128xf32> to vector<32xf32>
      %13 = vector.shape_cast %12 : vector<32xf32> to vector<32x1xf32>
      %cst_11 = arith.constant 3.125000e-02 : f32
      %14 = vector.broadcast %cst_11 : f32 to vector<32x1xf32>
      %15 = arith.mulf %13, %14 : vector<32x1xf32>
      %16 = vector.broadcast %15 : vector<32x1xf32> to vector<32x128xf32>
      %17 = arith.subf %11, %16 : vector<32x128xf32>
      %18 = tpu.iota {dimensions = array<i32: 1>} : vector<32x128xi32>
      %c32_i32 = arith.constant 32 : i32
      %19 = vector.broadcast %c32_i32 : i32 to vector<32x128xi32>
      %20 = arith.cmpi slt, %18, %19 : vector<32x128xi32>
      %cst_12 = arith.constant 0.000000e+00 : f32
      %21 = vector.broadcast %cst_12 : f32 to vector<32x128xf32>
      %22 = arith.select %20, %17, %21 : vector<32x128xi1>, vector<32x128xf32>
      %23 = arith.mulf %22, %22 : vector<32x128xf32>
      %cst_13 = arith.constant dense<0.000000e+00> : vector<32xf32>
      %24 = vector.multi_reduction <add>, %23, %cst_13 [1] : vector<32x128xf32> to vector<32xf32>
      %25 = vector.shape_cast %24 : vector<32xf32> to vector<32x1xf32>
      %cst_14 = arith.constant 3.125000e-02 : f32
      %26 = vector.broadcast %cst_14 : f32 to vector<32x1xf32>
      %27 = arith.mulf %25, %26 : vector<32x1xf32>
      %cst_15 = arith.constant 9.99999974E-6 : f32
      %28 = vector.broadcast %cst_15 : f32 to vector<32x1xf32>
      %29 = arith.addf %27, %28 : vector<32x1xf32>
      %30 = math.rsqrt %29 : vector<32x1xf32>
      %31 = vector.broadcast %30 : vector<32x1xf32> to vector<32x128xf32>
      %32 = arith.mulf %22, %31 : vector<32x128xf32>
      %c0_16 = arith.constant 0 : index
      %c0_17 = arith.constant 0 : index
      %33 = vector.load %arg3[%c0_16, %c0_17] : memref<1x128xf32, #tpu.memory_space<vmem>>, vector<1x128xf32>
      %34 = vector.broadcast %33 : vector<1x128xf32> to vector<32x128xf32>
      %35 = arith.mulf %32, %34 : vector<32x128xf32>
      %c0_18 = arith.constant 0 : index
      %c0_19 = arith.constant 0 : index
      %36 = vector.load %arg4[%c0_18, %c0_19] : memref<1x128xf32, #tpu.memory_space<vmem>>, vector<1x128xf32>
      %37 = vector.broadcast %36 : vector<1x128xf32> to vector<32x128xf32>
      %38 = arith.addf %35, %37 : vector<32x128xf32>
      %39 = arith.truncf %38 : vector<32x128xf32> to vector<32x128xbf16>
      %c0_20 = arith.constant 0 : index
      %c0_21 = arith.constant 0 : index
      %40 = vector.load %arg8[%c0_20, %c0_21] : memref<32x128xbf16, #tpu.memory_space<vmem>>, vector<32x128xbf16>
      tpu.vector_store %arg8[%c0_20, %c0_21], %39 {strides = array<i32>} : memref<32x128xbf16, #tpu.memory_space<vmem>>, vector<32x128xbf16>,
    } else {
    }
    %c0 = arith.constant 0 : index
    %c0_1 = arith.constant 0 : index
    %3 = vector.load %arg8[%c0, %c0_1] : memref<32x128xbf16, #tpu.memory_space<vmem>>, vector<32x128xbf16>
    %c0_2 = arith.constant 0 : index
    %c0_3 = arith.constant 0 : index
    %4 = vector.load %arg5[%c0_2, %c0_3] : memref<128x384xbf16, #tpu.memory_space<vmem>>, vector<128x384xbf16>
    %cst = arith.constant dense<0.000000e+00> : vector<32x384xf32>
    %5 = tpu.matmul %3, %4, %cst {dimension_numbers = #tpu.dot_dimension_numbers<[1], [0], [0], [1], [0, 0, 1, 1], [], []>} : vector<32x128xbf16>, vector<128x384xbf16>, vector<32x384xf32> -> vector<32x384xf32>
    %c0_4 = arith.constant 0 : index
    %c0_5 = arith.constant 0 : index
    %6 = vector.load %arg6[%c0_4, %c0_5] : memref<1x384xf32, #tpu.memory_space<vmem>>, vector<1x384xf32>
    %7 = vector.broadcast %6 : vector<1x384xf32> to vector<32x384xf32>
    %8 = arith.addf %5, %7 : vector<32x384xf32>
    %9 = arith.truncf %8 : vector<32x384xf32> to vector<32x384xbf16>
    %c0_6 = arith.constant 0 : index
    %c0_7 = arith.constant 0 : index
    %10 = vector.load %arg7[%c0_6, %c0_7] : memref<32x384xbf16, #tpu.memory_space<vmem>>, vector<32x384xbf16>
    tpu.vector_store %arg7[%c0_6, %c0_7], %9 {strides = array<i32>} : memref<32x384xbf16, #tpu.memory_space<vmem>>, vector<32x384xbf16>,
    return
  }
  func.func @transform_0(%arg0: i32, %arg1: i32) -> (i32, i32) {
    %c0_i32 = arith.constant 0 : i32
    %c0_i32_0 = arith.constant 0 : i32
    return %arg0, %c0_i32 : i32, i32
  }
  func.func @transform_1(%arg0: i32, %arg1: i32) -> (i32, i32) {
    %c0_i32 = arith.constant 0 : i32
    %c0_i32_0 = arith.constant 0 : i32
    %c0_i32_1 = arith.constant 0 : i32
    return %c0_i32, %c0_i32_0 : i32, i32
  }
  func.func @transform_2(%arg0: i32, %arg1: i32) -> (i32, i32) {
    %c0_i32 = arith.constant 0 : i32
    %c0_i32_0 = arith.constant 0 : i32
    %c0_i32_1 = arith.constant 0 : i32
    return %c0_i32, %c0_i32_0 : i32, i32
  }
  func.func @transform_3(%arg0: i32, %arg1: i32) -> (i32, i32) {
    %c0_i32 = arith.constant 0 : i32
    %c0_i32_0 = arith.constant 0 : i32
    return %c0_i32, %arg1 : i32, i32
  }
  func.func @transform_4(%arg0: i32, %arg1: i32) -> (i32, i32) {
    %c0_i32 = arith.constant 0 : i32
    %c0_i32_0 = arith.constant 0 : i32
    return %c0_i32, %arg1 : i32, i32
  }
  func.func @transform_5(%arg0: i32, %arg1: i32) -> (i32, i32) {
    %c0_i32 = arith.constant 0 : i32
    return %arg0, %arg1 : i32, i32
  }
}

module attributes {stable_mosaic.version = 11 : i64} {
  func.func @_ln_matmul_kernel(%arg0: i32, %arg1: i32, %arg2: memref<32x128xf32, #tpu.memory_space<vmem>>, %arg3: memref<1x128xf32, #tpu.memory_space<vmem>>, %arg4: memref<1x128xf32, #tpu.memory_space<vmem>>, %arg5: memref<128x128xbf16, #tpu.memory_space<vmem>>, %arg6: memref<32x128xf32, #tpu.memory_space<vmem>>, %arg7: memref<32x128xbf16, #tpu.memory_space<vmem>>) attributes {dimension_semantics = [#tpu.dimension_semantics<parallel>, #tpu.dimension_semantics<arbitrary>], iteration_bounds = array<i64: 1, 1>, scalar_prefetch = 0 : i64, scratch_operands = 1 : i64, tpu.core_type = #tpu.core_type<tc>, window_params = [{transform_indices = @transform_0, window_bounds = array<i64: 32, 128>}, {pipeline_mode = #tpu.pipeline_mode<synchronous>, transform_indices = @transform_1, window_bounds = array<i64: 1, 128>}, {pipeline_mode = #tpu.pipeline_mode<synchronous>, transform_indices = @transform_2, window_bounds = array<i64: 1, 128>}, {transform_indices = @transform_3, window_bounds = array<i64: 128, 128>}, {transform_indices = @transform_4, window_bounds = array<i64: 32, 128>}]} {
    %c0_i32 = arith.constant 0 : i32
    %0 = arith.cmpi eq, %arg1, %c0_i32 : i32
    %1 = arith.extui %0 : i1 to i32
    %c0_i32_0 = arith.constant 0 : i32
    %2 = arith.cmpi ne, %1, %c0_i32_0 : i32
    scf.if %2 {
      %c0_6 = arith.constant 0 : index
      %c0_7 = arith.constant 0 : index
      %7 = vector.load %arg2[%c0_6, %c0_7] : memref<32x128xf32, #tpu.memory_space<vmem>>, vector<32x128xf32>
      %cst_8 = arith.constant dense<0.000000e+00> : vector<32xf32>
      %8 = vector.multi_reduction <add>, %7, %cst_8 [1] : vector<32x128xf32> to vector<32xf32>
      %9 = vector.shape_cast %8 : vector<32xf32> to vector<32x1xf32>
      %cst_9 = arith.constant 3.125000e-02 : f32
      %10 = vector.broadcast %cst_9 : f32 to vector<32x1xf32>
      %11 = arith.mulf %9, %10 : vector<32x1xf32>
      %12 = vector.broadcast %11 : vector<32x1xf32> to vector<32x128xf32>
      %13 = arith.subf %7, %12 : vector<32x128xf32>
      %14 = tpu.iota {dimensions = array<i32: 1>} : vector<32x128xi32>
      %c32_i32 = arith.constant 32 : i32
      %15 = vector.broadcast %c32_i32 : i32 to vector<32x128xi32>
      %16 = arith.cmpi slt, %14, %15 : vector<32x128xi32>
      %cst_10 = arith.constant 0.000000e+00 : f32
      %17 = vector.broadcast %cst_10 : f32 to vector<32x128xf32>
      %18 = arith.select %16, %13, %17 : vector<32x128xi1>, vector<32x128xf32>
      %19 = arith.mulf %18, %18 : vector<32x128xf32>
      %cst_11 = arith.constant dense<0.000000e+00> : vector<32xf32>
      %20 = vector.multi_reduction <add>, %19, %cst_11 [1] : vector<32x128xf32> to vector<32xf32>
      %21 = vector.shape_cast %20 : vector<32xf32> to vector<32x1xf32>
      %cst_12 = arith.constant 3.125000e-02 : f32
      %22 = vector.broadcast %cst_12 : f32 to vector<32x1xf32>
      %23 = arith.mulf %21, %22 : vector<32x1xf32>
      %cst_13 = arith.constant 9.99999974E-6 : f32
      %24 = vector.broadcast %cst_13 : f32 to vector<32x1xf32>
      %25 = arith.addf %23, %24 : vector<32x1xf32>
      %26 = math.rsqrt %25 : vector<32x1xf32>
      %27 = vector.broadcast %26 : vector<32x1xf32> to vector<32x128xf32>
      %28 = arith.mulf %18, %27 : vector<32x128xf32>
      %c0_14 = arith.constant 0 : index
      %c0_15 = arith.constant 0 : index
      %29 = vector.load %arg3[%c0_14, %c0_15] : memref<1x128xf32, #tpu.memory_space<vmem>>, vector<1x128xf32>
      %30 = vector.broadcast %29 : vector<1x128xf32> to vector<32x128xf32>
      %31 = arith.mulf %28, %30 : vector<32x128xf32>
      %c0_16 = arith.constant 0 : index
      %c0_17 = arith.constant 0 : index
      %32 = vector.load %arg4[%c0_16, %c0_17] : memref<1x128xf32, #tpu.memory_space<vmem>>, vector<1x128xf32>
      %33 = vector.broadcast %32 : vector<1x128xf32> to vector<32x128xf32>
      %34 = arith.addf %31, %33 : vector<32x128xf32>
      %35 = arith.truncf %34 : vector<32x128xf32> to vector<32x128xbf16>
      %c0_18 = arith.constant 0 : index
      %c0_19 = arith.constant 0 : index
      %36 = vector.load %arg7[%c0_18, %c0_19] : memref<32x128xbf16, #tpu.memory_space<vmem>>, vector<32x128xbf16>
      tpu.vector_store %arg7[%c0_18, %c0_19], %35 {strides = array<i32>} : memref<32x128xbf16, #tpu.memory_space<vmem>>, vector<32x128xbf16>,
    } else {
    }
    %c0 = arith.constant 0 : index
    %c0_1 = arith.constant 0 : index
    %3 = vector.load %arg7[%c0, %c0_1] : memref<32x128xbf16, #tpu.memory_space<vmem>>, vector<32x128xbf16>
    %c0_2 = arith.constant 0 : index
    %c0_3 = arith.constant 0 : index
    %4 = vector.load %arg5[%c0_2, %c0_3] : memref<128x128xbf16, #tpu.memory_space<vmem>>, vector<128x128xbf16>
    %cst = arith.constant dense<0.000000e+00> : vector<32x128xf32>
    %5 = tpu.matmul %3, %4, %cst {dimension_numbers = #tpu.dot_dimension_numbers<[1], [0], [0], [1], [0, 0, 1, 1], [], []>} : vector<32x128xbf16>, vector<128x128xbf16>, vector<32x128xf32> -> vector<32x128xf32>
    %c0_4 = arith.constant 0 : index
    %c0_5 = arith.constant 0 : index
    %6 = vector.load %arg6[%c0_4, %c0_5] : memref<32x128xf32, #tpu.memory_space<vmem>>, vector<32x128xf32>
    tpu.vector_store %arg6[%c0_4, %c0_5], %5 {strides = array<i32>} : memref<32x128xf32, #tpu.memory_space<vmem>>, vector<32x128xf32>,
    return
  }
  func.func @transform_0(%arg0: i32, %arg1: i32) -> (i32, i32) {
    %c0_i32 = arith.constant 0 : i32
    %c0_i32_0 = arith.constant 0 : i32
    return %arg0, %c0_i32 : i32, i32
  }
  func.func @transform_1(%arg0: i32, %arg1: i32) -> (i32, i32) {
    %c0_i32 = arith.constant 0 : i32
    %c0_i32_0 = arith.constant 0 : i32
    %c0_i32_1 = arith.constant 0 : i32
    return %c0_i32, %c0_i32_0 : i32, i32
  }
  func.func @transform_2(%arg0: i32, %arg1: i32) -> (i32, i32) {
    %c0_i32 = arith.constant 0 : i32
    %c0_i32_0 = arith.constant 0 : i32
    %c0_i32_1 = arith.constant 0 : i32
    return %c0_i32, %c0_i32_0 : i32, i32
  }
  func.func @transform_3(%arg0: i32, %arg1: i32) -> (i32, i32) {
    %c0_i32 = arith.constant 0 : i32
    %c0_i32_0 = arith.constant 0 : i32
    return %c0_i32, %arg1 : i32, i32
  }
  func.func @transform_4(%arg0: i32, %arg1: i32) -> (i32, i32) {
    %c0_i32 = arith.constant 0 : i32
    return %arg0, %arg1 : i32, i32
  }
}

</mosaic_0001>

<bundles_post_ra>
// kernel: gpt2_forward.13
= control target key start
LH: loop header
LB: loop body
LE: loop exit
PB: predicated region body
PF: predicated region fallthrough
CT: control target
= control target key end

     0   :  { %s308_s1 = inlined_call_operand.vmem [shape: bf16[128,128], index: 1, kind: input, shape index: {}]   ;;  %s309_s2 = inlined_call_operand.vmem [shape: f32[1,128], index: 2, kind: input, shape index: {}]   ;;  %s310_s0 = inlined_call_operand.vmem [shape: bf16[32,128], index: 0, kind: input, shape index: {}]   ;;  %s311_s3 = inlined_call_operand.vmem [shape: f32[32,128], index: 3, kind: input, shape index: {}]   ;;  %s312_s4 = inlined_call_operand.vmem [shape: f32[32,128], index: 4, kind: output, shape index: {}]  }
   0x1   :  { %v216_v0 = vld [vmem:[%s308_s1 + $0x38] sm:$0xff]  ;;  %v215_v1 = vld [vmem:[%s308_s1 + $0x30] sm:$0xff]  ;;  %v214_v2 = vld [vmem:[%s308_s1 + $0x28] sm:$0xff] }
   0x2   :  { %109 = vmatpush.bf16.msra.mxu0 %v216_v0  ;;  %217 = vmatpush.bf16.msra.mxu1 %v216_v0  ;;  %v213_v3 = vld [vmem:[%s308_s1 + $0x20] sm:$0xff]  ;;  %v212_v4 = vld [vmem:[%s308_s1 + $0x18] sm:$0xff]  ;;  %v211_v5 = vld [vmem:[%s308_s1 + $0x10] sm:$0xff] }
   0x3   :  { %v210_v6 = vld [vmem:[%s308_s1 + $0x8] sm:$0xff]  ;;  %v209_v7 = vld [vmem:[%s308_s1] sm:$0xff]  ;;  %v153_v14 = vld [vmem:[%s311_s3 + $0x10] sm:$0xff] }
   0x4   :  { %v207_v8 = vld [vmem:[%s310_s0] sm:$0xff]  ;;  %v208_v9 = vld [vmem:[%s310_s0 + $0x8] sm:$0xff]  ;;  %v154_v22 = vld [vmem:[%s311_s3 + $0x18] sm:$0xff] }
   0x5   :  { %v225_v10 = vld [vmem:[%s309_s2] ss:$0 sm:$0xff]  ;;  %v152_v20 = vld [vmem:[%s311_s3 + $0x8] sm:$0xff] }
   0x6   :  { %110 = vmatpush.bf16.msra.mxu0 %v215_v1  ;;  %218 = vmatpush.bf16.msra.mxu1 %v215_v1  ;;  %v151_v12 = vld [vmem:[%s311_s3] sm:$0xff] }
   0xa   :  { %111 = vmatpush.bf16.msra.mxu0 %v214_v2  ;;  %219 = vmatpush.bf16.msra.mxu1 %v214_v2 }
   0xe   :  { %112 = vmatpush.bf16.msra.mxu0 %v213_v3  ;;  %220 = vmatpush.bf16.msra.mxu1 %v213_v3 }
  0x12   :  { %113 = vmatpush.bf16.msra.mxu0 %v212_v4  ;;  %221 = vmatpush.bf16.msra.mxu1 %v212_v4 }
  0x16   :  { %114 = vmatpush.bf16.msra.mxu0 %v211_v5  ;;  %222 = vmatpush.bf16.msra.mxu1 %v211_v5 }
  0x1a   :  { %115 = vmatpush.bf16.msra.mxu0 %v210_v6  ;;  %223 = vmatpush.bf16.msra.mxu1 %v210_v6 }
  0x1e   :  { %116 = vmatpush.bf16.msra.mxu0 %v209_v7  ;;  %224 = vmatpush.bf16.msra.mxu1 %v209_v7 }
  0x21   :  { %117 = vmatmul.bf16.vlgmr.msra.gmra.mxu0 %v207_v8  ;;  %122 = vmatmul.bf16.vlgmr.msra.gmra.mxu1 %v208_v9 }
  0x9e   :  { %v118_v11 = vpop.f32.mrf.mxu0  ;;  %v123_v13 = vpop.f32.mrf.mxu1 }
  0x9f   :  { %v147_v15 = vadd.f32 %v225_v10, %v118_v11  ;;  %v149_v16 = vadd.f32 %v225_v10, %v123_v13 }
  0xa1   :  { %v155_v17 = vadd.f32 %v151_v12, %v147_v15  ;;  %v157_v18 = vadd.f32 %v153_v14, %v149_v16 }
  0xa3   :  { %159 = vst [vmem:[%s312_s4] sm:$0xff] %v155_v17 }
  0xa4   :  { %161 = vst [vmem:[%s312_s4 + $0x10] sm:$0xff] %v157_v18 }
  0xa6   :  { %v120_v19 = vpop.f32.mrf.mxu0  ;;  %v125_v21 = vpop.f32.mrf.mxu1 }
  0xa7   :  { %v148_v23 = vadd.f32 %v225_v10, %v120_v19  ;;  %v150_v24 = vadd.f32 %v225_v10, %v125_v21 }
  0xa9   :  { %v156_v25 = vadd.f32 %v152_v20, %v148_v23  ;;  %v158_v26 = vadd.f32 %v154_v22, %v150_v24 }
  0xab   :  { %160 = vst [vmem:[%s312_s4 + $0x8] sm:$0xff] %v156_v25 }
  0xac   :  { %162 = vst [vmem:[%s312_s4 + $0x18] sm:$0xff] %v158_v26 }

// kernel: gpt2_forward.11
= control target key start
LH: loop header
LB: loop body
LE: loop exit
PB: predicated region body
PF: predicated region fallthrough
CT: control target
= control target key end

     0   :  { %10 = vsyncpa [#allocation4], 0  ;;  %s605_s21 = smov [#allocation3]   ;;  %s606_s23 = smov 192   ;;  %s720_s0 = inlined_call_operand.vmem [shape: f32[32,128], index: 0, kind: input, shape index: {}]   ;;  %s721_s1 = inlined_call_operand.vmem [shape: f32[1,128], index: 1, kind: input, shape index: {}]   ;;  %s722_s2 = inlined_call_operand.vmem [shape: f32[1,128], index: 2, kind: input, shape index: {}]   ;;  %s723_s3 = inlined_call_operand.hbm [shape: bf16[128,384], index: 3, kind: input, shape index: {}]   ;;  %s724_s4 = inlined_call_operand.vmem [shape: f32[1,384], index: 4, kind: input, shape index: {}]   ;;  %s725_s5 = inlined_call_operand.vmem [shape: bf16[32,384], index: 5, kind: output, shape index: {}]  }
   0x1   :  { %s21_s20 = sshll.u32 %s723_s3, 4  ;;  %s23_s22 = sshll.u32 %s605_s21, 4  ;;  %s22_s20 = int_to_ptr.hbm [resolvable:$true] %s21_s20  ;;  %s24_s22 = int_to_ptr.vmem [resolvable:$true] %s23_s22 }
   0x2   :  { %s607_s24 = smov 12  }
   0x3   :  { %29 = dma.hbm_to_vmem [thread:$0]  %s22_s20, 3072, %s24_s22, [#allocation4], %s606_s23, %s606_s23, %s607_s24  }
   0x4   :  { %603 = dma.done.wait [#allocation4], 3072  }
   0x5   :  { %604 = vsyncadd [#allocation4], 4294964224  ;;  %v42_v0 = vld [vmem:[%s720_s0 + $0x10] sm:$0xff]  ;;  %v40_v1 = vld [vmem:[%s720_s0] sm:$0xff]  ;;  %v60_v4 = vlaneseq }
   0x6   :  { %48 = vadd.xlane.f32.xlu1 %v42_v0  ;;  %44 = vadd.xlane.f32.xlu0 %v40_v1  ;;  %v43_v2 = vld [vmem:[%s720_s0 + $0x18] sm:$0xff]  ;;  %v41_v3 = vld [vmem:[%s720_s0 + $0x8] sm:$0xff]  ;;  %v545_v27 = vld [vmem:[#allocation3 + $0xb0] sm:$0xf0] }
   0x7   :  { %v61_v5 = vand.u32 127, %v60_v4  ;;  %v511_v26 = vld [vmem:[#allocation3 + $0xa8] sm:$0xf]  ;;  %v544_v28 = vld [vmem:[#allocation3 + $0xac] sm:$0xf] }
   0x8   :  { %v512_v29 = vor.u32 %v545_v27, %v511_v26  ;;  %v513_v30 = vld [vmem:[#allocation3 + $0xb4] sm:$0xf0]  ;;  %v519_v31 = vld [vmem:[#allocation3 + $0xb0] sm:$0xf]  ;;  %v546_v32 = vld [vmem:[#allocation3 + $0xb8] sm:$0xf0] }
   0x9   :  { %vm62_vm0 = vcmp.lt.s32.totalorder %v61_v5, 32  ;;  %v516_v33 = vor.u32 %v544_v28, %v513_v30  ;;  %v520_v34 = vor.u32 %v546_v32, %v519_v31  ;;  %v499_v35 = vld [vmem:[#allocation3 + $0x90] sm:$0xf]  ;;  %v542_v36 = vld [vmem:[#allocation3 + $0x98] sm:$0xf0] }
   0xa   :  { %339 = vmatpush.bf16.msra.mxu0 %v512_v29  ;;  %558 = vmatpush.bf16.msra.mxu3 %v512_v29  ;;  %v541_v37 = vld [vmem:[#allocation3 + $0x94] sm:$0xf]  ;;  %v500_v38 = vor.u32 %v542_v36, %v499_v35  ;;  %v501_v39 = vld [vmem:[#allocation3 + $0x9c] sm:$0xf0]  ;;  %v507_v40 = vld [vmem:[#allocation3 + $0x98] sm:$0xf] }
   0xb   :  { %358 = vmatpush.bf16.msra.mxu1 %v516_v33  ;;  %377 = vmatpush.bf16.msra.mxu2 %v520_v34  ;;  %v543_v41 = vld [vmem:[#allocation3 + $0xa0] sm:$0xf0]  ;;  %v504_v42 = vor.u32 %v541_v37, %v501_v39  ;;  %v487_v44 = vld [vmem:[#allocation3 + $0x78] sm:$0xf]  ;;  %v538_v46 = vld [vmem:[#allocation3 + $0x7c] sm:$0xf] }
   0xc   :  { %v508_v43 = vor.u32 %v543_v41, %v507_v40  ;;  %v539_v45 = vld [vmem:[#allocation3 + $0x80] sm:$0xf0]  ;;  %v489_v48 = vld [vmem:[#allocation3 + $0x84] sm:$0xf0]  ;;  %v495_v49 = vld [vmem:[#allocation3 + $0x80] sm:$0xf] }
   0xd   :  { %v488_v47 = vor.u32 %v539_v45, %v487_v44  ;;  %v540_v50 = vld [vmem:[#allocation3 + $0x88] sm:$0xf0]  ;;  %v492_v51 = vor.u32 %v538_v46, %v489_v48  ;;  %v475_v53 = vld [vmem:[#allocation3 + $0x60] sm:$0xf]  ;;  %v535_v55 = vld [vmem:[#allocation3 + $0x64] sm:$0xf] }
   0xe   :  { %50 = vadd.xlane.f32.xlu1 %v43_v2  ;;  %46 = vadd.xlane.f32.xlu0 %v41_v3  ;;  %v496_v52 = vor.u32 %v540_v50, %v495_v49  ;;  %v536_v54 = vld [vmem:[#allocation3 + $0x68] sm:$0xf0]  ;;  %v477_v57 = vld [vmem:[#allocation3 + $0x6c] sm:$0xf0]  ;;  %v483_v58 = vld [vmem:[#allocation3 + $0x68] sm:$0xf] }
   0xf   :  { %340 = vmatpush.bf16.msra.mxu0 %v500_v38  ;;  %559 = vmatpush.bf16.msra.mxu3 %v500_v38  ;;  %v476_v56 = vor.u32 %v536_v54, %v475_v53  ;;  %v537_v59 = vld [vmem:[#allocation3 + $0x70] sm:$0xf0]  ;;  %v480_v60 = vor.u32 %v535_v55, %v477_v57  ;;  %v463_v62 = vld [vmem:[#allocation3 + $0x48] sm:$0xf]  ;;  %v465_v4 = vld [vmem:[#allocation3 + $0x54] sm:$0xf0] }
  0x10   :  { %359 = vmatpush.bf16.msra.mxu1 %v504_v42  ;;  %378 = vmatpush.bf16.msra.mxu2 %v508_v43  ;;  %v484_v61 = vor.u32 %v537_v59, %v483_v58  ;;  %v533_v63 = vld [vmem:[#allocation3 + $0x50] sm:$0xf0]  ;;  %v471_v5 = vld [vmem:[#allocation3 + $0x50] sm:$0xf]  ;;  %v439_v26 = vld [vmem:[#allocation3 + $0x18] sm:$0xf] }
  0x11   :  { %v527_v27 = vld [vmem:[#allocation3 + $0x20] sm:$0xf0]  ;;  %v526_v28 = vld [vmem:[#allocation3 + $0x1c] sm:$0xf]  ;;  %v441_v32 = vld [vmem:[#allocation3 + $0x24] sm:$0xf0] }
  0x12   :  { %v440_v31 = vor.u32 %v527_v27, %v439_v26  ;;  %v447_v33 = vld [vmem:[#allocation3 + $0x20] sm:$0xf]  ;;  %v528_v34 = vld [vmem:[#allocation3 + $0x28] sm:$0xf0]  ;;  %v444_v37 = vor.u32 %v526_v28, %v441_v32  ;;  %v523_v41 = vld [vmem:[#allocation3 + $0x4] sm:$0xf] }
  0x13   :  { %341 = vmatpush.bf16.msra.mxu0 %v488_v47  ;;  %560 = vmatpush.bf16.msra.mxu3 %v488_v47  ;;  %v448_v38 = vor.u32 %v528_v34, %v447_v33  ;;  %v427_v39 = vld [vmem:[#allocation3] sm:$0xf]  ;;  %v524_v40 = vld [vmem:[#allocation3 + $0x8] sm:$0xf0]  ;;  %v429_v42 = vld [vmem:[#allocation3 + $0xc] sm:$0xf0] }
  0x14   :  { %360 = vmatpush.bf16.msra.mxu1 %v492_v51  ;;  %379 = vmatpush.bf16.msra.mxu2 %v496_v52  ;;  %v435_v43 = vld [vmem:[#allocation3 + $0x8] sm:$0xf]  ;;  %v428_v47 = vor.u32 %v524_v40, %v427_v39  ;;  %v525_v48 = vld [vmem:[#allocation3 + $0x10] sm:$0xf0]  ;;  %v432_v51 = vor.u32 %v523_v41, %v429_v42 }
  0x15   :  { %v436_v52 = vor.u32 %v525_v48, %v435_v43 }
  0x17   :  { %342 = vmatpush.bf16.msra.mxu0 %v476_v56  ;;  %561 = vmatpush.bf16.msra.mxu3 %v476_v56 }
  0x18   :  { %361 = vmatpush.bf16.msra.mxu1 %v480_v60  ;;  %380 = vmatpush.bf16.msra.mxu2 %v484_v61 }
  0x79   :  { %v49_v6 = vpop.xlane.xlu1 %48  ;;  %v45_v7 = vpop.xlane.xlu0 %44 }
  0x7a   :  { %v54_v8 = vmul.f32 0.03125, %v49_v6  ;;  %v52_v9 = vmul.f32 0.03125, %v45_v7  ;;  %v534_v6 = vld [vmem:[#allocation3 + $0x58] sm:$0xf0] }
  0x7c   :  { %v58_v10 = vsub.f32 %v42_v0, %v54_v8  ;;  %v56_v11 = vsub.f32 %v40_v1, %v52_v9  ;;  %v532_v0 = vld [vmem:[#allocation3 + $0x4c] sm:$0xf] }
  0x7d   :  { %v468_v9 = vor.u32 %v532_v0, %v465_v4 }
  0x7e   :  { %v654_v12 = vsel %vm62_vm0, %v58_v10, 0.0  ;;  %v657_v13 = vsel %vm62_vm0, %v56_v11, 0.0  ;;  %v472_v10 = vor.u32 %v534_v6, %v471_v5 }
  0x7f   :  { %v69_v14 = vmul.f32 %v654_v12, %v654_v12  ;;  %v67_v15 = vmul.f32 %v657_v13, %v657_v13  ;;  %362 = vmatpush.bf16.msra.mxu1 %v468_v9  ;;  %v569_v9 = vld [vmem:[%s721_s1] ss:$0 sm:$0xff] }
  0x80   :  { %381 = vmatpush.bf16.msra.mxu2 %v472_v10 }
  0x81   :  { %v51_v16 = vpop.xlane.xlu1 %50  ;;  %75 = vadd.xlane.f32.xlu0 %v69_v14  ;;  %71 = vadd.xlane.f32.xlu2 %v67_v15  ;;  %v47_v17 = vpop.xlane.xlu0 %46  ;;  %v451_v15 = vld [vmem:[#allocation3 + $0x30] sm:$0xf] }
  0x82   :  { %v55_v18 = vmul.f32 0.03125, %v51_v16  ;;  %v53_v19 = vmul.f32 0.03125, %v47_v17  ;;  %v530_v16 = vld [vmem:[#allocation3 + $0x38] sm:$0xf0]  ;;  %v529_v17 = vld [vmem:[#allocation3 + $0x34] sm:$0xf] }
  0x84   :  { %v59_v20 = vsub.f32 %v43_v2, %v55_v18  ;;  %v57_v21 = vsub.f32 %v41_v3, %v53_v19  ;;  %v464_v3 = vor.u32 %v533_v63, %v463_v62  ;;  %v453_v18 = vld [vmem:[#allocation3 + $0x3c] sm:$0xf0]  ;;  %v452_v19 = vor.u32 %v530_v16, %v451_v15 }
  0x86   :  { %v664_v22 = vsel %vm62_vm0, %v59_v20, 0.0  ;;  %v667_v23 = vsel %vm62_vm0, %v57_v21, 0.0  ;;  %343 = vmatpush.bf16.msra.mxu0 %v464_v3  ;;  %562 = vmatpush.bf16.msra.mxu3 %v464_v3  ;;  %v459_v20 = vld [vmem:[#allocation3 + $0x38] sm:$0xf]  ;;  %v531_v21 = vld [vmem:[#allocation3 + $0x40] sm:$0xf0] }
  0x87   :  { %v70_v24 = vmul.f32 %v664_v22, %v664_v22  ;;  %v68_v25 = vmul.f32 %v667_v23, %v667_v23 }
  0x89   :  { %77 = vadd.xlane.f32.xlu1 %v70_v24  ;;  %73 = vadd.xlane.f32.xlu2 %v68_v25  ;;  %v456_v24 = vor.u32 %v529_v17, %v453_v18  ;;  %v460_v25 = vor.u32 %v531_v21, %v459_v20  ;;  %v570_v18 = vld [vmem:[%s722_s2] ss:$0 sm:$0xff] }
  0x8a   :  { %344 = vmatpush.bf16.msra.mxu0 %v452_v19  ;;  %563 = vmatpush.bf16.msra.mxu3 %v452_v19 }
  0x8b   :  { %363 = vmatpush.bf16.msra.mxu1 %v456_v24  ;;  %382 = vmatpush.bf16.msra.mxu2 %v460_v25 }
  0x8e   :  { %345 = vmatpush.bf16.msra.mxu0 %v440_v31  ;;  %564 = vmatpush.bf16.msra.mxu3 %v440_v31 }
  0x8f   :  { %364 = vmatpush.bf16.msra.mxu1 %v444_v37  ;;  %383 = vmatpush.bf16.msra.mxu2 %v448_v38 }
  0x92   :  { %346 = vmatpush.bf16.msra.mxu0 %v428_v47  ;;  %565 = vmatpush.bf16.msra.mxu3 %v428_v47 }
  0x93   :  { %365 = vmatpush.bf16.msra.mxu1 %v432_v51  ;;  %384 = vmatpush.bf16.msra.mxu2 %v436_v52 }
  0xf4   :  { %v72_v1 = vpop.xlane.xlu2 %71  ;;  %v76_v2 = vpop.xlane.xlu0 %75 }
  0xf5   :  { %v79_v7 = vmul.f32 0.03125, %v72_v1  ;;  %v81_v8 = vmul.f32 0.03125, %v76_v2 }
  0xf7   :  { %v673_v11 = vadd.f32 1e-05, %v79_v7  ;;  %v675_v14 = vadd.f32 1e-05, %v81_v8 }
  0xf9   :  { %571 = vrsqrt.f32 %v673_v11  ;;  %vm113_vm1 = vweird.f32 %v675_v14  ;;  %vm93_vm5 = vweird.f32 %v673_v11 }
  0xfa   :  { %573 = vrsqrt.f32 %v675_v14 }
  0xfc   :  { %v78_v29 = vpop.xlane.xlu1 %77  ;;  %v74_v30 = vpop.xlane.xlu2 %73 }
  0xfd   :  { %v82_v35 = vmul.f32 0.03125, %v78_v29  ;;  %v80_v36 = vmul.f32 0.03125, %v74_v30 }
  0xff   :  { %v572_v44 = vpop.eup %571  ;;  %v86_v45 = vadd.f32 1e-05, %v82_v35  ;;  %v84_v46 = vadd.f32 1e-05, %v80_v36 }
 0x100   :  { %v574_v49 = vpop.eup %573  ;;  %v88_v50 = vmul.f32 %v572_v44, %v673_v11  ;;  %vm94_vm3 = vweird.f32 %v572_v44 }
 0x101   :  { %v108_v53 = vmul.f32 %v574_v49, %v675_v14  ;;  %575 = vrsqrt.f32 %v86_v45  ;;  %vm114_vm2 = vweird.f32 %v574_v49  ;;  %vm95_vm6 = vmor %vm93_vm5, %vm94_vm3  ;;  %vm123_vm7 = vweird.f32 %v86_v45 }
 0x102   :  { %v89_v54 = vmul.f32 %v572_v44, %v88_v50  ;;  %577 = vrsqrt.f32 %v84_v46  ;;  %vm115_vm4 = vmor %vm113_vm1, %vm114_vm2  ;;  %vm103_vm11 = vweird.f32 %v84_v46 }
 0x103   :  { %v109_v55 = vmul.f32 %v574_v49, %v108_v53 }
 0x104   :  { %v90_v56 = vmul.f32 0.5, %v89_v54 }
 0x105   :  { %v110_v57 = vmul.f32 0.5, %v109_v55 }
 0x106   :  { %v91_v58 = vsub.f32 1.5, %v90_v56 }
 0x107   :  { %v576_v59 = vpop.eup %575  ;;  %v111_v60 = vsub.f32 1.5, %v110_v57 }
 0x108   :  { %v578_v61 = vpop.eup %577  ;;  %v118_v62 = vmul.f32 %v576_v59, %v86_v45  ;;  %v92_v63 = vmul.f32 %v572_v44, %v91_v58  ;;  %vm124_vm8 = vweird.f32 %v576_v59 }
 0x109   :  { %v112_v0 = vmul.f32 %v574_v49, %v111_v60  ;;  %v98_v1 = vmul.f32 %v578_v61, %v84_v46  ;;  %vm125_vm9 = vmor %vm123_vm7, %vm124_vm8  ;;  %vm104_vm10 = vweird.f32 %v578_v61 }
 0x10a   :  { %v119_v2 = vmul.f32 %v576_v59, %v118_v62  ;;  %v96_v6 = vsel %vm95_vm6, %v572_v44, %v92_v63  ;;  %vm105_vm12 = vmor %vm103_vm11, %vm104_vm10 }
 0x10b   :  { %v99_v3 = vmul.f32 %v578_v61, %v98_v1  ;;  %v116_v4 = vsel %vm115_vm4, %v574_v49, %v112_v0  ;;  %v127_v11 = vmul.f32 %v96_v6, %v657_v13 }
 0x10c   :  { %v120_v5 = vmul.f32 0.5, %v119_v2  ;;  %v129_v10 = vmul.f32 %v116_v4, %v654_v12 }
 0x10d   :  { %v100_v7 = vmul.f32 0.5, %v99_v3  ;;  %v135_v24 = vmul.f32 %v569_v9, %v127_v11 }
 0x10e   :  { %v121_v8 = vsub.f32 1.5, %v120_v5  ;;  %v137_v19 = vmul.f32 %v569_v9, %v129_v10 }
 0x10f   :  { %v101_v14 = vsub.f32 1.5, %v100_v7  ;;  %v143_v28 = vadd.f32 %v570_v18, %v135_v24 }
 0x110   :  { %v122_v15 = vmul.f32 %v576_v59, %v121_v8  ;;  %v145_v27 = vadd.f32 %v570_v18, %v137_v19 }
 0x111   :  { %v102_v16 = vmul.f32 %v578_v61, %v101_v14 }
 0x112   :  { %v126_v17 = vsel %vm125_vm9, %v576_v59, %v122_v15 }
 0x113   :  { %v130_v20 = vmul.f32 %v126_v17, %v664_v22  ;;  %v106_v21 = vsel %vm105_vm12, %v578_v61, %v102_v16  ;;  %v191_v22 = vld [vmem:[%s724_s4] sm:$0x7] }
 0x114   :  { %v128_v12 = vmul.f32 %v106_v21, %v667_v23  ;;  %v193_v23 = vperm.slane %v191_v22, 0  ;;  %v194_v34 = vperm.slane %v191_v22, 1  ;;  %v195_v40 = vperm.slane %v191_v22, 2 }
 0x115   :  { %v138_v25 = vmul.f32 %v569_v9, %v130_v20 }
 0x116   :  { %v136_v26 = vmul.f32 %v569_v9, %v128_v12 }
 0x117   :  { %v146_v13 = vadd.f32 %v570_v18, %v138_v25 }
 0x118   :  { %v144_v29 = vadd.f32 %v570_v18, %v136_v26 }
 0x119   :  { %v555_v30 = vpack.c.bf16 %v146_v13, %v145_v27 }
 0x11a   :  { %v550_v31 = vpack.c.bf16 %v144_v29, %v143_v28 }
 0x11b   :  { %557 = vst [vmem:[#allocation2 + $0x8] sm:$0xff] %v555_v30  }
 0x11c   :  { %551 = vst [vmem:[#allocation2] sm:$0xff] %v550_v31  }
 0x122   :  { %v522_v32 = vld [vmem:[#allocation2 + $0x8] sm:$0xff] }
 0x123   :  { %v521_v33 = vld [vmem:[#allocation2] sm:$0xff]  ;;  %352 = vmatmul.bf16.vlgmr.msra.gmra.mxu3 %v522_v32 }
 0x124   :  { %347 = vmatmul.bf16.vlgmr.msra.gmra.mxu0 %v521_v33  ;;  %366 = vmatmul.bf16.vlgmr.msra.gmra.mxu1 %v521_v33 }
 0x125   :  { %385 = vmatmul.bf16.vlgmr.msra.gmra.mxu2 %v521_v33 }
 0x134   :  { %371 = vmatmul.bf16.gmra.mxu1 %v522_v32 }
 0x135   :  { %390 = vmatmul.bf16.gmra.mxu2 %v522_v32 }
 0x1a1   :  { %v348_v35 = vpop.f32.mrf.mxu0  ;;  %v367_v36 = vpop.f32.mrf.mxu1 }
 0x1a2   :  { %v349_v37 = vadd.f32 %v348_v35, %v193_v23  ;;  %v368_v38 = vadd.f32 %v367_v36, %v194_v34 }
 0x1a4   :  { %v396_v39 = vpack.c.bf16 %v368_v38, %v349_v37 }
 0x1a6   :  { %404 = vst [vmem:[%s725_s5] sm:$0xff] %v396_v39  ;;  %v353_v49 = vpop.f32.mrf.mxu3 }
 0x1a7   :  { %v354_v53 = vadd.f32 %v353_v49, %v193_v23 }
 0x1a8   :  { %v386_v41 = vpop.f32.mrf.mxu2 }
 0x1a9   :  { %v387_v42 = vadd.f32 %v386_v41, %v195_v40  ;;  %v350_v43 = vpop.f32.mrf.mxu0  ;;  %v369_v44 = vpop.f32.mrf.mxu1 }
 0x1aa   :  { %v351_v45 = vadd.f32 %v350_v43, %v193_v23  ;;  %v370_v46 = vadd.f32 %v369_v44, %v194_v34 }
 0x1ab   :  { %v397_v47 = vpack.c.bf16 %v387_v42, %v387_v42 }
 0x1ac   :  { %v398_v48 = vpack.c.bf16 %v370_v46, %v351_v45 }
 0x1ad   :  { %405 = vst [vmem:[%s725_s5 + $0x8] sm:$0xf] %v397_v47 }
 0x1ae   :  { %406 = vst [vmem:[%s725_s5 + $0xc] sm:$0xff] %v398_v48  ;;  %v355_v57 = vpop.f32.mrf.mxu3 }
 0x1af   :  { %v356_v61 = vadd.f32 %v355_v57, %v193_v23 }
 0x1b0   :  { %v388_v50 = vpop.f32.mrf.mxu2 }
 0x1b1   :  { %v389_v51 = vadd.f32 %v388_v50, %v195_v40  ;;  %v372_v52 = vpop.f32.mrf.mxu1 }
 0x1b2   :  { %v373_v54 = vadd.f32 %v372_v52, %v194_v34 }
 0x1b3   :  { %v399_v55 = vpack.c.bf16 %v389_v51, %v389_v51 }
 0x1b4   :  { %v400_v56 = vpack.c.bf16 %v373_v54, %v354_v53 }
 0x1b5   :  { %407 = vst [vmem:[%s725_s5 + $0x14] sm:$0xf] %v399_v55 }
 0x1b6   :  { %408 = vst [vmem:[%s725_s5 + $0x18] sm:$0xff] %v400_v56 }
 0x1b8   :  { %v391_v58 = vpop.f32.mrf.mxu2 }
 0x1b9   :  { %v392_v59 = vadd.f32 %v391_v58, %v195_v40  ;;  %v374_v60 = vpop.f32.mrf.mxu1 }
 0x1ba   :  { %v375_v62 = vadd.f32 %v374_v60, %v194_v34 }
 0x1bb   :  { %v401_v63 = vpack.c.bf16 %v392_v59, %v392_v59 }
 0x1bc   :  { %v402_v0 = vpack.c.bf16 %v375_v62, %v356_v61 }
 0x1bd   :  { %409 = vst [vmem:[%s725_s5 + $0x20] sm:$0xf] %v401_v63 }
 0x1be   :  { %410 = vst [vmem:[%s725_s5 + $0x24] sm:$0xff] %v402_v0 }
 0x1c0   :  { %v393_v1 = vpop.f32.mrf.mxu2 }
 0x1c1   :  { %v394_v2 = vadd.f32 %v393_v1, %v195_v40 }
 0x1c3   :  { %v403_v3 = vpack.c.bf16 %v394_v2, %v394_v2 }
 0x1c5   :  { %411 = vst [vmem:[%s725_s5 + $0x2c] sm:$0xf] %v403_v3 }
 0x1c6   :  { %416 = vsyncpa [#allocation4], 1 }

// kernel: gpt2_forward.12
= control target key start
LH: loop header
LB: loop body
LE: loop exit
PB: predicated region body
PF: predicated region fallthrough
CT: control target
= control target key end

     0   :  { %s1455_s12 = smov 0   ;;  %s1457_s13 = smov 0   ;;  %s1710_s0 = inlined_call_operand.vmem [shape: bf16[2,4,16,8], index: 0, kind: input, shape index: {}]   ;;  %s1711_s1 = inlined_call_operand.vmem [shape: bf16[2,4,16,8], index: 1, kind: input, shape index: {}]   ;;  %s1712_s2 = inlined_call_operand.vmem [shape: bf16[2,4,16,8], index: 2, kind: input, shape index: {}]   ;;  %s1713_s3 = inlined_call_operand.vmem [shape: bf16[2,4,16,8], index: 3, kind: output, shape index: {}]  }
   0x1   :  { %s1459_s14 = smov 0  }
   0x2 LB: > { %s39_s15 = sadd.s32 1, %s1426_s13  ;;  %p1247_p0 = scmp.ge.s32.totalorder %s1430_s14, 1  ;;  %s1430_s14 = sphi %s1459_s14, %s13_s14   ;;  %s1426_s13 = sphi %s1457_s13, %s1719_s13   ;;  %s1422_s12 = sphi %s1455_s12, %s1718_s12  }
   0x3   : > { %p41_p1 = scmp.ge.s32.totalorder %s39_s15, 2  ;;  %p248_p2 = scmp.lt.s32.totalorder %s1430_s14, 3 }
   0x5   : > { %s1721_s15 = smov (%p41_p1, %s39_s15), 0  ;;  %p249_p3 = pnand %p1247_p0, %p248_p2 }
   0x6   : > { %p324_p4 = scmp.lt.s32.totalorder (!%p249_p3), %s1422_s12, 1 }
   0x7   : > { %252 = sbr.rel (%p249_p3) target bundleno = 673 (0x2a1), region = 32 }
   0xc   : > { %s1723_s12 = smov (!%p324_p4, %s1422_s12), 1  ;;  %vm416_vm0 = vcmask 64512   ;;  %v567_v12 = vlaneseq  ;;  %vm399_vm1 = vcmask 7168   ;;  %v1432_v15 = vmov -inf  }
   0xd   : > { %s1473_s16 = sshll.u32 %s1723_s12, 5  ;;  %402 = vst.msk [vmem:[#allocation2 + $0x10] sm:$0xff] %vm399_vm1, %v1432_v15  ;;  %vm599_vm5 = vcmask 130048   ;;  %v1433_v43 = vmov 0   ;;  %v1434_v44 = vmov 0.0   ;;  %vm1068_vm8 = vcmask 60416  }
   0xe   : > { %s353_s19 = scalar_lea.vmem %s1711_s1, %s1473_s16  ;;  %s335_s22 = scalar_lea.vmem %s1710_s0, %s1473_s16  ;;  %v568_v13 = vshrl.u32 %v567_v12, 7  ;;  %v575_v14 = vand.u32 127, %v567_v12  ;;  %400 = vst.msk [vmem:[#allocation2] sm:$0xff] %vm399_vm1, %v1432_v15  ;;  %1359 = vset.pattern.permute.xlu1 %v1433_v43  ;;  %1357 = vset.pattern.permute.xlu2 %v1433_v43 }
   0xf   : > { %v1322_v0 = vld [vmem:[%s353_s19] sm:$0xff]  ;;  %v1323_v1 = vld [vmem:[%s353_s19 + $0x8] sm:$0xff]  ;;  %v1324_v2 = vld [vmem:[%s353_s19 + $0x10] sm:$0xff]  ;;  %401 = vst.msk [vmem:[#allocation2 + $0x8] sm:$0xff] %vm399_vm1, %v1432_v15  ;;  %1358 = vset.pattern.permute.xlu0 %v1433_v43  ;;  %s373_s25 = scalar_lea.vmem %s1712_s2, %s1473_s16  ;;  %s1683_s28 = scalar_lea.vmem %s1713_s3, %s1473_s16 }
  0x10   : > { %v1325_v3 = vld [vmem:[%s353_s19 + $0x18] sm:$0xff]  ;;  %v460_v4 = vsel %vm416_vm0, %v1322_v0, 0  ;;  %v490_v5 = vsel %vm416_vm0, %v1323_v1, 0  ;;  %v520_v6 = vsel %vm416_vm0, %v1324_v2, 0  ;;  %v1318_v8 = vld [vmem:[%s335_s22] sm:$0xff]  ;;  %v1319_v9 = vld [vmem:[%s335_s22 + $0x8] sm:$0xff]  ;;  %vm578_vm2 = vcmp.le.s32.totalorder %v575_v14, %v568_v13 }
  0x11   : > { %469 = vmatpush.bf16.xpose.msra.mxu0 %v460_v4  ;;  %499 = vmatpush.bf16.xpose.msra.mxu1 %v490_v5  ;;  %v550_v7 = vsel %vm416_vm0, %v1325_v3, 0  ;;  %v1320_v10 = vld [vmem:[%s335_s22 + $0x10] sm:$0xff]  ;;  %v1321_v11 = vld [vmem:[%s335_s22 + $0x18] sm:$0xff]  ;;  %vm580_vm3 = vcmp.lt.s32.totalorder %v575_v14, 8  ;;  %403 = vst.msk [vmem:[#allocation2 + $0x18] sm:$0xff] %vm399_vm1, %v1432_v15  ;;  %v569_v17 = vadd.s32 8, %v568_v13 }
  0x12   : > { %529 = vmatpush.bf16.xpose.msra.mxu2 %v520_v6  ;;  %559 = vmatpush.bf16.xpose.msra.mxu3 %v550_v7  ;;  %vm1495_vm4 = vmand %vm578_vm2, %vm580_vm3  ;;  %404 = vst.msk [vmem:[#allocation2 + $0x20] sm:$0xff] %vm399_vm1, %v1432_v15 }
  0x13   : > { %405 = vst.msk [vmem:[#allocation2 + $0x28] sm:$0xff] %vm399_vm1, %v1432_v15  ;;  %vm579_vm6 = vcmp.le.s32.totalorder %v575_v14, %v569_v17 }
  0x14   : > { %406 = vst.msk [vmem:[#allocation2 + $0x30] sm:$0xff] %vm399_vm1, %v1432_v15  ;;  %vm1517_vm7 = vmand %vm579_vm6, %vm580_vm3  ;;  %v593_v45 = vld [vmem:[#allocation2 + $0x10] sm:$0xff] }
  0x15   : > { %407 = vst.msk [vmem:[#allocation2 + $0x38] sm:$0xff] %vm399_vm1, %v1432_v15  ;;  %v591_v46 = vld [vmem:[#allocation2] sm:$0xff] }
  0x16   : > { %418 = vst.msk [vmem:[#allocation4 + $0x8] sm:$0xff] %vm416_vm0, %v1434_v44  ;;  %v592_v53 = vld [vmem:[#allocation2 + $0x8] sm:$0xff] }
  0x17   : > { %408 = vst.msk [vmem:[#allocation3] sm:$0xff] %vm399_vm1, %v1434_v44 }
  0x18   : > { %1264 = vmatmul.msk.bf16.vlgmr.msra.gmra.mxu0 %vm416_vm0, %v1318_v8  ;;  %1273 = vmatmul.msk.bf16.vlgmr.msra.gmra.mxu1 %vm416_vm0, %v1319_v9  ;;  %409 = vst.msk [vmem:[#allocation3 + $0x8] sm:$0xff] %vm399_vm1, %v1434_v44  ;;  %v594_v61 = vld [vmem:[#allocation2 + $0x18] sm:$0xff] }
  0x19   : > { %1282 = vmatmul.msk.bf16.vlgmr.msra.gmra.mxu2 %vm416_vm0, %v1320_v10  ;;  %1291 = vmatmul.msk.bf16.vlgmr.msra.gmra.mxu3 %vm416_vm0, %v1321_v11  ;;  %410 = vst.msk [vmem:[#allocation3 + $0x10] sm:$0xff] %vm399_vm1, %v1434_v44  ;;  %v595_v52 = vld [vmem:[#allocation2 + $0x20] sm:$0xff] }
  0x1a   : > { %411 = vst.msk [vmem:[#allocation3 + $0x18] sm:$0xff] %vm399_vm1, %v1434_v44  ;;  %v596_v62 = vld [vmem:[#allocation2 + $0x28] sm:$0xff] }
  0x1b   : > { %412 = vst.msk [vmem:[#allocation3 + $0x20] sm:$0xff] %vm399_vm1, %v1434_v44  ;;  %v597_v51 = vld [vmem:[#allocation2 + $0x30] sm:$0xff] }
  0x1c   : > { %413 = vst.msk [vmem:[#allocation3 + $0x28] sm:$0xff] %vm399_vm1, %v1434_v44  ;;  %v1580_v6 = vld [vmem:[#allocation2 + $0x38] sm:$0xff] }
  0x1d   : > { %414 = vst.msk [vmem:[#allocation3 + $0x30] sm:$0xff] %vm399_vm1, %v1434_v44 }
  0x1e   : > { %415 = vst.msk [vmem:[#allocation3 + $0x38] sm:$0xff] %vm399_vm1, %v1434_v44 }
  0x1f   : > { %417 = vst.msk [vmem:[#allocation4] sm:$0xff] %vm416_vm0, %v1434_v44 }
  0x20   : > { %419 = vst.msk [vmem:[#allocation4 + $0x10] sm:$0xff] %vm416_vm0, %v1434_v44 }
  0x21   : > { %420 = vst.msk [vmem:[#allocation4 + $0x18] sm:$0xff] %vm416_vm0, %v1434_v44 }
  0x22   : > { %421 = vst.msk [vmem:[#allocation4 + $0x20] sm:$0xff] %vm416_vm0, %v1434_v44 }
  0x23   : > { %422 = vst.msk [vmem:[#allocation4 + $0x28] sm:$0xff] %vm416_vm0, %v1434_v44 }
  0x24   : > { %423 = vst.msk [vmem:[#allocation4 + $0x30] sm:$0xff] %vm416_vm0, %v1434_v44 }
  0x25   : > { %424 = vst.msk [vmem:[#allocation4 + $0x38] sm:$0xff] %vm416_vm0, %v1434_v44 }
  0x95   : > { %v471_v18 = vpop.f32.mrf.mxu0  ;;  %v501_v19 = vpop.f32.mrf.mxu1 }
  0x96   : > { %v1504_v20 = vsel %vm1495_vm4, %v471_v18, -1e+30  ;;  %v1508_v21 = vsel %vm1495_vm4, %v501_v19, -1e+30 }
  0x97   : > { %v606_v22 = vsel %vm599_vm5, %v1508_v21, -inf  ;;  %v600_v23 = vsel %vm599_vm5, %v1504_v20, -inf }
  0x98   : > { %607 = vmax.xlane.f32.xlu0 %v606_v22  ;;  %601 = vmax.xlane.f32.xlu2 %v600_v23 }
  0x9c   : > { %v531_v25 = vpop.f32.mrf.mxu2  ;;  %v561_v26 = vpop.f32.mrf.mxu3 }
  0x9d   : > { %v1523_v27 = vsel %vm1495_vm4, %v531_v25, -1e+30  ;;  %v1527_v28 = vsel %vm1495_vm4, %v561_v26, -1e+30  ;;  %v473_v29 = vpop.f32.mrf.mxu0  ;;  %v503_v34 = vpop.f32.mrf.mxu1 }
  0x9e   : > { %v1531_v30 = vsel %vm1517_vm7, %v473_v29, -1e+30  ;;  %v618_v31 = vsel %vm599_vm5, %v1527_v28, -inf  ;;  %v612_v32 = vsel %vm599_vm5, %v1523_v27, -inf  ;;  %v1541_v35 = vsel %vm1517_vm7, %v503_v34, -1e+30 }
  0x9f   : > { %619 = vmax.xlane.f32.xlu1 %v618_v31  ;;  %v603_v33 = vsel %vm599_vm5, %v1531_v30, -inf  ;;  %v609_v38 = vsel %vm599_vm5, %v1541_v35, -inf }
  0xa0   : > { %613 = vmax.xlane.f32.xlu0 %v612_v32  ;;  %604 = vmax.xlane.f32.xlu2 %v603_v33  ;;  %v1329_v33 = vld [vmem:[%s373_s25 + $0x18] sm:$0xff] }
  0xa1   : > { %954 = vmatpush.bf16.msrb.mxu3 %v1329_v33 }
  0xa4   : > { %v533_v36 = vpop.f32.mrf.mxu2  ;;  %v563_v40 = vpop.f32.mrf.mxu3 }
  0xa5   : > { %v1545_v37 = vsel %vm1517_vm7, %v533_v36, -1e+30  ;;  %v1553_v41 = vsel %vm1517_vm7, %v563_v40, -1e+30  ;;  %v1326_v40 = vld [vmem:[%s373_s25] sm:$0xff] }
  0xa6   : > { %v615_v39 = vsel %vm599_vm5, %v1545_v37, -inf  ;;  %v621_v42 = vsel %vm599_vm5, %v1553_v41, -inf  ;;  %870 = vmatpush.bf16.msrb.mxu0 %v1326_v40 }
  0xa7   : > { %610 = vmax.xlane.f32.xlu1 %v609_v38 }
  0xa8   : > { %616 = vmax.xlane.f32.xlu0 %v615_v39 }
  0xaf   : > { %622 = vmax.xlane.f32.xlu1 %v621_v42  ;;  %v1328_v42 = vld [vmem:[%s373_s25 + $0x10] sm:$0xff] }
  0xb0   : > { %926 = vmatpush.bf16.msrb.mxu2 %v1328_v42 }
 0x10b   : > { %v608_v47 = vpop.xlane.xlu0 %607  ;;  %v602_v48 = vpop.xlane.xlu2 %601 }
 0x10c   : > { %v626_v49 = vmax.f32 %v593_v45, %v608_v47  ;;  %v624_v50 = vmax.f32 %v591_v46, %v602_v48 }
 0x10e   : > { %979 = vst.msk [vmem:[#allocation2 + $0x10] sm:$0xff] %vm399_vm1, %v626_v49  ;;  %v634_v60 = vsub.f32 %v593_v45, %v626_v49  ;;  %v632_v4 = vsub.f32 %v591_v46, %v624_v50 }
 0x10f   : > { %977 = vst.msk [vmem:[#allocation2] sm:$0xff] %vm399_vm1, %v624_v50 }
 0x110   : > { %v644_v0 = vmul.f32 1.442695, %v634_v60  ;;  %v640_v7 = vmul.f32 1.442695, %v632_v4 }
 0x112   : > { %v620_v54 = vpop.xlane.xlu1 %619  ;;  %1360 = vpow2.f32 %v644_v0 }
 0x113   : > { %v630_v55 = vmax.f32 %v597_v51, %v620_v54  ;;  %v614_v56 = vpop.xlane.xlu0 %613  ;;  %v605_v57 = vpop.xlane.xlu2 %604  ;;  %1362 = vpow2.f32 %v640_v7 }
 0x114   : > { %v628_v58 = vmax.f32 %v595_v52, %v614_v56  ;;  %v625_v59 = vmax.f32 %v592_v53, %v605_v57 }
 0x115   : > { %983 = vst.msk [vmem:[#allocation2 + $0x30] sm:$0xff] %vm399_vm1, %v630_v55  ;;  %688 = vperm.xlu1 %1359, %v630_v55   ;;  %v638_v13 = vsub.f32 %v597_v51, %v630_v55 }
 0x116   : > { %981 = vst.msk [vmem:[#allocation2 + $0x20] sm:$0xff] %vm399_vm1, %v628_v58  ;;  %678 = vperm.xlu2 %1357, %v628_v58   ;;  %v636_v5 = vsub.f32 %v595_v52, %v628_v58  ;;  %v633_v14 = vsub.f32 %v592_v53, %v625_v59 }
 0x117   : > { %978 = vst.msk [vmem:[#allocation2 + $0x8] sm:$0xff] %vm399_vm1, %v625_v59  ;;  %v652_v15 = vmul.f32 1.442695, %v638_v13 }
 0x118   : > { %v648_v9 = vmul.f32 1.442695, %v636_v5  ;;  %v1585_v11 = vpop.eup %1360  ;;  %v642_v16 = vmul.f32 1.442695, %v633_v14 }
 0x119   : > { %v1593_v17 = vpop.eup %1362 }
 0x11a   : > { %v611_v63 = vpop.xlane.xlu1 %610  ;;  %1364 = vpow2.f32 %v648_v9 }
 0x11b   : > { %v627_v1 = vmax.f32 %v594_v61, %v611_v63  ;;  %v617_v2 = vpop.xlane.xlu0 %616  ;;  %1366 = vpow2.f32 %v652_v15 }
 0x11c   : > { %v629_v3 = vmax.f32 %v596_v62, %v617_v2  ;;  %1368 = vpow2.f32 %v642_v16 }
 0x11d   : > { %980 = vst.msk [vmem:[#allocation2 + $0x18] sm:$0xff] %vm399_vm1, %v627_v1  ;;  %663 = vperm.xlu1 %1359, %v625_v59   ;;  %v635_v19 = vsub.f32 %v594_v61, %v627_v1 }
 0x11e   : > { %982 = vst.msk [vmem:[#allocation2 + $0x28] sm:$0xff] %vm399_vm1, %v629_v3  ;;  %683 = vperm.xlu0 %1358, %v629_v3   ;;  %658 = vperm.xlu2 %1357, %v624_v50   ;;  %v637_v22 = vsub.f32 %v596_v62, %v629_v3 }
 0x11f   : > { %v646_v23 = vmul.f32 1.442695, %v635_v19 }
 0x120   : > { %v1595_v18 = vpop.eup %1364  ;;  %v650_v24 = vmul.f32 1.442695, %v637_v22 }
 0x121   : > { %v1599_v25 = vpop.eup %1366  ;;  %1370 = vpow2.f32 %v646_v23 }
 0x122   : > { %v623_v8 = vpop.xlane.xlu1 %622  ;;  %v1601_v26 = vpop.eup %1368  ;;  %1372 = vpow2.f32 %v650_v24 }
 0x123   : > { %v1583_v10 = vmax.f32 %v1580_v6, %v623_v8 }
 0x125   : > { %v639_v12 = vsub.f32 %v1580_v6, %v1583_v10  ;;  %984 = vst.msk [vmem:[#allocation2 + $0x38] sm:$0xff] %vm399_vm1, %v1583_v10  ;;  %673 = vperm.xlu1 %1359, %v627_v1  }
 0x126   : > { %797 = vperm.xlu0 %1358, %v1585_v11   ;;  %693 = vperm.xlu2 %1357, %v1583_v10  }
 0x127   : > { %v1605_v29 = vpop.eup %1370 }
 0x128   : > { %v1607_v31 = vpop.eup %1372 }
 0x12d   : > { %787 = vperm.xlu1 %1359, %v1593_v17  }
 0x12e   : > { %807 = vperm.xlu0 %1358, %v1595_v18   ;;  %668 = vperm.xlu2 %1357, %v626_v49   ;;  %v1327_v49 = vld [vmem:[%s373_s25 + $0x8] sm:$0xff] }
 0x12f   : > { %898 = vmatpush.bf16.msrb.mxu1 %v1327_v49 }
 0x135   : > { %817 = vperm.xlu1 %1359, %v1599_v25  }
 0x136   : > { %792 = vperm.xlu2 %1357, %v1601_v26  }
 0x13d   : > { %802 = vperm.xlu1 %1359, %v1605_v29  }
 0x13e   : > { %812 = vperm.xlu2 %1357, %v1607_v31  }
 0x170   : > { %v679_v32 = vpop.permute.xlu2 %678 }
 0x171   : > { %v700_v38 = vsub.f32 %v1523_v27, %v679_v32 }
 0x173   : > { %v712_v43 = vmul.f32 1.442695, %v700_v38 }
 0x178   : > { %v659_v34 = vpop.permute.xlu2 %658 }
 0x179   : > { %v696_v36 = vsub.f32 %v1504_v20, %v659_v34 }
 0x17b   : > { %v704_v39 = vmul.f32 1.442695, %v696_v36 }
 0x17d   : > { %1374 = vpow2.f32 %v704_v39 }
 0x17e   : > { %1376 = vpow2.f32 %v712_v43 }
 0x180   : > { %v694_v44 = vpop.permute.xlu2 %693 }
 0x181   : > { %v703_v45 = vsub.f32 %v1553_v41, %v694_v44 }
 0x183   : > { %v1375_v46 = vpop.eup %1374  ;;  %v718_v47 = vmul.f32 1.442695, %v703_v45 }
 0x184   : > { %v736_v48 = vsel %vm599_vm5, %v1375_v46, 0.0  ;;  %v1377_v51 = vpop.eup %1376  ;;  %v833_v7 = vpack.c.bf16 %v1375_v46, %v1375_v46 }
 0x185   : > { %737 = vadd.xlane.f32.xlu0 %v736_v48  ;;  %1378 = vpow2.f32 %v718_v47  ;;  %v748_v41 = vsel %vm599_vm5, %v1377_v51, 0.0  ;;  %v837_v9 = vpack.c.bf16 %v1377_v51, %v1377_v51  ;;  %v720_v47 = vld [vmem:[#allocation3] sm:$0xff] }
 0x186   : > { %v851_v23 = vunpack.c.l.b16 %v833_v7  ;;  %v724_v51 = vld [vmem:[#allocation3 + $0x20] sm:$0xff] }
 0x187   : > { %v689_v20 = vpop.permute.xlu1 %688  ;;  %v907_v32 = vunpack.c.l.b16 %v837_v9  ;;  %v723_v9 = vld [vmem:[#allocation3 + $0x18] sm:$0xff] }
 0x188   : > { %v702_v27 = vsub.f32 %v1527_v28, %v689_v20  ;;  %v669_v50 = vpop.permute.xlu2 %668  ;;  %v728_v20 = vmul.f32 %v1593_v17, %v720_v47  ;;  %v722_v17 = vld [vmem:[#allocation3 + $0x10] sm:$0xff] }
 0x189   : > { %v698_v52 = vsub.f32 %v1508_v21, %v669_v50 }
 0x18a   : > { %v716_v53 = vmul.f32 1.442695, %v702_v27 }
 0x18b   : > { %v708_v54 = vmul.f32 1.442695, %v698_v52  ;;  %v1379_v55 = vpop.eup %1378 }
 0x18c   : > { %1380 = vpow2.f32 %v716_v53  ;;  %v840_v59 = vpack.c.bf16 %v1379_v55, %v1379_v55  ;;  %v757_v1 = vsel %vm599_vm5, %v1379_v55, 0.0  ;;  %v732_v53 = vmul.f32 %v1595_v18, %v724_v51 }
 0x18d   : > { %1382 = vpow2.f32 %v708_v54  ;;  %749 = vadd.xlane.f32.xlu0 %v748_v41 }
 0x18e   : > { %v936_v3 = vunpack.c.l.b16 %v840_v59 }
 0x18f   : > { %v664_v56 = vpop.permute.xlu1 %663 }
 0x190   : > { %v697_v57 = vsub.f32 %v1531_v30, %v664_v56  ;;  %v684_v58 = vpop.permute.xlu0 %683  ;;  %v1644_v48 = vpop.permute.xlu2 %792 }
 0x191   : > { %v701_v60 = vsub.f32 %v1545_v37, %v684_v58  ;;  %v727_v58 = vld [vmem:[#allocation3 + $0x38] sm:$0xff] }
 0x192   : > { %v1381_v28 = vpop.eup %1380  ;;  %v706_v61 = vmul.f32 1.442695, %v697_v57  ;;  %v726_v57 = vld [vmem:[#allocation3 + $0x30] sm:$0xff] }
 0x193   : > { %v1383_v62 = vpop.eup %1382  ;;  %v839_v63 = vpack.c.bf16 %v1381_v28, %v1381_v28  ;;  %v714_v21 = vmul.f32 1.442695, %v701_v60  ;;  %v754_v0 = vsel %vm599_vm5, %v1381_v28, 0.0  ;;  %v734_v59 = vmul.f32 %v1599_v25, %v726_v57  ;;  %v725_v25 = vld [vmem:[#allocation3 + $0x28] sm:$0xff] }
 0x194   : > { %1384 = vpow2.f32 %v706_v61  ;;  %755 = vadd.xlane.f32.xlu2 %v754_v0  ;;  %v742_v2 = vsel %vm599_vm5, %v1383_v62, 0.0  ;;  %v835_v38 = vpack.c.bf16 %v1383_v62, %v1383_v62  ;;  %v730_v61 = vmul.f32 %v1585_v11, %v722_v17 }
 0x195   : > { %v935_v4 = vunpack.c.l.b16 %v839_v63  ;;  %1386 = vpow2.f32 %v714_v21  ;;  %758 = vadd.xlane.f32.xlu0 %v757_v1  ;;  %743 = vadd.xlane.f32.xlu1 %v742_v2 }
 0x196   : > { %v879_v43 = vunpack.c.l.b16 %v835_v38 }
 0x197   : > { %v674_v30 = vpop.permute.xlu1 %673  ;;  %v937_v37 = vpack.c.b16 %v936_v3, %v935_v4  ;;  %v721_v3 = vld [vmem:[#allocation3 + $0x8] sm:$0xff] }
 0x198   : > { %v699_v5 = vsub.f32 %v1541_v35, %v674_v30  ;;  %v654_v35 = vmul.f32 1.442695, %v639_v12  ;;  %v1638_v10 = vpop.permute.xlu0 %797  ;;  %v1648_v52 = vpop.permute.xlu2 %812  ;;  %v729_v4 = vmul.f32 %v1601_v26, %v721_v3  ;;  %v733_v30 = vmul.f32 %v1607_v31, %v725_v25  ;;  %v777_v31 = vld [vmem:[#allocation4] sm:$0xff] }
 0x199   : > { %1311 = vmatmul.msk.bf16.vlgmr.msrb.gmra.mxu3 %vm599_vm5, %v937_v37 }
 0x19a   : > { %v1385_v8 = vpop.eup %1384  ;;  %v710_v13 = vmul.f32 1.442695, %v699_v5 }
 0x19b   : > { %v1387_v14 = vpop.eup %1386  ;;  %v834_v15 = vpack.c.bf16 %v1385_v8, %v1385_v8  ;;  %v739_v16 = vsel %vm599_vm5, %v1385_v8, 0.0 }
 0x19c   : > { %v838_v19 = vpack.c.bf16 %v1387_v14, %v1387_v14  ;;  %1388 = vpow2.f32 %v710_v13  ;;  %740 = vadd.xlane.f32.xlu2 %v739_v16  ;;  %v751_v22 = vsel %vm599_vm5, %v1387_v14, 0.0  ;;  %v731_v14 = vmul.f32 %v1605_v29, %v723_v9  ;;  %v783_v16 = vld [vmem:[#allocation4 + $0x30] sm:$0xff] }
 0x19d   : > { %v852_v24 = vunpack.c.l.b16 %v834_v15  ;;  %752 = vadd.xlane.f32.xlu1 %v751_v22  ;;  %1390 = vpow2.f32 %v654_v35 }
 0x19e   : > { %v908_v33 = vunpack.c.l.b16 %v838_v19 }
 0x19f   : > { %v853_v34 = vpack.c.b16 %v852_v24, %v851_v23  ;;  %v1640_v12 = vpop.permute.xlu1 %787 }
 0x1a0   : > { %v909_v36 = vpack.c.b16 %v908_v33, %v907_v32  ;;  %v1642_v46 = vpop.permute.xlu0 %807  ;;  %v825_v32 = vmul.f32 %v1640_v12, %v777_v31 }
 0x1a1   : > { %1296 = vmatmul.msk.bf16.vlgmr.msrb.gmra.mxu0 %vm599_vm5, %v853_v34 }
 0x1a2   : > { %v1389_v39 = vpop.eup %1388  ;;  %1306 = vmatmul.msk.bf16.vlgmr.msrb.gmra.mxu2 %vm599_vm5, %v909_v36 }
 0x1a3   : > { %v836_v40 = vpack.c.bf16 %v1389_v39, %v1389_v39  ;;  %v745_v42 = vsel %vm599_vm5, %v1389_v39, 0.0  ;;  %v1391_v6 = vpop.eup %1390  ;;  %v784_v39 = vld [vmem:[#allocation4 + $0x38] sm:$0xff] }
 0x1a4   : > { %746 = vadd.xlane.f32.xlu2 %v745_v42  ;;  %v735_v28 = vmul.f32 %v1391_v6, %v727_v58 }
 0x1a5   : > { %v880_v44 = vunpack.c.l.b16 %v836_v40 }
 0x1a7   : > { %v881_v45 = vpack.c.b16 %v880_v44, %v879_v43  ;;  %v818_v49 = vpop.permute.xlu1 %817  ;;  %v781_v43 = vld [vmem:[#allocation4 + $0x20] sm:$0xff] }
 0x1a8   : > { %v831_v24 = vmul.f32 %v818_v49, %v783_v16  ;;  %v829_v47 = vmul.f32 %v1642_v46, %v781_v43  ;;  %v782_v46 = vld [vmem:[#allocation4 + $0x28] sm:$0xff] }
 0x1a9   : > { %1301 = vmatmul.msk.bf16.vlgmr.msrb.gmra.mxu1 %vm599_vm5, %v881_v45  ;;  %822 = vperm.xlu0 %1358, %v1391_v6   ;;  %v778_v45 = vld [vmem:[#allocation4 + $0x8] sm:$0xff]  ;;  %v779_v6 = vld [vmem:[#allocation4 + $0x10] sm:$0xff] }
 0x1af   : > { %v1651_v54 = vpop.permute.xlu1 %802 }
 0x1f8   : > { %v738_v27 = vpop.xlane.xlu0 %737 }
 0x1f9   : > { %v760_v50 = vadd.f32 %v738_v27, %v728_v20  ;;  %v826_v20 = vmul.f32 %v1644_v48, %v778_v45  ;;  %v827_v27 = vmul.f32 %v1638_v10, %v779_v6  ;;  %v780_v10 = vld [vmem:[#allocation4 + $0x18] sm:$0xff]  ;;  %v830_v48 = vmul.f32 %v1648_v52, %v782_v46 }
 0x1fb   : > { %769 = vst.msk [vmem:[#allocation3] sm:$0xff] %vm399_vm1, %v760_v50 }
 0x200   : > { %v750_v41 = vpop.xlane.xlu0 %749 }
 0x201   : > { %v764_v55 = vadd.f32 %v750_v41, %v732_v53 }
 0x202   : > { %v996_v56 = vld [vmem:[#allocation3] sm:$0xff] }
 0x203   : > { %773 = vst.msk [vmem:[#allocation3 + $0x20] sm:$0xff] %vm399_vm1, %v764_v55  ;;  %1392 = vrcp.f32 %v996_v56 }
 0x207   : > { %v756_v60 = vpop.xlane.xlu2 %755 }
 0x208   : > { %v766_v62 = vadd.f32 %v756_v60, %v734_v59  ;;  %v759_v63 = vpop.xlane.xlu0 %758  ;;  %v744_v18 = vpop.xlane.xlu1 %743  ;;  %v828_v60 = vmul.f32 %v1651_v54, %v780_v10 }
 0x209   : > { %v1393_v21 = vpop.eup %1392  ;;  %v767_v0 = vadd.f32 %v759_v63, %v735_v28  ;;  %v762_v1 = vadd.f32 %v744_v18, %v730_v61 }
 0x20a   : > { %775 = vst.msk [vmem:[#allocation3 + $0x30] sm:$0xff] %vm399_vm1, %v766_v62  ;;  %1014 = vperm.xlu2 %1357, %v1393_v21   ;;  %v1000_v2 = vld [vmem:[#allocation3 + $0x20] sm:$0xff] }
 0x20b   : > { %776 = vst.msk [vmem:[#allocation3 + $0x38] sm:$0xff] %vm399_vm1, %v767_v0  ;;  %1394 = vrcp.f32 %v1000_v2 }
 0x20c   : > { %771 = vst.msk [vmem:[#allocation3 + $0x10] sm:$0xff] %vm399_vm1, %v762_v1 }
 0x20f   : > { %v741_v11 = vpop.xlane.xlu2 %740 }
 0x210   : > { %v761_v37 = vadd.f32 %v741_v11, %v729_v4  ;;  %v753_v5 = vpop.xlane.xlu1 %752 }
 0x211   : > { %v1395_v7 = vpop.eup %1394  ;;  %v765_v8 = vadd.f32 %v753_v5, %v733_v30  ;;  %v1002_v17 = vld [vmem:[#allocation3 + $0x30] sm:$0xff] }
 0x212   : > { %770 = vst.msk [vmem:[#allocation3 + $0x8] sm:$0xff] %vm399_vm1, %v761_v37  ;;  %1034 = vperm.xlu1 %1359, %v1395_v7   ;;  %v1003_v36 = vld [vmem:[#allocation3 + $0x38] sm:$0xff] }
 0x213   : > { %774 = vst.msk [vmem:[#allocation3 + $0x28] sm:$0xff] %vm399_vm1, %v765_v8  ;;  %v998_v13 = vld [vmem:[#allocation3 + $0x10] sm:$0xff] }
 0x214   : > { %1396 = vrcp.f32 %v998_v13 }
 0x217   : > { %v747_v15 = vpop.xlane.xlu2 %746 }
 0x218   : > { %v763_v26 = vadd.f32 %v747_v15, %v731_v14 }
 0x219   : > { %v997_v19 = vld [vmem:[#allocation3 + $0x8] sm:$0xff] }
 0x21a   : > { %v1397_v22 = vpop.eup %1396  ;;  %772 = vst.msk [vmem:[#allocation3 + $0x18] sm:$0xff] %vm399_vm1, %v763_v26  ;;  %1398 = vrcp.f32 %v997_v19  ;;  %v1001_v23 = vld [vmem:[#allocation3 + $0x28] sm:$0xff] }
 0x21b   : > { %1024 = vperm.xlu0 %1358, %v1397_v22   ;;  %1400 = vrcp.f32 %v1001_v23  ;;  %v823_v40 = vpop.permute.xlu0 %822 }
 0x21c   : > { %v956_v35 = vpop.f32.mrf.mxu3  ;;  %1402 = vrcp.f32 %v1003_v36  ;;  %v832_v12 = vmul.f32 %v823_v40, %v784_v39 }
 0x21d   : > { %v967_v33 = vadd.f32 %v956_v35, %v831_v24 }
 0x21e   : > { %v872_v34 = vpop.f32.mrf.mxu0 }
 0x21f   : > { %975 = vst.msk [vmem:[#allocation4 + $0x30] sm:$0xff] %vm416_vm0, %v967_v33  ;;  %v961_v29 = vadd.f32 %v872_v34, %v825_v32 }
 0x220   : > { %v1399_v38 = vpop.eup %1398 }
 0x221   : > { %v1401_v42 = vpop.eup %1400  ;;  %969 = vst.msk [vmem:[#allocation4] sm:$0xff] %vm416_vm0, %v961_v29  ;;  %1019 = vperm.xlu1 %1359, %v1399_v38   ;;  %v999_v44 = vld [vmem:[#allocation3 + $0x18] sm:$0xff] }
 0x222   : > { %1404 = vrcp.f32 %v999_v44  ;;  %v1403_v56 = vpop.eup %1402 }
 0x223   : > { %1039 = vperm.xlu0 %1358, %v1401_v42   ;;  %1406 = vrcp.f32 %v1002_v17 }
 0x224   : > { %v958_v49 = vpop.f32.mrf.mxu3 }
 0x225   : > { %v968_v50 = vadd.f32 %v958_v49, %v832_v12  ;;  %v928_v51 = vpop.f32.mrf.mxu2 }
 0x226   : > { %v874_v53 = vpop.f32.mrf.mxu0  ;;  %v900_v41 = vpop.f32.mrf.mxu1  ;;  %v965_v55 = vadd.f32 %v928_v51, %v829_v47  ;;  %v994_v5 = vld [vmem:[#allocation4 + $0x30] sm:$0xff] }
 0x227   : > { %976 = vst.msk [vmem:[#allocation4 + $0x38] sm:$0xff] %vm416_vm0, %v968_v50  ;;  %v962_v57 = vadd.f32 %v874_v53, %v826_v20  ;;  %v963_v58 = vadd.f32 %v900_v41, %v827_v27 }
 0x228   : > { %v1405_v59 = vpop.eup %1404  ;;  %973 = vst.msk [vmem:[#allocation4 + $0x20] sm:$0xff] %vm416_vm0, %v965_v55  ;;  %v988_v21 = vld [vmem:[#allocation4] sm:$0xff] }
 0x229   : > { %970 = vst.msk [vmem:[#allocation4 + $0x8] sm:$0xff] %vm416_vm0, %v962_v57  ;;  %1049 = vperm.xlu1 %1359, %v1403_v56   ;;  %1029 = vperm.xlu2 %1357, %v1405_v59   ;;  %v1407_v18 = vpop.eup %1406 }
 0x22a   : > { %971 = vst.msk [vmem:[#allocation4 + $0x10] sm:$0xff] %vm416_vm0, %v963_v58 }
 0x22d   : > { %v930_v28 = vpop.f32.mrf.mxu2 }
 0x22e   : > { %v902_v61 = vpop.f32.mrf.mxu1  ;;  %v966_v62 = vadd.f32 %v930_v28, %v830_v48  ;;  %v995_v33 = vld [vmem:[#allocation4 + $0x38] sm:$0xff] }
 0x22f   : > { %v964_v63 = vadd.f32 %v902_v61, %v828_v60  ;;  %v992_v25 = vld [vmem:[#allocation4 + $0x20] sm:$0xff] }
 0x230   : > { %974 = vst.msk [vmem:[#allocation4 + $0x28] sm:$0xff] %vm416_vm0, %v966_v62  ;;  %v989_v26 = vld [vmem:[#allocation4 + $0x8] sm:$0xff] }
 0x231   : > { %972 = vst.msk [vmem:[#allocation4 + $0x18] sm:$0xff] %vm416_vm0, %v964_v63  ;;  %1044 = vperm.xlu2 %1357, %v1407_v18   ;;  %v990_v9 = vld [vmem:[#allocation4 + $0x10] sm:$0xff] }
 0x237   : > { %v993_v23 = vld [vmem:[#allocation4 + $0x28] sm:$0xff] }
 0x238   : > { %v991_v54 = vld [vmem:[#allocation4 + $0x18] sm:$0xff] }
 0x264   : > { %v1015_v0 = vpop.permute.xlu2 %1014 }
 0x265   : > { %v1052_v1 = vmul.f32 %v1015_v0, %v988_v21 }
 0x267   : > { %v1060_v52 = vpack.c.bf16 %v1052_v1, %v1052_v1 }
 0x269   : > { %1069 = vst.msk [vmem:[%s1683_s28] sm:$0xf] %vm1068_vm8, %v1060_v52 }
 0x283   : > { %v1030_v2 = vpop.permute.xlu2 %1029 }
 0x284   : > { %v1055_v3 = vmul.f32 %v1030_v2, %v991_v54  ;;  %v1035_v4 = vpop.permute.xlu1 %1034 }
 0x285   : > { %v1056_v11 = vmul.f32 %v1035_v4, %v992_v25 }
 0x286   : > { %v1063_v30 = vpack.c.bf16 %v1055_v3, %v1055_v3 }
 0x287   : > { %v1064_v37 = vpack.c.bf16 %v1056_v11, %v1056_v11 }
 0x288   : > { %1072 = vst.msk [vmem:[%s1683_s28 + $0xc] sm:$0xf] %vm1068_vm8, %v1063_v30 }
 0x289   : > { %1073 = vst.msk [vmem:[%s1683_s28 + $0x10] sm:$0xf] %vm1068_vm8, %v1064_v37 }
 0x28b   : > { %v1045_v7 = vpop.permute.xlu2 %1044 }
 0x28c   : > { %v1058_v8 = vmul.f32 %v1045_v7, %v994_v5 }
 0x28d   : > { %v1025_v13 = vpop.permute.xlu0 %1024 }
 0x28e   : > { %v1066_v14 = vpack.c.bf16 %v1058_v8, %v1058_v8  ;;  %v1054_v15 = vmul.f32 %v1025_v13, %v990_v9 }
 0x290   : > { %1075 = vst.msk [vmem:[%s1683_s28 + $0x18] sm:$0xf] %vm1068_vm8, %v1066_v14  ;;  %v1062_v16 = vpack.c.bf16 %v1054_v15, %v1054_v15 }
 0x292   : > { %1071 = vst.msk [vmem:[%s1683_s28 + $0x8] sm:$0xf] %vm1068_vm8, %v1062_v16 }
 0x293   : > { %v1020_v19 = vpop.permute.xlu1 %1019 }
 0x294   : > { %v1053_v22 = vmul.f32 %v1020_v19, %v989_v26 }
 0x295   : > { %v1040_v31 = vpop.permute.xlu0 %1039 }
 0x296   : > { %v1061_v24 = vpack.c.bf16 %v1053_v22, %v1053_v22  ;;  %v1057_v35 = vmul.f32 %v1040_v31, %v993_v23 }
 0x298   : > { %1070 = vst.msk [vmem:[%s1683_s28 + $0x4] sm:$0xf] %vm1068_vm8, %v1061_v24  ;;  %v1065_v32 = vpack.c.bf16 %v1057_v35, %v1057_v35 }
 0x29a   : > { %1074 = vst.msk [vmem:[%s1683_s28 + $0x14] sm:$0xf] %vm1068_vm8, %v1065_v32 }
 0x29b   : > { %v1050_v34 = vpop.permute.xlu1 %1049 }
 0x29c   : > { %v1059_v36 = vmul.f32 %v1050_v34, %v995_v33 }
 0x29e   : > { %v1067_v29 = vpack.c.bf16 %v1059_v36, %v1059_v36 }
 0x2a0   : > { %1076 = vst.msk [vmem:[%s1683_s28 + $0x1c] sm:$0xf] %vm1068_vm8, %v1067_v29 }
 0x2a1 PF: > { %s13_s14 = sadd.s32 1, %s1430_s14   ;;  %s1718_s12 = smov %s1426_s13 }
 0x2a2   : > { %p10_p5 = scmp.ge.s32.totalorder %s13_s14, 4   ;;  %s1719_s13 = smov %s1721_s15 }
 0x2a4   :  { %12 = sbr.rel (!%p10_p5) target bundleno = 2 (0x2), region = 80 }

// kernel: gpt2_forward.14
= control target key start
LH: loop header
LB: loop body
LE: loop exit
PB: predicated region body
PF: predicated region fallthrough
CT: control target
= control target key end

     0   :  { %v44_v4 = vlaneseq  ;;  %s682_s0 = inlined_call_operand.vmem [shape: f32[32,128], index: 0, kind: input, shape index: {}]   ;;  %s683_s1 = inlined_call_operand.vmem [shape: f32[1,128], index: 1, kind: input, shape index: {}]   ;;  %s684_s2 = inlined_call_operand.vmem [shape: f32[1,128], index: 2, kind: input, shape index: {}]   ;;  %s685_s4 = inlined_call_operand.vmem [shape: f32[1,128], index: 4, kind: input, shape index: {}]   ;;  %s686_s3 = inlined_call_operand.vmem [shape: bf16[128,128], index: 3, kind: input, shape index: {}]   ;;  %s687_s5 = inlined_call_operand.vmem [shape: bf16[32,128], index: 5, kind: output, shape index: {}]  }
   0x1   :  { %v26_v0 = vld [vmem:[%s682_s0 + $0x10] sm:$0xff]  ;;  %v24_v1 = vld [vmem:[%s682_s0] sm:$0xff]  ;;  %v27_v2 = vld [vmem:[%s682_s0 + $0x18] sm:$0xff] }
   0x2   :  { %32 = vadd.xlane.f32.xlu1 %v26_v0  ;;  %28 = vadd.xlane.f32.xlu0 %v24_v1  ;;  %v25_v3 = vld [vmem:[%s682_s0 + $0x8] sm:$0xff]  ;;  %v45_v5 = vand.u32 127, %v44_v4  ;;  %v463_v26 = vld [vmem:[%s686_s3 + $0x38] sm:$0xff]  ;;  %v462_v27 = vld [vmem:[%s686_s3 + $0x30] sm:$0xff] }
   0x3   :  { %223 = vmatpush.bf16.msra.mxu0 %v463_v26  ;;  %486 = vmatpush.bf16.msra.mxu1 %v463_v26  ;;  %v461_v28 = vld [vmem:[%s686_s3 + $0x28] sm:$0xff]  ;;  %v460_v29 = vld [vmem:[%s686_s3 + $0x20] sm:$0xff]  ;;  %v459_v32 = vld [vmem:[%s686_s3 + $0x18] sm:$0xff] }
   0x4   :  { %vm46_vm0 = vcmp.lt.s32.totalorder %v45_v5, 32  ;;  %v458_v37 = vld [vmem:[%s686_s3 + $0x10] sm:$0xff]  ;;  %v457_v40 = vld [vmem:[%s686_s3 + $0x8] sm:$0xff]  ;;  %v456_v43 = vld [vmem:[%s686_s3] sm:$0xff] }
   0x5   :  { %v494_v5 = vld [vmem:[%s683_s1] ss:$0 sm:$0xff] }
   0x7   :  { %224 = vmatpush.bf16.msra.mxu0 %v462_v27  ;;  %487 = vmatpush.bf16.msra.mxu1 %v462_v27 }
   0xa   :  { %34 = vadd.xlane.f32.xlu1 %v27_v2  ;;  %30 = vadd.xlane.f32.xlu0 %v25_v3 }
   0xb   :  { %225 = vmatpush.bf16.msra.mxu0 %v461_v28  ;;  %488 = vmatpush.bf16.msra.mxu1 %v461_v28 }
   0xf   :  { %226 = vmatpush.bf16.msra.mxu0 %v460_v29  ;;  %489 = vmatpush.bf16.msra.mxu1 %v460_v29 }
  0x13   :  { %227 = vmatpush.bf16.msra.mxu0 %v459_v32  ;;  %490 = vmatpush.bf16.msra.mxu1 %v459_v32 }
  0x17   :  { %228 = vmatpush.bf16.msra.mxu0 %v458_v37  ;;  %491 = vmatpush.bf16.msra.mxu1 %v458_v37 }
  0x1b   :  { %229 = vmatpush.bf16.msra.mxu0 %v457_v40  ;;  %492 = vmatpush.bf16.msra.mxu1 %v457_v40 }
  0x1f   :  { %230 = vmatpush.bf16.msra.mxu0 %v456_v43  ;;  %493 = vmatpush.bf16.msra.mxu1 %v456_v43 }
  0x75   :  { %v33_v6 = vpop.xlane.xlu1 %32  ;;  %v29_v7 = vpop.xlane.xlu0 %28 }
  0x76   :  { %v38_v8 = vmul.f32 0.03125, %v33_v6  ;;  %v36_v9 = vmul.f32 0.03125, %v29_v7 }
  0x78   :  { %v42_v10 = vsub.f32 %v26_v0, %v38_v8  ;;  %v40_v11 = vsub.f32 %v24_v1, %v36_v9 }
  0x7a   :  { %v564_v12 = vsel %vm46_vm0, %v42_v10, 0.0  ;;  %v567_v13 = vsel %vm46_vm0, %v40_v11, 0.0 }
  0x7b   :  { %v53_v14 = vmul.f32 %v564_v12, %v564_v12  ;;  %v51_v15 = vmul.f32 %v567_v13, %v567_v13 }
  0x7d   :  { %v35_v16 = vpop.xlane.xlu1 %34  ;;  %59 = vadd.xlane.f32.xlu0 %v53_v14  ;;  %55 = vadd.xlane.f32.xlu2 %v51_v15  ;;  %v31_v17 = vpop.xlane.xlu0 %30  ;;  %v495_v14 = vld [vmem:[%s684_s2] ss:$0 sm:$0xff] }
  0x7e   :  { %v39_v18 = vmul.f32 0.03125, %v35_v16  ;;  %v37_v19 = vmul.f32 0.03125, %v31_v17 }
  0x80   :  { %v43_v20 = vsub.f32 %v27_v2, %v39_v18  ;;  %v41_v21 = vsub.f32 %v25_v3, %v37_v19 }
  0x82   :  { %v574_v22 = vsel %vm46_vm0, %v43_v20, 0.0  ;;  %v577_v23 = vsel %vm46_vm0, %v41_v21, 0.0 }
  0x83   :  { %v54_v24 = vmul.f32 %v574_v22, %v574_v22  ;;  %v52_v25 = vmul.f32 %v577_v23, %v577_v23 }
  0x85   :  { %61 = vadd.xlane.f32.xlu1 %v54_v24  ;;  %57 = vadd.xlane.f32.xlu2 %v52_v25 }
  0xf0   :  { %v56_v30 = vpop.xlane.xlu2 %55  ;;  %v60_v31 = vpop.xlane.xlu0 %59 }
  0xf1   :  { %v63_v33 = vmul.f32 0.03125, %v56_v30  ;;  %v65_v34 = vmul.f32 0.03125, %v60_v31 }
  0xf3   :  { %v67_v35 = vadd.f32 1e-05, %v63_v33  ;;  %v69_v36 = vadd.f32 1e-05, %v65_v34 }
  0xf5   :  { %497 = vrsqrt.f32 %v67_v35  ;;  %vm97_vm3 = vweird.f32 %v69_v36  ;;  %vm77_vm4 = vweird.f32 %v67_v35 }
  0xf6   :  { %499 = vrsqrt.f32 %v69_v36 }
  0xf8   :  { %v62_v38 = vpop.xlane.xlu1 %61  ;;  %v58_v39 = vpop.xlane.xlu2 %57 }
  0xf9   :  { %v66_v41 = vmul.f32 0.03125, %v62_v38  ;;  %v64_v42 = vmul.f32 0.03125, %v58_v39 }
  0xfb   :  { %v498_v44 = vpop.eup %497  ;;  %v70_v45 = vadd.f32 1e-05, %v66_v41  ;;  %v68_v46 = vadd.f32 1e-05, %v64_v42 }
  0xfc   :  { %v500_v47 = vpop.eup %499  ;;  %v72_v48 = vmul.f32 %v498_v44, %v67_v35  ;;  %vm78_vm2 = vweird.f32 %v498_v44 }
  0xfd   :  { %v92_v49 = vmul.f32 %v500_v47, %v69_v36  ;;  %501 = vrsqrt.f32 %v70_v45  ;;  %vm98_vm1 = vweird.f32 %v500_v47  ;;  %vm79_vm6 = vmor %vm77_vm4, %vm78_vm2  ;;  %vm107_vm9 = vweird.f32 %v70_v45 }
  0xfe   :  { %v73_v50 = vmul.f32 %v498_v44, %v72_v48  ;;  %503 = vrsqrt.f32 %v68_v46  ;;  %vm99_vm5 = vmor %vm97_vm3, %vm98_vm1  ;;  %vm87_vm11 = vweird.f32 %v68_v46 }
  0xff   :  { %v93_v51 = vmul.f32 %v500_v47, %v92_v49 }
 0x100   :  { %v74_v52 = vmul.f32 0.5, %v73_v50 }
 0x101   :  { %v94_v53 = vmul.f32 0.5, %v93_v51 }
 0x102   :  { %v75_v54 = vsub.f32 1.5, %v74_v52 }
 0x103   :  { %v502_v55 = vpop.eup %501  ;;  %v95_v56 = vsub.f32 1.5, %v94_v53 }
 0x104   :  { %v504_v57 = vpop.eup %503  ;;  %v102_v58 = vmul.f32 %v502_v55, %v70_v45  ;;  %v76_v59 = vmul.f32 %v498_v44, %v75_v54  ;;  %vm108_vm7 = vweird.f32 %v502_v55 }
 0x105   :  { %v96_v60 = vmul.f32 %v500_v47, %v95_v56  ;;  %v82_v61 = vmul.f32 %v504_v57, %v68_v46  ;;  %vm88_vm8 = vweird.f32 %v504_v57  ;;  %vm109_vm10 = vmor %vm107_vm9, %vm108_vm7 }
 0x106   :  { %v103_v62 = vmul.f32 %v502_v55, %v102_v58  ;;  %v80_v2 = vsel %vm79_vm6, %v498_v44, %v76_v59  ;;  %vm89_vm12 = vmor %vm87_vm11, %vm88_vm8 }
 0x107   :  { %v83_v63 = vmul.f32 %v504_v57, %v82_v61  ;;  %v100_v0 = vsel %vm99_vm5, %v500_v47, %v96_v60  ;;  %v111_v8 = vmul.f32 %v80_v2, %v567_v13 }
 0x108   :  { %v104_v1 = vmul.f32 0.5, %v103_v62  ;;  %v113_v6 = vmul.f32 %v100_v0, %v564_v12 }
 0x109   :  { %v84_v3 = vmul.f32 0.5, %v83_v63  ;;  %v119_v12 = vmul.f32 %v494_v5, %v111_v8 }
 0x10a   :  { %v105_v4 = vsub.f32 1.5, %v104_v1  ;;  %v121_v15 = vmul.f32 %v494_v5, %v113_v6 }
 0x10b   :  { %v85_v7 = vsub.f32 1.5, %v84_v3  ;;  %v127_v24 = vadd.f32 %v495_v14, %v119_v12 }
 0x10c   :  { %v106_v9 = vmul.f32 %v502_v55, %v105_v4  ;;  %v129_v20 = vadd.f32 %v495_v14, %v121_v15 }
 0x10d   :  { %v86_v10 = vmul.f32 %v504_v57, %v85_v7 }
 0x10e   :  { %v110_v11 = vsel %vm109_vm10, %v502_v55, %v106_v9 }
 0x10f   :  { %v114_v16 = vmul.f32 %v110_v11, %v574_v22  ;;  %v90_v17 = vsel %vm89_vm12, %v504_v57, %v86_v10  ;;  %v496_v22 = vld [vmem:[%s685_s4] ss:$0 sm:$0xff] }
 0x110   :  { %v112_v18 = vmul.f32 %v90_v17, %v577_v23 }
 0x111   :  { %v122_v19 = vmul.f32 %v494_v5, %v114_v16 }
 0x112   :  { %v120_v13 = vmul.f32 %v494_v5, %v112_v18 }
 0x113   :  { %v130_v21 = vadd.f32 %v495_v14, %v122_v19 }
 0x114   :  { %v128_v25 = vadd.f32 %v495_v14, %v120_v13 }
 0x115   :  { %v472_v26 = vpack.c.bf16 %v130_v21, %v129_v20 }
 0x116   :  { %v467_v27 = vpack.c.bf16 %v128_v25, %v127_v24 }
 0x117   :  { %484 = vst [vmem:[#allocation2 + $0x8] sm:$0xff] %v472_v26  }
 0x118   :  { %468 = vst [vmem:[#allocation2] sm:$0xff] %v467_v27  }
 0x11e   :  { %v455_v28 = vld [vmem:[#allocation2 + $0x8] sm:$0xff] }
 0x11f   :  { %v454_v29 = vld [vmem:[#allocation2] sm:$0xff]  ;;  %236 = vmatmul.bf16.vlgmr.msra.gmra.mxu1 %v455_v28 }
 0x120   :  { %231 = vmatmul.bf16.vlgmr.msra.gmra.mxu0 %v454_v29 }
 0x19c   :  { %v237_v30 = vpop.f32.mrf.mxu1 }
 0x19d   :  { %v232_v23 = vpop.f32.mrf.mxu0  ;;  %v620_v31 = vadd.f32 %v496_v22, %v237_v30 }
 0x19e   :  { %v622_v32 = vadd.f32 %v496_v22, %v232_v23 }
 0x19f   :  { %v625_v33 = vmul.f32 0.70710677, %v620_v31 }
 0x1a0   :  { %v628_v34 = vmul.f32 0.70710677, %v622_v32 }
 0x1a1   :  { %v248_v35 = vand.u32 2147483647, %v625_v33 }
 0x1a2   :  { %v246_v36 = vand.u32 2147483647, %v628_v34 }
 0x1a3   :  { %v252_v37 = vmul.f32 0.3275911, %v248_v35  ;;  %v356_v57 = vsub.f32 0.0, %v248_v35 }
 0x1a4   :  { %v250_v38 = vmul.f32 0.3275911, %v246_v36  ;;  %v239_v39 = vpop.f32.mrf.mxu1  ;;  %v354_v55 = vsub.f32 0.0, %v246_v36 }
 0x1a5   :  { %v256_v40 = vadd.f32 1.0, %v252_v37  ;;  %v234_v41 = vpop.f32.mrf.mxu0  ;;  %v634_v44 = vadd.f32 %v496_v22, %v239_v39  ;;  %v360_v11 = vmul.f32 %v356_v57, %v248_v35 }
 0x1a6   :  { %v254_v42 = vadd.f32 1.0, %v250_v38  ;;  %v632_v43 = vadd.f32 %v496_v22, %v234_v41  ;;  %v358_v7 = vmul.f32 %v354_v55, %v246_v36 }
 0x1a7   :  { %505 = vrcp.f32 %v256_v40  ;;  %v640_v46 = vmul.f32 0.70710677, %v634_v44  ;;  %v297_v60 = vand.u32 2147483647, %v256_v40  ;;  %v299_v61 = vand.u32 2147483648, %v256_v40 }
 0x1a8   :  { %507 = vrcp.f32 %v254_v42  ;;  %v637_v45 = vmul.f32 0.70710677, %v632_v43  ;;  %v269_v63 = vand.u32 2147483648, %v254_v42  ;;  %v267_v2 = vand.u32 2147483647, %v254_v42 }
 0x1a9   :  { %v646_v49 = vand.u32 2147483647, %v640_v46  ;;  %vm293_vm15 = vweird.f32 %v256_v40  ;;  %vm263_vm0 = vweird.f32 %v254_v42  ;;  %v300_v5 = vor.u32 1.1754944e-38, %v299_v61 }
 0x1aa   :  { %v643_v47 = vand.u32 2147483647, %v637_v45  ;;  %v270_v6 = vor.u32 1.1754944e-38, %v269_v63  ;;  %vm298_vm3 = vcmp.eq.f32.partialorder %v297_v60, 8.507059e+37  ;;  %vm268_vm4 = vcmp.eq.f32.partialorder %v267_v2, 8.507059e+37 }
 0x1ab   :  { %v253_v54 = vmul.f32 0.3275911, %v646_v49  ;;  %v362_v19 = vmul.f32 1.442695, %v358_v7  ;;  %v366_v24 = vmul.f32 1.442695, %v360_v11 }
 0x1ac   :  { %v251_v52 = vmul.f32 0.3275911, %v643_v47 }
 0x1ad   :  { %v506_v48 = vpop.eup %505  ;;  %v652_v62 = vadd.f32 1.0, %v253_v54 }
 0x1ae   :  { %v508_v50 = vpop.eup %507  ;;  %v289_v51 = vmul.f32 %v506_v48, %v256_v40  ;;  %v650_v58 = vadd.f32 1.0, %v251_v52  ;;  %vm294_vm13 = vweird.f32 %v506_v48  ;;  %v355_v40 = vsub.f32 0.0, %v643_v47 }
 0x1af   :  { %v259_v53 = vmul.f32 %v508_v50, %v254_v42  ;;  %vm264_vm14 = vweird.f32 %v508_v50  ;;  %vm295_vm1 = vmor %vm293_vm15, %vm294_vm13  ;;  %v314_v23 = vand.u32 2147483648, %v652_v62  ;;  %v312_v37 = vand.u32 2147483647, %v652_v62 }
 0x1b0   :  { %v290_v56 = vsub.f32 1.0, %v289_v51  ;;  %509 = vrcp.f32 %v650_v58  ;;  %vm265_vm2 = vmor %vm263_vm0, %vm264_vm14  ;;  %v282_v27 = vand.u32 2147483647, %v650_v58  ;;  %v284_v28 = vand.u32 2147483648, %v650_v58 }
 0x1b1   :  { %v260_v59 = vsub.f32 1.0, %v259_v53  ;;  %511 = vrcp.f32 %v652_v62  ;;  %vm278_vm7 = vweird.f32 %v650_v58  ;;  %vm308_vm9 = vweird.f32 %v652_v62 }
 0x1b2   :  { %v291_v0 = vmul.f32 %v506_v48, %v290_v56  ;;  %v285_v42 = vor.u32 1.1754944e-38, %v284_v28  ;;  %vm283_vm10 = vcmp.eq.f32.partialorder %v282_v27, 8.507059e+37  ;;  %v315_v52 = vor.u32 1.1754944e-38, %v314_v23 }
 0x1b3   :  { %v261_v1 = vmul.f32 %v508_v50, %v260_v59  ;;  %vm313_vm12 = vcmp.eq.f32.partialorder %v312_v37, 8.507059e+37  ;;  %v357_v59 = vsub.f32 0.0, %v646_v49  ;;  %513 = vpow2.f32 %v362_v19 }
 0x1b4   :  { %v292_v3 = vadd.f32 %v506_v48, %v291_v0  ;;  %515 = vpow2.f32 %v366_v24  ;;  %vm378_vm13 = vcmp.ge.f32.partialorder %v628_v34, 0.0  ;;  %vm380_vm14 = vcmp.ge.f32.partialorder %v625_v33, 0.0 }
 0x1b5   :  { %v262_v4 = vadd.f32 %v508_v50, %v261_v1  ;;  %v359_v1 = vmul.f32 %v355_v40, %v643_v47  ;;  %vm379_vm15 = vcmp.ge.f32.partialorder %v637_v45, 0.0  ;;  %vm381_vm0 = vcmp.ge.f32.partialorder %v640_v46, 0.0 }
 0x1b6   :  { %v296_v8 = vsel %vm295_vm1, %v506_v48, %v292_v3  ;;  %v510_v14 = vpop.eup %509  ;;  %v391_v34 = vmul.f32 0.5, %v632_v43  ;;  %v392_v33 = vmul.f32 0.5, %v620_v31 }
 0x1b7   :  { %v266_v9 = vsel %vm265_vm2, %v508_v50, %v262_v4  ;;  %v301_v10 = vsel %vm298_vm3, %v300_v5, %v296_v8  ;;  %v512_v17 = vpop.eup %511  ;;  %v274_v18 = vmul.f32 %v510_v14, %v650_v58  ;;  %vm279_vm5 = vweird.f32 %v510_v14 }
 0x1b8   :  { %v271_v15 = vsel %vm268_vm4, %v270_v6, %v266_v9  ;;  %v320_v16 = vmul.f32 1.0614054, %v301_v10  ;;  %v304_v20 = vmul.f32 %v512_v17, %v652_v62  ;;  %vm309_vm6 = vweird.f32 %v512_v17  ;;  %vm280_vm8 = vmor %vm278_vm7, %vm279_vm5 }
 0x1b9   :  { %v318_v12 = vmul.f32 1.0614054, %v271_v15  ;;  %v275_v25 = vsub.f32 1.0, %v274_v18  ;;  %vm310_vm11 = vmor %vm308_vm9, %vm309_vm6  ;;  %v361_v5 = vmul.f32 %v357_v59, %v646_v49  ;;  %v514_v11 = vpop.eup %513 }
 0x1ba   :  { %v324_v13 = vadd.f32 -1.4531521, %v320_v16  ;;  %v305_v29 = vsub.f32 1.0, %v304_v20 }
 0x1bb   :  { %v322_v21 = vadd.f32 -1.4531521, %v318_v12  ;;  %v276_v30 = vmul.f32 %v510_v14, %v275_v25  ;;  %v368_v19 = vmul.f32 1.442695, %v361_v5 }
 0x1bc   :  { %v328_v26 = vmul.f32 %v324_v13, %v301_v10  ;;  %v306_v36 = vmul.f32 %v512_v17, %v305_v29 }
 0x1bd   :  { %v326_v22 = vmul.f32 %v322_v21, %v271_v15  ;;  %v277_v39 = vadd.f32 %v510_v14, %v276_v30 }
 0x1be   :  { %v332_v35 = vadd.f32 1.4214138, %v328_v26  ;;  %v307_v48 = vadd.f32 %v512_v17, %v306_v36 }
 0x1bf   :  { %v330_v38 = vadd.f32 1.4214138, %v326_v22  ;;  %v281_v51 = vsel %vm280_vm8, %v510_v14, %v277_v39  ;;  %v364_v14 = vmul.f32 1.442695, %v359_v1 }
 0x1c0   :  { %v336_v41 = vmul.f32 %v332_v35, %v301_v10  ;;  %v286_v54 = vsel %vm283_vm10, %v285_v42, %v281_v51  ;;  %v311_v55 = vsel %vm310_vm11, %v512_v17, %v307_v48  ;;  %v516_v17 = vpop.eup %515 }
 0x1c1   :  { %v334_v50 = vmul.f32 %v330_v38, %v271_v15  ;;  %v319_v57 = vmul.f32 1.0614054, %v286_v54  ;;  %v316_v58 = vsel %vm313_vm12, %v315_v52, %v311_v55  ;;  %517 = vpow2.f32 %v364_v14 }
 0x1c2   :  { %v340_v53 = vadd.f32 -0.28449672, %v336_v41  ;;  %v321_v61 = vmul.f32 1.0614054, %v316_v58  ;;  %519 = vpow2.f32 %v368_v19  ;;  %v390_v52 = vmul.f32 0.5, %v622_v32 }
 0x1c3   :  { %v338_v56 = vadd.f32 -0.28449672, %v334_v50  ;;  %v323_v62 = vadd.f32 -1.4531521, %v319_v57  ;;  %v393_v55 = vmul.f32 0.5, %v634_v44 }
 0x1c4   :  { %v344_v60 = vmul.f32 %v340_v53, %v301_v10  ;;  %v325_v2 = vadd.f32 -1.4531521, %v321_v61 }
 0x1c5   :  { %v342_v63 = vmul.f32 %v338_v56, %v271_v15  ;;  %v327_v4 = vmul.f32 %v323_v62, %v286_v54 }
 0x1c6   :  { %v348_v0 = vadd.f32 0.2548296, %v344_v60  ;;  %v329_v7 = vmul.f32 %v325_v2, %v316_v58 }
 0x1c7   :  { %v346_v3 = vadd.f32 0.2548296, %v342_v63  ;;  %v331_v9 = vadd.f32 1.4214138, %v327_v4  ;;  %v518_v29 = vpop.eup %517 }
 0x1c8   :  { %v352_v6 = vmul.f32 %v348_v0, %v301_v10  ;;  %v333_v16 = vadd.f32 1.4214138, %v329_v7  ;;  %v520_v23 = vpop.eup %519 }
 0x1c9   :  { %v350_v8 = vmul.f32 %v346_v3, %v271_v15  ;;  %v335_v18 = vmul.f32 %v331_v9, %v286_v54 }
 0x1ca   :  { %v372_v13 = vmul.f32 %v516_v17, %v352_v6  ;;  %v337_v20 = vmul.f32 %v333_v16, %v316_v58 }
 0x1cb   :  { %v370_v12 = vmul.f32 %v514_v11, %v350_v8  ;;  %v339_v21 = vadd.f32 -0.28449672, %v335_v18 }
 0x1cc   :  { %v341_v47 = vadd.f32 -0.28449672, %v337_v20  ;;  %v376_v49 = vsub.f32 1.0, %v372_v13 }
 0x1cd   :  { %v374_v24 = vsub.f32 1.0, %v370_v12  ;;  %v343_v25 = vmul.f32 %v339_v21, %v286_v54 }
 0x1ce   :  { %v345_v10 = vmul.f32 %v341_v47, %v316_v58  ;;  %v384_v22 = vsub.f32 0.0, %v376_v49 }
 0x1cf   :  { %v347_v26 = vadd.f32 0.2548296, %v343_v25  ;;  %v382_v27 = vsub.f32 0.0, %v374_v24 }
 0x1d0   :  { %v349_v15 = vadd.f32 0.2548296, %v345_v10  ;;  %v388_v39 = vsel %vm380_vm14, %v376_v49, %v384_v22 }
 0x1d1   :  { %v351_v28 = vmul.f32 %v347_v26, %v286_v54  ;;  %v386_v37 = vsel %vm378_vm13, %v374_v24, %v382_v27  ;;  %v396_v50 = vadd.f32 1.0, %v388_v39 }
 0x1d2   :  { %v353_v30 = vmul.f32 %v349_v15, %v316_v58  ;;  %v394_v42 = vadd.f32 1.0, %v386_v37 }
 0x1d3   :  { %v371_v35 = vmul.f32 %v518_v29, %v351_v28  ;;  %v400_v59 = vmul.f32 %v396_v50, %v392_v33 }
 0x1d4   :  { %v373_v36 = vmul.f32 %v520_v23, %v353_v30  ;;  %v398_v57 = vmul.f32 %v394_v42, %v390_v52 }
 0x1d5   :  { %v375_v38 = vsub.f32 1.0, %v371_v35 }
 0x1d6   :  { %v377_v40 = vsub.f32 1.0, %v373_v36 }
 0x1d7   :  { %v383_v41 = vsub.f32 0.0, %v375_v38 }
 0x1d8   :  { %v385_v48 = vsub.f32 0.0, %v377_v40 }
 0x1d9   :  { %v387_v51 = vsel %vm379_vm15, %v375_v38, %v383_v41 }
 0x1da   :  { %v395_v53 = vadd.f32 1.0, %v387_v51  ;;  %v389_v54 = vsel %vm381_vm0, %v377_v40, %v385_v48 }
 0x1db   :  { %v397_v56 = vadd.f32 1.0, %v389_v54 }
 0x1dc   :  { %v399_v58 = vmul.f32 %v395_v53, %v391_v34 }
 0x1dd   :  { %v401_v45 = vmul.f32 %v397_v56, %v393_v55 }
 0x1de   :  { %v477_v60 = vpack.c.bf16 %v399_v58, %v398_v57 }
 0x1df   :  { %v482_v61 = vpack.c.bf16 %v401_v45, %v400_v59 }
 0x1e0   :  { %478 = vst [vmem:[%s687_s5] sm:$0xff] %v477_v60  }
 0x1e1   :  { %485 = vst [vmem:[%s687_s5 + $0x8] sm:$0xff] %v482_v61  }

// kernel: gpt2_forward.16
= control target key start
LH: loop header
LB: loop body
LE: loop exit
PB: predicated region body
PF: predicated region fallthrough
CT: control target
= control target key end

     0   :  { %v44_v4 = vlaneseq  ;;  %s812_s0 = inlined_call_operand.vmem [shape: f32[32,128], index: 0, kind: input, shape index: {}]   ;;  %s813_s1 = inlined_call_operand.vmem [shape: f32[1,128], index: 1, kind: input, shape index: {}]   ;;  %s814_s2 = inlined_call_operand.vmem [shape: f32[1,128], index: 2, kind: input, shape index: {}]   ;;  %s815_s3 = inlined_call_operand.vmem [shape: bf16[128,384], index: 3, kind: input, shape index: {}]   ;;  %s816_s4 = inlined_call_operand.vmem [shape: f32[1,384], index: 4, kind: input, shape index: {}]   ;;  %s817_s5 = inlined_call_operand.vmem [shape: bf16[32,384], index: 5, kind: output, shape index: {}]  }
   0x1   :  { %v26_v0 = vld [vmem:[%s812_s0 + $0x10] sm:$0xff]  ;;  %v24_v1 = vld [vmem:[%s812_s0] sm:$0xff]  ;;  %v27_v2 = vld [vmem:[%s812_s0 + $0x18] sm:$0xff] }
   0x2   :  { %32 = vadd.xlane.f32.xlu1 %v26_v0  ;;  %28 = vadd.xlane.f32.xlu0 %v24_v1  ;;  %v25_v3 = vld [vmem:[%s812_s0 + $0x8] sm:$0xff]  ;;  %v45_v5 = vand.u32 127, %v44_v4  ;;  %v528_v27 = vld [vmem:[%s815_s3 + $0xb0] sm:$0xf0]  ;;  %v496_v30 = vld [vmem:[%s815_s3 + $0xb4] sm:$0xf0] }
   0x3   :  { %v494_v26 = vld [vmem:[%s815_s3 + $0xa8] sm:$0xf]  ;;  %v527_v28 = vld [vmem:[%s815_s3 + $0xac] sm:$0xf]  ;;  %v502_v31 = vld [vmem:[%s815_s3 + $0xb0] sm:$0xf] }
   0x4   :  { %vm46_vm0 = vcmp.lt.s32.totalorder %v45_v5, 32  ;;  %v495_v29 = vor.u32 %v528_v27, %v494_v26  ;;  %v529_v32 = vld [vmem:[%s815_s3 + $0xb8] sm:$0xf0]  ;;  %v499_v33 = vor.u32 %v527_v28, %v496_v30  ;;  %v482_v35 = vld [vmem:[%s815_s3 + $0x90] sm:$0xf] }
   0x5   :  { %v503_v34 = vor.u32 %v529_v32, %v502_v31  ;;  %v525_v36 = vld [vmem:[%s815_s3 + $0x98] sm:$0xf0]  ;;  %v524_v37 = vld [vmem:[%s815_s3 + $0x94] sm:$0xf]  ;;  %v484_v39 = vld [vmem:[%s815_s3 + $0x9c] sm:$0xf0] }
   0x6   :  { %323 = vmatpush.bf16.msra.mxu0 %v495_v29  ;;  %541 = vmatpush.bf16.msra.mxu3 %v495_v29  ;;  %v483_v38 = vor.u32 %v525_v36, %v482_v35  ;;  %v490_v40 = vld [vmem:[%s815_s3 + $0x98] sm:$0xf]  ;;  %v526_v41 = vld [vmem:[%s815_s3 + $0xa0] sm:$0xf0]  ;;  %v487_v42 = vor.u32 %v524_v37, %v484_v39  ;;  %v521_v46 = vld [vmem:[%s815_s3 + $0x7c] sm:$0xf] }
   0x7   :  { %342 = vmatpush.bf16.msra.mxu1 %v499_v33  ;;  %361 = vmatpush.bf16.msra.mxu2 %v503_v34  ;;  %v491_v43 = vor.u32 %v526_v41, %v490_v40  ;;  %v470_v44 = vld [vmem:[%s815_s3 + $0x78] sm:$0xf]  ;;  %v522_v45 = vld [vmem:[%s815_s3 + $0x80] sm:$0xf0]  ;;  %v472_v48 = vld [vmem:[%s815_s3 + $0x84] sm:$0xf0] }
   0x8   :  { %v471_v47 = vor.u32 %v522_v45, %v470_v44  ;;  %v478_v49 = vld [vmem:[%s815_s3 + $0x80] sm:$0xf]  ;;  %v523_v50 = vld [vmem:[%s815_s3 + $0x88] sm:$0xf0]  ;;  %v475_v51 = vor.u32 %v521_v46, %v472_v48  ;;  %v518_v55 = vld [vmem:[%s815_s3 + $0x64] sm:$0xf] }
   0x9   :  { %v479_v52 = vor.u32 %v523_v50, %v478_v49  ;;  %v458_v53 = vld [vmem:[%s815_s3 + $0x60] sm:$0xf]  ;;  %v519_v54 = vld [vmem:[%s815_s3 + $0x68] sm:$0xf0]  ;;  %v460_v57 = vld [vmem:[%s815_s3 + $0x6c] sm:$0xf0] }
   0xa   :  { %34 = vadd.xlane.f32.xlu1 %v27_v2  ;;  %30 = vadd.xlane.f32.xlu0 %v25_v3  ;;  %v459_v56 = vor.u32 %v519_v54, %v458_v53  ;;  %v466_v58 = vld [vmem:[%s815_s3 + $0x68] sm:$0xf]  ;;  %v520_v59 = vld [vmem:[%s815_s3 + $0x70] sm:$0xf0]  ;;  %v463_v60 = vor.u32 %v518_v55, %v460_v57  ;;  %v448_v4 = vld [vmem:[%s815_s3 + $0x54] sm:$0xf0] }
   0xb   :  { %324 = vmatpush.bf16.msra.mxu0 %v483_v38  ;;  %542 = vmatpush.bf16.msra.mxu3 %v483_v38  ;;  %v467_v61 = vor.u32 %v520_v59, %v466_v58  ;;  %v446_v62 = vld [vmem:[%s815_s3 + $0x48] sm:$0xf]  ;;  %v516_v63 = vld [vmem:[%s815_s3 + $0x50] sm:$0xf0]  ;;  %v454_v5 = vld [vmem:[%s815_s3 + $0x50] sm:$0xf] }
   0xc   :  { %343 = vmatpush.bf16.msra.mxu1 %v487_v42  ;;  %362 = vmatpush.bf16.msra.mxu2 %v491_v43  ;;  %v422_v26 = vld [vmem:[%s815_s3 + $0x18] sm:$0xf]  ;;  %v510_v27 = vld [vmem:[%s815_s3 + $0x20] sm:$0xf0]  ;;  %v509_v28 = vld [vmem:[%s815_s3 + $0x1c] sm:$0xf] }
   0xd   :  { %v423_v31 = vor.u32 %v510_v27, %v422_v26  ;;  %v424_v32 = vld [vmem:[%s815_s3 + $0x24] sm:$0xf0]  ;;  %v430_v33 = vld [vmem:[%s815_s3 + $0x20] sm:$0xf]  ;;  %v511_v34 = vld [vmem:[%s815_s3 + $0x28] sm:$0xf0] }
   0xe   :  { %v427_v37 = vor.u32 %v509_v28, %v424_v32  ;;  %v431_v38 = vor.u32 %v511_v34, %v430_v33  ;;  %v410_v39 = vld [vmem:[%s815_s3] sm:$0xf]  ;;  %v507_v40 = vld [vmem:[%s815_s3 + $0x8] sm:$0xf0]  ;;  %v506_v41 = vld [vmem:[%s815_s3 + $0x4] sm:$0xf] }
   0xf   :  { %325 = vmatpush.bf16.msra.mxu0 %v471_v47  ;;  %543 = vmatpush.bf16.msra.mxu3 %v471_v47  ;;  %v412_v42 = vld [vmem:[%s815_s3 + $0xc] sm:$0xf0]  ;;  %v418_v43 = vld [vmem:[%s815_s3 + $0x8] sm:$0xf]  ;;  %v411_v47 = vor.u32 %v507_v40, %v410_v39  ;;  %v508_v48 = vld [vmem:[%s815_s3 + $0x10] sm:$0xf0] }
  0x10   :  { %344 = vmatpush.bf16.msra.mxu1 %v475_v51  ;;  %363 = vmatpush.bf16.msra.mxu2 %v479_v52  ;;  %v415_v51 = vor.u32 %v506_v41, %v412_v42  ;;  %v419_v52 = vor.u32 %v508_v48, %v418_v43 }
  0x13   :  { %326 = vmatpush.bf16.msra.mxu0 %v459_v56  ;;  %544 = vmatpush.bf16.msra.mxu3 %v459_v56 }
  0x14   :  { %345 = vmatpush.bf16.msra.mxu1 %v463_v60  ;;  %364 = vmatpush.bf16.msra.mxu2 %v467_v61 }
  0x75   :  { %v33_v6 = vpop.xlane.xlu1 %32  ;;  %v29_v7 = vpop.xlane.xlu0 %28 }
  0x76   :  { %v38_v8 = vmul.f32 0.03125, %v33_v6  ;;  %v36_v9 = vmul.f32 0.03125, %v29_v7  ;;  %v517_v6 = vld [vmem:[%s815_s3 + $0x58] sm:$0xf0] }
  0x78   :  { %v42_v10 = vsub.f32 %v26_v0, %v38_v8  ;;  %v40_v11 = vsub.f32 %v24_v1, %v36_v9  ;;  %v515_v0 = vld [vmem:[%s815_s3 + $0x4c] sm:$0xf] }
  0x79   :  { %v451_v9 = vor.u32 %v515_v0, %v448_v4 }
  0x7a   :  { %v602_v12 = vsel %vm46_vm0, %v42_v10, 0.0  ;;  %v605_v13 = vsel %vm46_vm0, %v40_v11, 0.0  ;;  %v455_v10 = vor.u32 %v517_v6, %v454_v5 }
  0x7b   :  { %v53_v14 = vmul.f32 %v602_v12, %v602_v12  ;;  %v51_v15 = vmul.f32 %v605_v13, %v605_v13  ;;  %346 = vmatpush.bf16.msra.mxu1 %v451_v9  ;;  %v549_v9 = vld [vmem:[%s813_s1] ss:$0 sm:$0xff] }
  0x7c   :  { %365 = vmatpush.bf16.msra.mxu2 %v455_v10 }
  0x7d   :  { %v35_v16 = vpop.xlane.xlu1 %34  ;;  %59 = vadd.xlane.f32.xlu0 %v53_v14  ;;  %55 = vadd.xlane.f32.xlu2 %v51_v15  ;;  %v31_v17 = vpop.xlane.xlu0 %30  ;;  %v434_v15 = vld [vmem:[%s815_s3 + $0x30] sm:$0xf] }
  0x7e   :  { %v39_v18 = vmul.f32 0.03125, %v35_v16  ;;  %v37_v19 = vmul.f32 0.03125, %v31_v17  ;;  %v513_v16 = vld [vmem:[%s815_s3 + $0x38] sm:$0xf0]  ;;  %v512_v17 = vld [vmem:[%s815_s3 + $0x34] sm:$0xf] }
  0x80   :  { %v43_v20 = vsub.f32 %v27_v2, %v39_v18  ;;  %v41_v21 = vsub.f32 %v25_v3, %v37_v19  ;;  %v447_v3 = vor.u32 %v516_v63, %v446_v62  ;;  %v436_v18 = vld [vmem:[%s815_s3 + $0x3c] sm:$0xf0]  ;;  %v435_v19 = vor.u32 %v513_v16, %v434_v15 }
  0x82   :  { %v612_v22 = vsel %vm46_vm0, %v43_v20, 0.0  ;;  %v615_v23 = vsel %vm46_vm0, %v41_v21, 0.0  ;;  %327 = vmatpush.bf16.msra.mxu0 %v447_v3  ;;  %545 = vmatpush.bf16.msra.mxu3 %v447_v3  ;;  %v442_v20 = vld [vmem:[%s815_s3 + $0x38] sm:$0xf]  ;;  %v514_v21 = vld [vmem:[%s815_s3 + $0x40] sm:$0xf0] }
  0x83   :  { %v54_v24 = vmul.f32 %v612_v22, %v612_v22  ;;  %v52_v25 = vmul.f32 %v615_v23, %v615_v23 }
  0x85   :  { %61 = vadd.xlane.f32.xlu1 %v54_v24  ;;  %57 = vadd.xlane.f32.xlu2 %v52_v25  ;;  %v439_v24 = vor.u32 %v512_v17, %v436_v18  ;;  %v443_v25 = vor.u32 %v514_v21, %v442_v20  ;;  %v550_v18 = vld [vmem:[%s814_s2] ss:$0 sm:$0xff] }
  0x86   :  { %328 = vmatpush.bf16.msra.mxu0 %v435_v19  ;;  %546 = vmatpush.bf16.msra.mxu3 %v435_v19 }
  0x87   :  { %347 = vmatpush.bf16.msra.mxu1 %v439_v24  ;;  %366 = vmatpush.bf16.msra.mxu2 %v443_v25 }
  0x8a   :  { %329 = vmatpush.bf16.msra.mxu0 %v423_v31  ;;  %547 = vmatpush.bf16.msra.mxu3 %v423_v31 }
  0x8b   :  { %348 = vmatpush.bf16.msra.mxu1 %v427_v37  ;;  %367 = vmatpush.bf16.msra.mxu2 %v431_v38 }
  0x8e   :  { %330 = vmatpush.bf16.msra.mxu0 %v411_v47  ;;  %548 = vmatpush.bf16.msra.mxu3 %v411_v47 }
  0x8f   :  { %349 = vmatpush.bf16.msra.mxu1 %v415_v51  ;;  %368 = vmatpush.bf16.msra.mxu2 %v419_v52 }
  0xf0   :  { %v56_v1 = vpop.xlane.xlu2 %55  ;;  %v60_v2 = vpop.xlane.xlu0 %59 }
  0xf1   :  { %v63_v7 = vmul.f32 0.03125, %v56_v1  ;;  %v65_v8 = vmul.f32 0.03125, %v60_v2 }
  0xf3   :  { %v711_v11 = vadd.f32 1e-05, %v63_v7  ;;  %v713_v14 = vadd.f32 1e-05, %v65_v8 }
  0xf5   :  { %551 = vrsqrt.f32 %v711_v11  ;;  %vm97_vm1 = vweird.f32 %v713_v14  ;;  %vm77_vm5 = vweird.f32 %v711_v11 }
  0xf6   :  { %553 = vrsqrt.f32 %v713_v14 }
  0xf8   :  { %v62_v29 = vpop.xlane.xlu1 %61  ;;  %v58_v30 = vpop.xlane.xlu2 %57 }
  0xf9   :  { %v66_v35 = vmul.f32 0.03125, %v62_v29  ;;  %v64_v36 = vmul.f32 0.03125, %v58_v30 }
  0xfb   :  { %v552_v44 = vpop.eup %551  ;;  %v70_v45 = vadd.f32 1e-05, %v66_v35  ;;  %v68_v46 = vadd.f32 1e-05, %v64_v36 }
  0xfc   :  { %v554_v49 = vpop.eup %553  ;;  %v72_v50 = vmul.f32 %v552_v44, %v711_v11  ;;  %vm78_vm3 = vweird.f32 %v552_v44 }
  0xfd   :  { %v92_v53 = vmul.f32 %v554_v49, %v713_v14  ;;  %555 = vrsqrt.f32 %v70_v45  ;;  %vm98_vm2 = vweird.f32 %v554_v49  ;;  %vm79_vm6 = vmor %vm77_vm5, %vm78_vm3  ;;  %vm107_vm7 = vweird.f32 %v70_v45 }
  0xfe   :  { %v73_v54 = vmul.f32 %v552_v44, %v72_v50  ;;  %557 = vrsqrt.f32 %v68_v46  ;;  %vm99_vm4 = vmor %vm97_vm1, %vm98_vm2  ;;  %vm87_vm11 = vweird.f32 %v68_v46 }
  0xff   :  { %v93_v55 = vmul.f32 %v554_v49, %v92_v53 }
 0x100   :  { %v74_v56 = vmul.f32 0.5, %v73_v54 }
 0x101   :  { %v94_v57 = vmul.f32 0.5, %v93_v55 }
 0x102   :  { %v75_v58 = vsub.f32 1.5, %v74_v56 }
 0x103   :  { %v556_v59 = vpop.eup %555  ;;  %v95_v60 = vsub.f32 1.5, %v94_v57 }
 0x104   :  { %v558_v61 = vpop.eup %557  ;;  %v102_v62 = vmul.f32 %v556_v59, %v70_v45  ;;  %v76_v63 = vmul.f32 %v552_v44, %v75_v58  ;;  %vm108_vm8 = vweird.f32 %v556_v59 }
 0x105   :  { %v96_v0 = vmul.f32 %v554_v49, %v95_v60  ;;  %v82_v1 = vmul.f32 %v558_v61, %v68_v46  ;;  %vm109_vm9 = vmor %vm107_vm7, %vm108_vm8  ;;  %vm88_vm10 = vweird.f32 %v558_v61 }
 0x106   :  { %v103_v2 = vmul.f32 %v556_v59, %v102_v62  ;;  %v80_v6 = vsel %vm79_vm6, %v552_v44, %v76_v63  ;;  %vm89_vm12 = vmor %vm87_vm11, %vm88_vm10 }
 0x107   :  { %v83_v3 = vmul.f32 %v558_v61, %v82_v1  ;;  %v100_v4 = vsel %vm99_vm4, %v554_v49, %v96_v0  ;;  %v111_v11 = vmul.f32 %v80_v6, %v605_v13 }
 0x108   :  { %v104_v5 = vmul.f32 0.5, %v103_v2  ;;  %v113_v10 = vmul.f32 %v100_v4, %v602_v12 }
 0x109   :  { %v84_v7 = vmul.f32 0.5, %v83_v3  ;;  %v119_v24 = vmul.f32 %v549_v9, %v111_v11 }
 0x10a   :  { %v105_v8 = vsub.f32 1.5, %v104_v5  ;;  %v121_v19 = vmul.f32 %v549_v9, %v113_v10 }
 0x10b   :  { %v85_v14 = vsub.f32 1.5, %v84_v7  ;;  %v127_v28 = vadd.f32 %v550_v18, %v119_v24 }
 0x10c   :  { %v106_v15 = vmul.f32 %v556_v59, %v105_v8  ;;  %v129_v27 = vadd.f32 %v550_v18, %v121_v19 }
 0x10d   :  { %v86_v16 = vmul.f32 %v558_v61, %v85_v14 }
 0x10e   :  { %v110_v17 = vsel %vm109_vm9, %v556_v59, %v106_v15 }
 0x10f   :  { %v114_v20 = vmul.f32 %v110_v17, %v612_v22  ;;  %v90_v21 = vsel %vm89_vm12, %v558_v61, %v86_v16  ;;  %v175_v22 = vld [vmem:[%s816_s4] sm:$0x7] }
 0x110   :  { %v112_v12 = vmul.f32 %v90_v21, %v615_v23  ;;  %v177_v23 = vperm.slane %v175_v22, 0  ;;  %v178_v34 = vperm.slane %v175_v22, 1  ;;  %v179_v40 = vperm.slane %v175_v22, 2 }
 0x111   :  { %v122_v25 = vmul.f32 %v549_v9, %v114_v20 }
 0x112   :  { %v120_v26 = vmul.f32 %v549_v9, %v112_v12 }
 0x113   :  { %v130_v13 = vadd.f32 %v550_v18, %v122_v25 }
 0x114   :  { %v128_v29 = vadd.f32 %v550_v18, %v120_v26 }
 0x115   :  { %v538_v30 = vpack.c.bf16 %v130_v13, %v129_v27 }
 0x116   :  { %v533_v31 = vpack.c.bf16 %v128_v29, %v127_v28 }
 0x117   :  { %540 = vst [vmem:[#allocation2 + $0x8] sm:$0xff] %v538_v30  }
 0x118   :  { %534 = vst [vmem:[#allocation2] sm:$0xff] %v533_v31  }
 0x11e   :  { %v505_v32 = vld [vmem:[#allocation2 + $0x8] sm:$0xff] }
 0x11f   :  { %v504_v33 = vld [vmem:[#allocation2] sm:$0xff]  ;;  %336 = vmatmul.bf16.vlgmr.msra.gmra.mxu3 %v505_v32 }
 0x120   :  { %331 = vmatmul.bf16.vlgmr.msra.gmra.mxu0 %v504_v33  ;;  %350 = vmatmul.bf16.vlgmr.msra.gmra.mxu1 %v504_v33 }
 0x121   :  { %369 = vmatmul.bf16.vlgmr.msra.gmra.mxu2 %v504_v33 }
 0x130   :  { %355 = vmatmul.bf16.gmra.mxu1 %v505_v32 }
 0x131   :  { %374 = vmatmul.bf16.gmra.mxu2 %v505_v32 }
 0x19d   :  { %v332_v35 = vpop.f32.mrf.mxu0  ;;  %v351_v36 = vpop.f32.mrf.mxu1 }
 0x19e   :  { %v333_v37 = vadd.f32 %v332_v35, %v177_v23  ;;  %v352_v38 = vadd.f32 %v351_v36, %v178_v34 }
 0x1a0   :  { %v380_v39 = vpack.c.bf16 %v352_v38, %v333_v37 }
 0x1a2   :  { %388 = vst [vmem:[%s817_s5] sm:$0xff] %v380_v39  ;;  %v337_v49 = vpop.f32.mrf.mxu3 }
 0x1a3   :  { %v338_v53 = vadd.f32 %v337_v49, %v177_v23 }
 0x1a4   :  { %v370_v41 = vpop.f32.mrf.mxu2 }
 0x1a5   :  { %v371_v42 = vadd.f32 %v370_v41, %v179_v40  ;;  %v334_v43 = vpop.f32.mrf.mxu0  ;;  %v353_v44 = vpop.f32.mrf.mxu1 }
 0x1a6   :  { %v335_v45 = vadd.f32 %v334_v43, %v177_v23  ;;  %v354_v46 = vadd.f32 %v353_v44, %v178_v34 }
 0x1a7   :  { %v381_v47 = vpack.c.bf16 %v371_v42, %v371_v42 }
 0x1a8   :  { %v382_v48 = vpack.c.bf16 %v354_v46, %v335_v45 }
 0x1a9   :  { %389 = vst [vmem:[%s817_s5 + $0x8] sm:$0xf] %v381_v47 }
 0x1aa   :  { %390 = vst [vmem:[%s817_s5 + $0xc] sm:$0xff] %v382_v48  ;;  %v339_v57 = vpop.f32.mrf.mxu3 }
 0x1ab   :  { %v340_v61 = vadd.f32 %v339_v57, %v177_v23 }
 0x1ac   :  { %v372_v50 = vpop.f32.mrf.mxu2 }
 0x1ad   :  { %v373_v51 = vadd.f32 %v372_v50, %v179_v40  ;;  %v356_v52 = vpop.f32.mrf.mxu1 }
 0x1ae   :  { %v357_v54 = vadd.f32 %v356_v52, %v178_v34 }
 0x1af   :  { %v383_v55 = vpack.c.bf16 %v373_v51, %v373_v51 }
 0x1b0   :  { %v384_v56 = vpack.c.bf16 %v357_v54, %v338_v53 }
 0x1b1   :  { %391 = vst [vmem:[%s817_s5 + $0x14] sm:$0xf] %v383_v55 }
 0x1b2   :  { %392 = vst [vmem:[%s817_s5 + $0x18] sm:$0xff] %v384_v56 }
 0x1b4   :  { %v375_v58 = vpop.f32.mrf.mxu2 }
 0x1b5   :  { %v376_v59 = vadd.f32 %v375_v58, %v179_v40  ;;  %v358_v60 = vpop.f32.mrf.mxu1 }
 0x1b6   :  { %v359_v62 = vadd.f32 %v358_v60, %v178_v34 }
 0x1b7   :  { %v385_v63 = vpack.c.bf16 %v376_v59, %v376_v59 }
 0x1b8   :  { %v386_v0 = vpack.c.bf16 %v359_v62, %v340_v61 }
 0x1b9   :  { %393 = vst [vmem:[%s817_s5 + $0x20] sm:$0xf] %v385_v63 }
 0x1ba   :  { %394 = vst [vmem:[%s817_s5 + $0x24] sm:$0xff] %v386_v0 }
 0x1bc   :  { %v377_v1 = vpop.f32.mrf.mxu2 }
 0x1bd   :  { %v378_v2 = vadd.f32 %v377_v1, %v179_v40 }
 0x1bf   :  { %v387_v3 = vpack.c.bf16 %v378_v2, %v378_v2 }
 0x1c1   :  { %395 = vst [vmem:[%s817_s5 + $0x2c] sm:$0xf] %v387_v3 }

// kernel: gpt2_forward.21
= control target key start
LH: loop header
LB: loop body
LE: loop exit
PB: predicated region body
PF: predicated region fallthrough
CT: control target
= control target key end

     0   :  { %v41_v4 = vlaneseq  ;;  %s425_s0 = inlined_call_operand.vmem [shape: f32[32,128], index: 0, kind: input, shape index: {}]   ;;  %s426_s1 = inlined_call_operand.vmem [shape: f32[1,128], index: 1, kind: input, shape index: {}]   ;;  %s427_s2 = inlined_call_operand.vmem [shape: f32[1,128], index: 2, kind: input, shape index: {}]   ;;  %s428_s3 = inlined_call_operand.vmem [shape: bf16[128,128], index: 3, kind: input, shape index: {}]   ;;  %s429_s4 = inlined_call_operand.vmem [shape: f32[32,128], index: 4, kind: output, shape index: {}]  }
   0x1   :  { %v23_v0 = vld [vmem:[%s425_s0 + $0x10] sm:$0xff]  ;;  %v21_v1 = vld [vmem:[%s425_s0] sm:$0xff]  ;;  %v24_v2 = vld [vmem:[%s425_s0 + $0x18] sm:$0xff] }
   0x2   :  { %29 = vadd.xlane.f32.xlu1 %v23_v0  ;;  %25 = vadd.xlane.f32.xlu0 %v21_v1  ;;  %v22_v3 = vld [vmem:[%s425_s0 + $0x8] sm:$0xff]  ;;  %v42_v5 = vand.u32 127, %v41_v4  ;;  %v292_v26 = vld [vmem:[%s428_s3 + $0x38] sm:$0xff]  ;;  %v291_v27 = vld [vmem:[%s428_s3 + $0x30] sm:$0xff] }
   0x3   :  { %216 = vmatpush.bf16.msra.mxu0 %v292_v26  ;;  %304 = vmatpush.bf16.msra.mxu1 %v292_v26  ;;  %v290_v28 = vld [vmem:[%s428_s3 + $0x28] sm:$0xff]  ;;  %v289_v29 = vld [vmem:[%s428_s3 + $0x20] sm:$0xff]  ;;  %v288_v32 = vld [vmem:[%s428_s3 + $0x18] sm:$0xff] }
   0x4   :  { %vm43_vm0 = vcmp.lt.s32.totalorder %v42_v5, 32  ;;  %v287_v37 = vld [vmem:[%s428_s3 + $0x10] sm:$0xff]  ;;  %v286_v40 = vld [vmem:[%s428_s3 + $0x8] sm:$0xff]  ;;  %v285_v43 = vld [vmem:[%s428_s3] sm:$0xff] }
   0x5   :  { %v312_v5 = vld [vmem:[%s426_s1] ss:$0 sm:$0xff] }
   0x7   :  { %217 = vmatpush.bf16.msra.mxu0 %v291_v27  ;;  %305 = vmatpush.bf16.msra.mxu1 %v291_v27 }
   0xa   :  { %31 = vadd.xlane.f32.xlu1 %v24_v2  ;;  %27 = vadd.xlane.f32.xlu0 %v22_v3 }
   0xb   :  { %218 = vmatpush.bf16.msra.mxu0 %v290_v28  ;;  %306 = vmatpush.bf16.msra.mxu1 %v290_v28 }
   0xf   :  { %219 = vmatpush.bf16.msra.mxu0 %v289_v29  ;;  %307 = vmatpush.bf16.msra.mxu1 %v289_v29 }
  0x13   :  { %220 = vmatpush.bf16.msra.mxu0 %v288_v32  ;;  %308 = vmatpush.bf16.msra.mxu1 %v288_v32 }
  0x17   :  { %221 = vmatpush.bf16.msra.mxu0 %v287_v37  ;;  %309 = vmatpush.bf16.msra.mxu1 %v287_v37 }
  0x1b   :  { %222 = vmatpush.bf16.msra.mxu0 %v286_v40  ;;  %310 = vmatpush.bf16.msra.mxu1 %v286_v40 }
  0x1f   :  { %223 = vmatpush.bf16.msra.mxu0 %v285_v43  ;;  %311 = vmatpush.bf16.msra.mxu1 %v285_v43 }
  0x75   :  { %v30_v6 = vpop.xlane.xlu1 %29  ;;  %v26_v7 = vpop.xlane.xlu0 %25 }
  0x76   :  { %v35_v8 = vmul.f32 0.03125, %v30_v6  ;;  %v33_v9 = vmul.f32 0.03125, %v26_v7 }
  0x78   :  { %v39_v10 = vsub.f32 %v23_v0, %v35_v8  ;;  %v37_v11 = vsub.f32 %v21_v1, %v33_v9 }
  0x7a   :  { %v360_v12 = vsel %vm43_vm0, %v39_v10, 0.0  ;;  %v363_v13 = vsel %vm43_vm0, %v37_v11, 0.0 }
  0x7b   :  { %v50_v14 = vmul.f32 %v360_v12, %v360_v12  ;;  %v48_v15 = vmul.f32 %v363_v13, %v363_v13 }
  0x7d   :  { %v32_v16 = vpop.xlane.xlu1 %31  ;;  %56 = vadd.xlane.f32.xlu0 %v50_v14  ;;  %52 = vadd.xlane.f32.xlu2 %v48_v15  ;;  %v28_v17 = vpop.xlane.xlu0 %27  ;;  %v313_v14 = vld [vmem:[%s427_s2] ss:$0 sm:$0xff] }
  0x7e   :  { %v36_v18 = vmul.f32 0.03125, %v32_v16  ;;  %v34_v19 = vmul.f32 0.03125, %v28_v17 }
  0x80   :  { %v40_v20 = vsub.f32 %v24_v2, %v36_v18  ;;  %v38_v21 = vsub.f32 %v22_v3, %v34_v19 }
  0x82   :  { %v370_v22 = vsel %vm43_vm0, %v40_v20, 0.0  ;;  %v373_v23 = vsel %vm43_vm0, %v38_v21, 0.0 }
  0x83   :  { %v51_v24 = vmul.f32 %v370_v22, %v370_v22  ;;  %v49_v25 = vmul.f32 %v373_v23, %v373_v23 }
  0x85   :  { %58 = vadd.xlane.f32.xlu1 %v51_v24  ;;  %54 = vadd.xlane.f32.xlu2 %v49_v25 }
  0xf0   :  { %v53_v30 = vpop.xlane.xlu2 %52  ;;  %v57_v31 = vpop.xlane.xlu0 %56 }
  0xf1   :  { %v60_v33 = vmul.f32 0.03125, %v53_v30  ;;  %v62_v34 = vmul.f32 0.03125, %v57_v31 }
  0xf3   :  { %v64_v35 = vadd.f32 1e-05, %v60_v33  ;;  %v66_v36 = vadd.f32 1e-05, %v62_v34 }
  0xf5   :  { %314 = vrsqrt.f32 %v64_v35  ;;  %vm94_vm3 = vweird.f32 %v66_v36  ;;  %vm74_vm4 = vweird.f32 %v64_v35 }
  0xf6   :  { %316 = vrsqrt.f32 %v66_v36 }
  0xf8   :  { %v59_v38 = vpop.xlane.xlu1 %58  ;;  %v55_v39 = vpop.xlane.xlu2 %54 }
  0xf9   :  { %v63_v41 = vmul.f32 0.03125, %v59_v38  ;;  %v61_v42 = vmul.f32 0.03125, %v55_v39 }
  0xfb   :  { %v315_v44 = vpop.eup %314  ;;  %v67_v45 = vadd.f32 1e-05, %v63_v41  ;;  %v65_v46 = vadd.f32 1e-05, %v61_v42 }
  0xfc   :  { %v317_v47 = vpop.eup %316  ;;  %v69_v48 = vmul.f32 %v315_v44, %v64_v35  ;;  %vm75_vm2 = vweird.f32 %v315_v44 }
  0xfd   :  { %v89_v49 = vmul.f32 %v317_v47, %v66_v36  ;;  %318 = vrsqrt.f32 %v67_v45  ;;  %vm95_vm1 = vweird.f32 %v317_v47  ;;  %vm76_vm6 = vmor %vm74_vm4, %vm75_vm2  ;;  %vm104_vm9 = vweird.f32 %v67_v45 }
  0xfe   :  { %v70_v50 = vmul.f32 %v315_v44, %v69_v48  ;;  %320 = vrsqrt.f32 %v65_v46  ;;  %vm96_vm5 = vmor %vm94_vm3, %vm95_vm1  ;;  %vm84_vm11 = vweird.f32 %v65_v46 }
  0xff   :  { %v90_v51 = vmul.f32 %v317_v47, %v89_v49 }
 0x100   :  { %v71_v52 = vmul.f32 0.5, %v70_v50 }
 0x101   :  { %v91_v53 = vmul.f32 0.5, %v90_v51 }
 0x102   :  { %v72_v54 = vsub.f32 1.5, %v71_v52 }
 0x103   :  { %v319_v55 = vpop.eup %318  ;;  %v92_v56 = vsub.f32 1.5, %v91_v53 }
 0x104   :  { %v321_v57 = vpop.eup %320  ;;  %v99_v58 = vmul.f32 %v319_v55, %v67_v45  ;;  %v73_v59 = vmul.f32 %v315_v44, %v72_v54  ;;  %vm105_vm7 = vweird.f32 %v319_v55 }
 0x105   :  { %v93_v60 = vmul.f32 %v317_v47, %v92_v56  ;;  %v79_v61 = vmul.f32 %v321_v57, %v65_v46  ;;  %vm85_vm8 = vweird.f32 %v321_v57  ;;  %vm106_vm10 = vmor %vm104_vm9, %vm105_vm7 }
 0x106   :  { %v100_v62 = vmul.f32 %v319_v55, %v99_v58  ;;  %v77_v2 = vsel %vm76_vm6, %v315_v44, %v73_v59  ;;  %vm86_vm12 = vmor %vm84_vm11, %vm85_vm8 }
 0x107   :  { %v80_v63 = vmul.f32 %v321_v57, %v79_v61  ;;  %v97_v0 = vsel %vm96_vm5, %v317_v47, %v93_v60  ;;  %v108_v8 = vmul.f32 %v77_v2, %v363_v13 }
 0x108   :  { %v101_v1 = vmul.f32 0.5, %v100_v62  ;;  %v110_v6 = vmul.f32 %v97_v0, %v360_v12 }
 0x109   :  { %v81_v3 = vmul.f32 0.5, %v80_v63  ;;  %v116_v12 = vmul.f32 %v312_v5, %v108_v8 }
 0x10a   :  { %v102_v4 = vsub.f32 1.5, %v101_v1  ;;  %v118_v15 = vmul.f32 %v312_v5, %v110_v6 }
 0x10b   :  { %v82_v7 = vsub.f32 1.5, %v81_v3  ;;  %v124_v24 = vadd.f32 %v313_v14, %v116_v12 }
 0x10c   :  { %v103_v9 = vmul.f32 %v319_v55, %v102_v4  ;;  %v126_v20 = vadd.f32 %v313_v14, %v118_v15 }
 0x10d   :  { %v83_v10 = vmul.f32 %v321_v57, %v82_v7 }
 0x10e   :  { %v107_v11 = vsel %vm106_vm10, %v319_v55, %v103_v9 }
 0x10f   :  { %v111_v16 = vmul.f32 %v107_v11, %v370_v22  ;;  %v87_v17 = vsel %vm86_vm12, %v321_v57, %v83_v10 }
 0x110   :  { %v109_v18 = vmul.f32 %v87_v17, %v373_v23 }
 0x111   :  { %v119_v19 = vmul.f32 %v312_v5, %v111_v16 }
 0x112   :  { %v117_v13 = vmul.f32 %v312_v5, %v109_v18 }
 0x113   :  { %v127_v21 = vadd.f32 %v313_v14, %v119_v19 }
 0x114   :  { %v125_v25 = vadd.f32 %v313_v14, %v117_v13 }
 0x115   :  { %v301_v26 = vpack.c.bf16 %v127_v21, %v126_v20 }
 0x116   :  { %v296_v27 = vpack.c.bf16 %v125_v25, %v124_v24 }
 0x117   :  { %303 = vst [vmem:[#allocation2 + $0x8] sm:$0xff] %v301_v26  }
 0x118   :  { %297 = vst [vmem:[#allocation2] sm:$0xff] %v296_v27  }
 0x11e   :  { %v284_v28 = vld [vmem:[#allocation2 + $0x8] sm:$0xff] }
 0x11f   :  { %v283_v29 = vld [vmem:[#allocation2] sm:$0xff]  ;;  %229 = vmatmul.bf16.vlgmr.msra.gmra.mxu1 %v284_v28 }
 0x120   :  { %224 = vmatmul.bf16.vlgmr.msra.gmra.mxu0 %v283_v29 }
 0x19c   :  { %v230_v30 = vpop.f32.mrf.mxu1 }
 0x19d   :  { %v225_v22 = vpop.f32.mrf.mxu0  ;;  %237 = vst [vmem:[%s429_s4 + $0x10] sm:$0xff] %v230_v30 }
 0x19e   :  { %235 = vst [vmem:[%s429_s4] sm:$0xff] %v225_v22 }
 0x1a4   :  { %v232_v23 = vpop.f32.mrf.mxu1 }
 0x1a5   :  { %v227_v31 = vpop.f32.mrf.mxu0  ;;  %238 = vst [vmem:[%s429_s4 + $0x18] sm:$0xff] %v232_v23 }
 0x1a6   :  { %236 = vst [vmem:[%s429_s4 + $0x8] sm:$0xff] %v227_v31 }

</bundles_post_ra>
